<compile_context>
chip_gen: v5e
topology: v5e:2x2
jax: 0.10.0
libtpu: 0.0.40
codegen_flags: <defaults>
</compile_context>

<pallas_src>
import functools

import jax
import jax.numpy as jnp
from jax.experimental import pallas as pl
from jax.experimental.pallas import tpu as pltpu

LANE = 128


# ---------------------------------------------------------------------------
# Fused kernel: base model (1x1 conv + ReLU + global avg pool) + both heads,
# batch-tiled (TB rows per grid step), HW accumulated across grid axis 1.
# ---------------------------------------------------------------------------
def detector_kernel(x_ref, wconv_ref, bconv_ref,
                    wh1_ref, bh1_ref,
                    w2_ref, b2_ref, w3_ref, b3_ref, w4_ref, b4_ref,
                    wc2_ref, bc2_ref, wc3_ref, bc3_ref,
                    bbox_ref, logits_ref,
                    acc_ref, *, tb, hw_tile, hw_total):
    f32 = jnp.float32
    bf16 = jnp.bfloat16
    j = pl.program_id(1)

    @pl.when(j == 0)
    def _():
        acc_ref[...] = jnp.zeros_like(acc_ref)

    # ---- base model: 1x1 conv + ReLU, partial sum over this HW tile ---------
    # x tile (TB, HW_T, C) -> (TB*HW_T, C): pure major-dim reshape, no relayout.
    x = x_ref[...].reshape(tb * hw_tile, -1)                       # bf16
    h = jnp.dot(x, wconv_ref[...], preferred_element_type=f32)     # (TB*HW_T, F)
    h = jnp.maximum(h + bconv_ref[...], 0.0)                       # (1,F) row bcast
    acc_ref[...] += jnp.sum(h.reshape(tb, hw_tile, -1), axis=1)    # (TB, F) f32

    # ---- heads: run once per batch tile, on the last HW step ---------------
    @pl.when(j == pl.num_programs(1) - 1)
    def _():
        feat = acc_ref[...] * (1.0 / hw_total)                     # global avg pool

        # merged first layers of both heads: (TB, F) @ (F, 128+512)
        h1 = jnp.dot(feat.astype(bf16), wh1_ref[...],
                     preferred_element_type=f32)
        h1 = jnp.maximum(h1 + bh1_ref[...], 0.0)
        h_reg = h1[:, :LANE].astype(bf16)                          # regressor in
        h_cls = h1[:, LANE:].astype(bf16)                          # classifier in

        # regressor tail: 128 -> 64 -> 32 -> 4 (sigmoid), padded to 128 lanes
        r = jnp.maximum(jnp.dot(h_reg, w2_ref[...],
                                preferred_element_type=f32) + b2_ref[...], 0.0)
        r = jnp.maximum(jnp.dot(r.astype(bf16), w3_ref[...],
                                preferred_element_type=f32) + b3_ref[...], 0.0)
        bbox = jnp.dot(r.astype(bf16), w4_ref[...],
                       preferred_element_type=f32) + b4_ref[...]   # (TB, 128)
        # Exact sigmoid (EUP exp + exact reciprocal); clip only guards against
        # numerical overshoot, not an approximation.
        bbox_ref[...] = jnp.clip(pl.reciprocal(1.0 + jnp.exp(-bbox)), 0.0, 1.0)

        # classifier_total tail: 512 -> 512 -> NC (Dropout == identity in eval)
        c = jnp.maximum(jnp.dot(h_cls, wc2_ref[...],
                                preferred_element_type=f32) + bc2_ref[...], 0.0)
        logits_ref[...] = jnp.dot(c.astype(bf16), wc3_ref[...],
                                  preferred_element_type=f32) + bc3_ref[...]


# ---------------------------------------------------------------------------
# Wrapper
# ---------------------------------------------------------------------------
def _const_spec(arr):
    nd = arr.ndim
    return pl.BlockSpec(arr.shape, lambda i, j, _n=nd: (0,) * _n)


def object_detector_forward(x_nchw, params, num_classes_total, *,
                            tb=8, hw_tile=None):
    B, C, H, W = x_nchw.shape
    HW = H * W
    F = params["w_conv"].shape[1]
    nc_pad = params["wc3"].shape[1]

    # HW tiling: at demo shapes a single step; for real backbone shapes pick
    # hw_tile so 2 * (TB * hw_tile * C * 2B) stays in the 4-8 MiB range.
    if hw_tile is None:
        hw_tile = HW
    assert HW % hw_tile == 0
    n_hw = HW // hw_tile

    # Batch tiling: TB=8 minimum (full f32 sublane); pad B up to a multiple.
    b_pad = pl.cdiv(B, tb) * tb
    n_b = b_pad // tb

    # NCHW -> (B, HW, C): channels on the lane axis so the 1x1 conv is a plain
    # row matmul and the pool is a sublane reduce straight into (TB, F) rows.
    # This is wrapper-side layout plumbing only (single XLA copy).
    x = jnp.transpose(x_nchw, (0, 2, 3, 1)).reshape(B, HW, C)
    if b_pad != B:
        x = jnp.pad(x, ((0, b_pad - B), (0, 0), (0, 0)))
    x = x.astype(jnp.bfloat16)

    weight_order = ("w_conv", "b_conv", "w_h1", "b_h1",
                    "w2", "b2", "w3", "b3", "w4", "b4",
                    "wc2", "bc2", "wc3", "bc3")
    weights = [params[k] for k in weight_order]

    kernel = functools.partial(detector_kernel,
                               tb=tb, hw_tile=hw_tile, hw_total=HW)

    bbox_pad, logits_pad = pl.pallas_call(
        kernel,
        out_shape=(
            jax.ShapeDtypeStruct((b_pad, LANE), jnp.float32),
            jax.ShapeDtypeStruct((b_pad, nc_pad), jnp.float32),
        ),
        grid=(n_b, n_hw),
        in_specs=[pl.BlockSpec((tb, hw_tile, C), lambda i, j: (i, j, 0))]
                 + [_const_spec(w) for w in weights],
        out_specs=(
            pl.BlockSpec((tb, LANE), lambda i, j: (i, 0)),
            pl.BlockSpec((tb, nc_pad), lambda i, j: (i, 0)),
        ),
        scratch_shapes=[pltpu.VMEM((tb, F), jnp.float32)],
        compiler_params=pltpu.CompilerParams(
            dimension_semantics=("parallel", "arbitrary")),
    )(x, *weights)

    # Slice the lane-dense output slabs back to the PyTorch shapes.
    return bbox_pad[:B, :4], logits_pad[:B, :num_classes_total]


# ---------------------------------------------------------------------------
# Deterministic parameter init (PyTorch-Linear-style uniform weights + biases)
# ---------------------------------------------------------------------------
def init_params(key, c_in, in_features, num_classes_total):
    keys = jax.random.split(key, 8)

    def dense(k, fan_in, fan_out):
        kw, kb = jax.random.split(k)
        scale = 1.0 / jnp.sqrt(jnp.float32(fan_in))
        w = jax.random.uniform(kw, (fan_in, fan_out), jnp.float32, -scale, scale)
        b = jax.random.uniform(kb, (1, fan_out), jnp.float32, -scale, scale)
        return w, b

    def pad_cols(a, target):
        return jnp.pad(a, ((0, 0), (0, target - a.shape[1])))

    nc_pad = ((num_classes_total + LANE - 1) // LANE) * LANE
    bf16 = jnp.bfloat16

    # synthetic baseModel 1x1 conv
    w_conv, b_conv = dense(keys[0], c_in, in_features)
    # regressor: F -> 128 -> 64 -> 32 -> 4
    w1, b1 = dense(keys[1], in_features, 128)
    w2, b2 = dense(keys[2], 128, 64)
    w3, b3 = dense(keys[3], 64, 32)
    w4, b4 = dense(keys[4], 32, 4)
    # classifier_total: F -> 512 -> 512 -> numClasses_total
    wc1, bc1 = dense(keys[5], in_features, 512)
    wc2, bc2 = dense(keys[6], 512, 512)
    wc3, bc3 = dense(keys[7], 512, num_classes_total)

    return {
        # conv weight in (C, F) "linear over channels" layout; f32 bias row
        "w_conv": w_conv.astype(bf16),
        "b_conv": b_conv,
        # heads' first layers merged: (F, 128 + 512) = (F, 640), lane-aligned
        "w_h1": jnp.concatenate([w1, wc1], axis=1).astype(bf16),
        "b_h1": jnp.concatenate([b1, bc1], axis=1),
        "w2": w2.astype(bf16), "b2": b2,
        "w3": w3.astype(bf16), "b3": b3,
        # tiny output dims padded up to a full 128-lane slab (unmasked stores)
        "w4": pad_cols(w4, LANE).astype(bf16), "b4": pad_cols(b4, LANE),
        "wc2": wc2.astype(bf16), "bc2": bc2,
        "wc3": pad_cols(wc3, nc_pad).astype(bf16), "bc3": pad_cols(bc3, nc_pad),
    }


if __name__ == "__main__":
    key = jax.random.PRNGKey(0)
    k_x, k_p = jax.random.split(key)

    B, C, H, W = 2, 4, 16, 16           # small NCHW input
    IN_FEATURES = 32                    # baseModel.fc.in_features
    NUM_CLASSES_TOTAL = 10

    x = jax.random.normal(k_x, (B, C, H, W), jnp.float32)
    params = init_params(k_p, C, IN_FEATURES, NUM_CLASSES_TOTAL)

    fwd = jax.jit(functools.partial(object_detector_forward,
                                    params=params,
                                    num_classes_total=NUM_CLASSES_TOTAL))
    bboxes, class_logits_total = fwd(x)
    jax.block_until_ready((bboxes, class_logits_total))

    assert bboxes.shape == (B, 4)
    assert class_logits_total.shape == (B, NUM_CLASSES_TOTAL)
    assert bool(jnp.all((bboxes >= 0.0) & (bboxes <= 1.0)))
    assert bool(jnp.all(jnp.isfinite(class_logits_total)))

    print("KERNEL_OK")
</pallas_src>

<mosaic_0001>
module attributes {stable_mosaic.version = 11 : i64} {
  func.func @detector_kernel(%arg0: i32, %arg1: i32, %arg2: memref<8x256x4xbf16, #tpu.memory_space<vmem>>, %arg3: memref<4x32xbf16, #tpu.memory_space<vmem>>, %arg4: memref<1x32xf32, #tpu.memory_space<vmem>>, %arg5: memref<32x640xbf16, #tpu.memory_space<vmem>>, %arg6: memref<1x640xf32, #tpu.memory_space<vmem>>, %arg7: memref<128x64xbf16, #tpu.memory_space<vmem>>, %arg8: memref<1x64xf32, #tpu.memory_space<vmem>>, %arg9: memref<64x32xbf16, #tpu.memory_space<vmem>>, %arg10: memref<1x32xf32, #tpu.memory_space<vmem>>, %arg11: memref<32x128xbf16, #tpu.memory_space<vmem>>, %arg12: memref<1x128xf32, #tpu.memory_space<vmem>>, %arg13: memref<512x512xbf16, #tpu.memory_space<vmem>>, %arg14: memref<1x512xf32, #tpu.memory_space<vmem>>, %arg15: memref<512x128xbf16, #tpu.memory_space<vmem>>, %arg16: memref<1x128xf32, #tpu.memory_space<vmem>>, %arg17: memref<8x128xf32, #tpu.memory_space<vmem>>, %arg18: memref<8x128xf32, #tpu.memory_space<vmem>>, %arg19: memref<8x32xf32, #tpu.memory_space<vmem>>) attributes {dimension_semantics = [#tpu.dimension_semantics<parallel>, #tpu.dimension_semantics<arbitrary>], iteration_bounds = array<i64: 1, 1>, scalar_prefetch = 0 : i64, scratch_operands = 1 : i64, tpu.core_type = #tpu.core_type<tc>, window_params = [{transform_indices = @transform_0, window_bounds = array<i64: 8, 256, 4>}, {pipeline_mode = #tpu.pipeline_mode<synchronous>, transform_indices = @transform_1, window_bounds = array<i64: 4, 32>}, {pipeline_mode = #tpu.pipeline_mode<synchronous>, transform_indices = @transform_2, window_bounds = array<i64: 1, 32>}, {pipeline_mode = #tpu.pipeline_mode<synchronous>, transform_indices = @transform_3, window_bounds = array<i64: 32, 640>}, {pipeline_mode = #tpu.pipeline_mode<synchronous>, transform_indices = @transform_4, window_bounds = array<i64: 1, 640>}, {pipeline_mode = #tpu.pipeline_mode<synchronous>, transform_indices = @transform_5, window_bounds = array<i64: 128, 64>}, {pipeline_mode = #tpu.pipeline_mode<synchronous>, transform_indices = @transform_6, window_bounds = array<i64: 1, 64>}, {pipeline_mode = #tpu.pipeline_mode<synchronous>, transform_indices = @transform_7, window_bounds = array<i64: 64, 32>}, {pipeline_mode = #tpu.pipeline_mode<synchronous>, transform_indices = @transform_8, window_bounds = array<i64: 1, 32>}, {pipeline_mode = #tpu.pipeline_mode<synchronous>, transform_indices = @transform_9, window_bounds = array<i64: 32, 128>}, {pipeline_mode = #tpu.pipeline_mode<synchronous>, transform_indices = @transform_10, window_bounds = array<i64: 1, 128>}, {pipeline_mode = #tpu.pipeline_mode<synchronous>, transform_indices = @transform_11, window_bounds = array<i64: 512, 512>}, {pipeline_mode = #tpu.pipeline_mode<synchronous>, transform_indices = @transform_12, window_bounds = array<i64: 1, 512>}, {pipeline_mode = #tpu.pipeline_mode<synchronous>, transform_indices = @transform_13, window_bounds = array<i64: 512, 128>}, {pipeline_mode = #tpu.pipeline_mode<synchronous>, transform_indices = @transform_14, window_bounds = array<i64: 1, 128>}, {transform_indices = @transform_15, window_bounds = array<i64: 8, 128>}, {transform_indices = @transform_16, window_bounds = array<i64: 8, 128>}]} {
    %c0_i32 = arith.constant 0 : i32
    %0 = arith.cmpi eq, %arg1, %c0_i32 : i32
    %1 = arith.extui %0 : i1 to i32
    %c0_i32_0 = arith.constant 0 : i32
    %2 = arith.cmpi ne, %1, %c0_i32_0 : i32
    scf.if %2 {
      %cst_15 = arith.constant 0.000000e+00 : f32
      %20 = vector.broadcast %cst_15 : f32 to vector<8x32xf32>
      %c0_16 = arith.constant 0 : index
      %c0_17 = arith.constant 0 : index
      %21 = vector.load %arg19[%c0_16, %c0_17] : memref<8x32xf32, #tpu.memory_space<vmem>>, vector<8x32xf32>
      tpu.vector_store %arg19[%c0_16, %c0_17], %20 {strides = array<i32>} : memref<8x32xf32, #tpu.memory_space<vmem>>, vector<8x32xf32>,
    } else {
    }
    %c0 = arith.constant 0 : index
    %c0_1 = arith.constant 0 : index
    %c0_2 = arith.constant 0 : index
    %3 = vector.load %arg2[%c0, %c0_1, %c0_2] : memref<8x256x4xbf16, #tpu.memory_space<vmem>>, vector<8x256x4xbf16>
    %4 = vector.shape_cast %3 : vector<8x256x4xbf16> to vector<2048x4xbf16>
    %c0_3 = arith.constant 0 : index
    %c0_4 = arith.constant 0 : index
    %5 = vector.load %arg3[%c0_3, %c0_4] : memref<4x32xbf16, #tpu.memory_space<vmem>>, vector<4x32xbf16>
    %cst = arith.constant dense<0.000000e+00> : vector<2048x32xf32>
    %6 = tpu.matmul %4, %5, %cst {dimension_numbers = #tpu.dot_dimension_numbers<[1], [0], [0], [1], [0, 0, 1, 1], [], []>} : vector<2048x4xbf16>, vector<4x32xbf16>, vector<2048x32xf32> -> vector<2048x32xf32>
    %c0_5 = arith.constant 0 : index
    %c0_6 = arith.constant 0 : index
    %7 = vector.load %arg4[%c0_5, %c0_6] : memref<1x32xf32, #tpu.memory_space<vmem>>, vector<1x32xf32>
    %8 = vector.broadcast %7 : vector<1x32xf32> to vector<2048x32xf32>
    %9 = arith.addf %6, %8 : vector<2048x32xf32>
    %cst_7 = arith.constant 0.000000e+00 : f32
    %10 = vector.broadcast %cst_7 : f32 to vector<2048x32xf32>
    %11 = arith.maximumf %9, %10 : vector<2048x32xf32>
    %c0_8 = arith.constant 0 : index
    %c0_9 = arith.constant 0 : index
    %12 = vector.load %arg19[%c0_8, %c0_9] : memref<8x32xf32, #tpu.memory_space<vmem>>, vector<8x32xf32>
    %13 = vector.shape_cast %11 : vector<2048x32xf32> to vector<8x256x32xf32>
    %cst_10 = arith.constant dense<0.000000e+00> : vector<8x32xf32>
    %14 = vector.multi_reduction <add>, %13, %cst_10 [1] : vector<8x256x32xf32> to vector<8x32xf32>
    %15 = arith.addf %12, %14 : vector<8x32xf32>
    %c0_11 = arith.constant 0 : index
    %c0_12 = arith.constant 0 : index
    %16 = vector.load %arg19[%c0_11, %c0_12] : memref<8x32xf32, #tpu.memory_space<vmem>>, vector<8x32xf32>
    tpu.vector_store %arg19[%c0_11, %c0_12], %15 {strides = array<i32>} : memref<8x32xf32, #tpu.memory_space<vmem>>, vector<8x32xf32>,
    %c0_i32_13 = arith.constant 0 : i32
    %17 = arith.cmpi eq, %arg1, %c0_i32_13 : i32
    %18 = arith.extui %17 : i1 to i32
    %c0_i32_14 = arith.constant 0 : i32
    %19 = arith.cmpi ne, %18, %c0_i32_14 : i32
    scf.if %19 {
      %c0_15 = arith.constant 0 : index
      %c0_16 = arith.constant 0 : index
      %20 = vector.load %arg19[%c0_15, %c0_16] : memref<8x32xf32, #tpu.memory_space<vmem>>, vector<8x32xf32>
      %cst_17 = arith.constant 3.906250e-03 : f32
      %21 = vector.broadcast %cst_17 : f32 to vector<8x32xf32>
      %22 = arith.mulf %20, %21 : vector<8x32xf32>
      %23 = arith.truncf %22 : vector<8x32xf32> to vector<8x32xbf16>
      %c0_18 = arith.constant 0 : index
      %c0_19 = arith.constant 0 : index
      %24 = vector.load %arg5[%c0_18, %c0_19] : memref<32x640xbf16, #tpu.memory_space<vmem>>, vector<32x640xbf16>
      %cst_20 = arith.constant dense<0.000000e+00> : vector<8x640xf32>
      %25 = tpu.matmul %23, %24, %cst_20 {dimension_numbers = #tpu.dot_dimension_numbers<[1], [0], [0], [1], [0, 0, 1, 1], [], []>} : vector<8x32xbf16>, vector<32x640xbf16>, vector<8x640xf32> -> vector<8x640xf32>
      %c0_21 = arith.constant 0 : index
      %c0_22 = arith.constant 0 : index
      %26 = vector.load %arg6[%c0_21, %c0_22] : memref<1x640xf32, #tpu.memory_space<vmem>>, vector<1x640xf32>
      %27 = vector.broadcast %26 : vector<1x640xf32> to vector<8x640xf32>
      %28 = arith.addf %25, %27 : vector<8x640xf32>
      %cst_23 = arith.constant 0.000000e+00 : f32
      %29 = vector.broadcast %cst_23 : f32 to vector<8x640xf32>
      %30 = arith.maximumf %28, %29 : vector<8x640xf32>
      %31 = vector.extract_strided_slice %30 {offsets = [0, 0], sizes = [8, 128], strides = [1, 1]} : vector<8x640xf32> to vector<8x128xf32>
      %32 = arith.truncf %31 : vector<8x128xf32> to vector<8x128xbf16>
      %33 = vector.extract_strided_slice %30 {offsets = [0, 128], sizes = [8, 512], strides = [1, 1]} : vector<8x640xf32> to vector<8x512xf32>
      %34 = arith.truncf %33 : vector<8x512xf32> to vector<8x512xbf16>
      %c0_24 = arith.constant 0 : index
      %c0_25 = arith.constant 0 : index
      %35 = vector.load %arg7[%c0_24, %c0_25] : memref<128x64xbf16, #tpu.memory_space<vmem>>, vector<128x64xbf16>
      %cst_26 = arith.constant dense<0.000000e+00> : vector<8x64xf32>
      %36 = tpu.matmul %32, %35, %cst_26 {dimension_numbers = #tpu.dot_dimension_numbers<[1], [0], [0], [1], [0, 0, 1, 1], [], []>} : vector<8x128xbf16>, vector<128x64xbf16>, vector<8x64xf32> -> vector<8x64xf32>
      %c0_27 = arith.constant 0 : index
      %c0_28 = arith.constant 0 : index
      %37 = vector.load %arg8[%c0_27, %c0_28] : memref<1x64xf32, #tpu.memory_space<vmem>>, vector<1x64xf32>
      %38 = vector.broadcast %37 : vector<1x64xf32> to vector<8x64xf32>
      %39 = arith.addf %36, %38 : vector<8x64xf32>
      %cst_29 = arith.constant 0.000000e+00 : f32
      %40 = vector.broadcast %cst_29 : f32 to vector<8x64xf32>
      %41 = arith.maximumf %39, %40 : vector<8x64xf32>
      %42 = arith.truncf %41 : vector<8x64xf32> to vector<8x64xbf16>
      %c0_30 = arith.constant 0 : index
      %c0_31 = arith.constant 0 : index
      %43 = vector.load %arg9[%c0_30, %c0_31] : memref<64x32xbf16, #tpu.memory_space<vmem>>, vector<64x32xbf16>
      %cst_32 = arith.constant dense<0.000000e+00> : vector<8x32xf32>
      %44 = tpu.matmul %42, %43, %cst_32 {dimension_numbers = #tpu.dot_dimension_numbers<[1], [0], [0], [1], [0, 0, 1, 1], [], []>} : vector<8x64xbf16>, vector<64x32xbf16>, vector<8x32xf32> -> vector<8x32xf32>
      %c0_33 = arith.constant 0 : index
      %c0_34 = arith.constant 0 : index
      %45 = vector.load %arg10[%c0_33, %c0_34] : memref<1x32xf32, #tpu.memory_space<vmem>>, vector<1x32xf32>
      %46 = vector.broadcast %45 : vector<1x32xf32> to vector<8x32xf32>
      %47 = arith.addf %44, %46 : vector<8x32xf32>
      %cst_35 = arith.constant 0.000000e+00 : f32
      %48 = vector.broadcast %cst_35 : f32 to vector<8x32xf32>
      %49 = arith.maximumf %47, %48 : vector<8x32xf32>
      %50 = arith.truncf %49 : vector<8x32xf32> to vector<8x32xbf16>
      %c0_36 = arith.constant 0 : index
      %c0_37 = arith.constant 0 : index
      %51 = vector.load %arg11[%c0_36, %c0_37] : memref<32x128xbf16, #tpu.memory_space<vmem>>, vector<32x128xbf16>
      %cst_38 = arith.constant dense<0.000000e+00> : vector<8x128xf32>
      %52 = tpu.matmul %50, %51, %cst_38 {dimension_numbers = #tpu.dot_dimension_numbers<[1], [0], [0], [1], [0, 0, 1, 1], [], []>} : vector<8x32xbf16>, vector<32x128xbf16>, vector<8x128xf32> -> vector<8x128xf32>
      %c0_39 = arith.constant 0 : index
      %c0_40 = arith.constant 0 : index
      %53 = vector.load %arg12[%c0_39, %c0_40] : memref<1x128xf32, #tpu.memory_space<vmem>>, vector<1x128xf32>
      %54 = vector.broadcast %53 : vector<1x128xf32> to vector<8x128xf32>
      %55 = arith.addf %52, %54 : vector<8x128xf32>
      %cst_41 = arith.constant 0.000000e+00 : f32
      %56 = vector.broadcast %cst_41 : f32 to vector<8x128xf32>
      %57 = arith.subf %56, %55 : vector<8x128xf32>
      %58 = math.exp %57 : vector<8x128xf32>
      %cst_42 = arith.constant 1.000000e+00 : f32
      %59 = vector.broadcast %cst_42 : f32 to vector<8x128xf32>
      %60 = arith.addf %59, %58 : vector<8x128xf32>
      %61 = tpu.reciprocal %60 : vector<8x128xf32> -> vector<8x128xf32>
      %cst_43 = arith.constant 0.000000e+00 : f32
      %cst_44 = arith.constant 1.000000e+00 : f32
      %62 = vector.broadcast %cst_43 : f32 to vector<8x128xf32>
      %63 = arith.maximumf %62, %61 : vector<8x128xf32>
      %64 = vector.broadcast %cst_44 : f32 to vector<8x128xf32>
      %65 = arith.minimumf %64, %63 : vector<8x128xf32>
      %c0_45 = arith.constant 0 : index
      %c0_46 = arith.constant 0 : index
      %66 = vector.load %arg17[%c0_45, %c0_46] : memref<8x128xf32, #tpu.memory_space<vmem>>, vector<8x128xf32>
      tpu.vector_store %arg17[%c0_45, %c0_46], %65 {strides = array<i32>} : memref<8x128xf32, #tpu.memory_space<vmem>>, vector<8x128xf32>,
      %c0_47 = arith.constant 0 : index
      %c0_48 = arith.constant 0 : index
      %67 = vector.load %arg13[%c0_47, %c0_48] : memref<512x512xbf16, #tpu.memory_space<vmem>>, vector<512x512xbf16>
      %cst_49 = arith.constant dense<0.000000e+00> : vector<8x512xf32>
      %68 = tpu.matmul %34, %67, %cst_49 {dimension_numbers = #tpu.dot_dimension_numbers<[1], [0], [0], [1], [0, 0, 1, 1], [], []>} : vector<8x512xbf16>, vector<512x512xbf16>, vector<8x512xf32> -> vector<8x512xf32>
      %c0_50 = arith.constant 0 : index
      %c0_51 = arith.constant 0 : index
      %69 = vector.load %arg14[%c0_50, %c0_51] : memref<1x512xf32, #tpu.memory_space<vmem>>, vector<1x512xf32>
      %70 = vector.broadcast %69 : vector<1x512xf32> to vector<8x512xf32>
      %71 = arith.addf %68, %70 : vector<8x512xf32>
      %cst_52 = arith.constant 0.000000e+00 : f32
      %72 = vector.broadcast %cst_52 : f32 to vector<8x512xf32>
      %73 = arith.maximumf %71, %72 : vector<8x512xf32>
      %74 = arith.truncf %73 : vector<8x512xf32> to vector<8x512xbf16>
      %c0_53 = arith.constant 0 : index
      %c0_54 = arith.constant 0 : index
      %75 = vector.load %arg15[%c0_53, %c0_54] : memref<512x128xbf16, #tpu.memory_space<vmem>>, vector<512x128xbf16>
      %cst_55 = arith.constant dense<0.000000e+00> : vector<8x128xf32>
      %76 = tpu.matmul %74, %75, %cst_55 {dimension_numbers = #tpu.dot_dimension_numbers<[1], [0], [0], [1], [0, 0, 1, 1], [], []>} : vector<8x512xbf16>, vector<512x128xbf16>, vector<8x128xf32> -> vector<8x128xf32>
      %c0_56 = arith.constant 0 : index
      %c0_57 = arith.constant 0 : index
      %77 = vector.load %arg16[%c0_56, %c0_57] : memref<1x128xf32, #tpu.memory_space<vmem>>, vector<1x128xf32>
      %78 = vector.broadcast %77 : vector<1x128xf32> to vector<8x128xf32>
      %79 = arith.addf %76, %78 : vector<8x128xf32>
      %c0_58 = arith.constant 0 : index
      %c0_59 = arith.constant 0 : index
      %80 = vector.load %arg18[%c0_58, %c0_59] : memref<8x128xf32, #tpu.memory_space<vmem>>, vector<8x128xf32>
      tpu.vector_store %arg18[%c0_58, %c0_59], %79 {strides = array<i32>} : memref<8x128xf32, #tpu.memory_space<vmem>>, vector<8x128xf32>,
    } else {
    }
    return
  }
  func.func @transform_0(%arg0: i32, %arg1: i32) -> (i32, i32, i32) {
    %c0_i32 = arith.constant 0 : i32
    %c0_i32_0 = arith.constant 0 : i32
    return %arg0, %arg1, %c0_i32 : i32, i32, i32
  }
  func.func @transform_1(%arg0: i32, %arg1: i32) -> (i32, i32) {
    %c0_i32 = arith.constant 0 : i32
    %c0_i32_0 = arith.constant 0 : i32
    %c0_i32_1 = arith.constant 0 : i32
    return %c0_i32, %c0_i32_0 : i32, i32
  }
  func.func @transform_2(%arg0: i32, %arg1: i32) -> (i32, i32) {
    %c0_i32 = arith.constant 0 : i32
    %c0_i32_0 = arith.constant 0 : i32
    %c0_i32_1 = arith.constant 0 : i32
    return %c0_i32, %c0_i32_0 : i32, i32
  }
  func.func @transform_3(%arg0: i32, %arg1: i32) -> (i32, i32) {
    %c0_i32 = arith.constant 0 : i32
    %c0_i32_0 = arith.constant 0 : i32
    %c0_i32_1 = arith.constant 0 : i32
    return %c0_i32, %c0_i32_0 : i32, i32
  }
  func.func @transform_4(%arg0: i32, %arg1: i32) -> (i32, i32) {
    %c0_i32 = arith.constant 0 : i32
    %c0_i32_0 = arith.constant 0 : i32
    %c0_i32_1 = arith.constant 0 : i32
    return %c0_i32, %c0_i32_0 : i32, i32
  }
  func.func @transform_5(%arg0: i32, %arg1: i32) -> (i32, i32) {
    %c0_i32 = arith.constant 0 : i32
    %c0_i32_0 = arith.constant 0 : i32
    %c0_i32_1 = arith.constant 0 : i32
    return %c0_i32, %c0_i32_0 : i32, i32
  }
  func.func @transform_6(%arg0: i32, %arg1: i32) -> (i32, i32) {
    %c0_i32 = arith.constant 0 : i32
    %c0_i32_0 = arith.constant 0 : i32
    %c0_i32_1 = arith.constant 0 : i32
    return %c0_i32, %c0_i32_0 : i32, i32
  }
  func.func @transform_7(%arg0: i32, %arg1: i32) -> (i32, i32) {
    %c0_i32 = arith.constant 0 : i32
    %c0_i32_0 = arith.constant 0 : i32
    %c0_i32_1 = arith.constant 0 : i32
    return %c0_i32, %c0_i32_0 : i32, i32
  }
  func.func @transform_8(%arg0: i32, %arg1: i32) -> (i32, i32) {
    %c0_i32 = arith.constant 0 : i32
    %c0_i32_0 = arith.constant 0 : i32
    %c0_i32_1 = arith.constant 0 : i32
    return %c0_i32, %c0_i32_0 : i32, i32
  }
  func.func @transform_9(%arg0: i32, %arg1: i32) -> (i32, i32) {
    %c0_i32 = arith.constant 0 : i32
    %c0_i32_0 = arith.constant 0 : i32
    %c0_i32_1 = arith.constant 0 : i32
    return %c0_i32, %c0_i32_0 : i32, i32
  }
  func.func @transform_10(%arg0: i32, %arg1: i32) -> (i32, i32) {
    %c0_i32 = arith.constant 0 : i32
    %c0_i32_0 = arith.constant 0 : i32
    %c0_i32_1 = arith.constant 0 : i32
    return %c0_i32, %c0_i32_0 : i32, i32
  }
  func.func @transform_11(%arg0: i32, %arg1: i32) -> (i32, i32) {
    %c0_i32 = arith.constant 0 : i32
    %c0_i32_0 = arith.constant 0 : i32
    %c0_i32_1 = arith.constant 0 : i32
    return %c0_i32, %c0_i32_0 : i32, i32
  }
  func.func @transform_12(%arg0: i32, %arg1: i32) -> (i32, i32) {
    %c0_i32 = arith.constant 0 : i32
    %c0_i32_0 = arith.constant 0 : i32
    %c0_i32_1 = arith.constant 0 : i32
    return %c0_i32, %c0_i32_0 : i32, i32
  }
  func.func @transform_13(%arg0: i32, %arg1: i32) -> (i32, i32) {
    %c0_i32 = arith.constant 0 : i32
    %c0_i32_0 = arith.constant 0 : i32
    %c0_i32_1 = arith.constant 0 : i32
    return %c0_i32, %c0_i32_0 : i32, i32
  }
  func.func @transform_14(%arg0: i32, %arg1: i32) -> (i32, i32) {
    %c0_i32 = arith.constant 0 : i32
    %c0_i32_0 = arith.constant 0 : i32
    %c0_i32_1 = arith.constant 0 : i32
    return %c0_i32, %c0_i32_0 : i32, i32
  }
  func.func @transform_15(%arg0: i32, %arg1: i32) -> (i32, i32) {
    %c0_i32 = arith.constant 0 : i32
    %c0_i32_0 = arith.constant 0 : i32
    return %arg0, %c0_i32 : i32, i32
  }
  func.func @transform_16(%arg0: i32, %arg1: i32) -> (i32, i32) {
    %c0_i32 = arith.constant 0 : i32
    %c0_i32_0 = arith.constant 0 : i32
    return %arg0, %c0_i32 : i32, i32
  }
}

</mosaic_0001>

<bundles_post_ra>
// kernel: object_detector_forward.1
= control target key start
LH: loop header
LB: loop body
LE: loop exit
PB: predicated region body
PF: predicated region fallthrough
CT: control target
= control target key end

     0   :  { %vm1345_vm0 = vcmask 1041408   ;;  %vm960_vm1 = vcmask 31744   ;;  %vm57_vm2 = vcmask 261120   ;;  %vm2816_vm3 = vcmask 1041409   ;;  %s8646_s1 = inlined_call_operand.vmem [shape: bf16[4,32], index: 1, kind: input, shape index: {}]   ;;  %s8647_s0 = inlined_call_operand.vmem [shape: bf16[8,256,4], index: 0, kind: input, shape index: {}]   ;;  %s8648_s2 = inlined_call_operand.vmem [shape: f32[1,32], index: 2, kind: input, shape index: {}]   ;;  %s8649_s3 = inlined_call_operand.vmem [shape: bf16[32,640], index: 3, kind: input, shape index: {}]   ;;  %s8650_s5 = inlined_call_operand.vmem [shape: bf16[128,64], index: 5, kind: input, shape index: {}]   ;;  %s8651_s11 = inlined_call_operand.vmem [shape: bf16[512,512], index: 11, kind: input, shape index: {}]   ;;  %s8652_s4 = inlined_call_operand.vmem [shape: f32[1,640], index: 4, kind: input, shape index: {}]   ;;  %s8653_s6 = inlined_call_operand.vmem [shape: f32[1,64], index: 6, kind: input, shape index: {}]   ;;  %s8654_s7 = inlined_call_operand.vmem [shape: bf16[64,32], index: 7, kind: input, shape index: {}]   ;;  %s8655_s8 = inlined_call_operand.vmem [shape: f32[1,32], index: 8, kind: input, shape index: {}]   ;;  %s8656_s9 = inlined_call_operand.vmem [shape: bf16[32,128], index: 9, kind: input, shape index: {}]   ;;  %s8657_s10 = inlined_call_operand.vmem [shape: f32[1,128], index: 10, kind: input, shape index: {}]   ;;  %s8658_s12 = inlined_call_operand.vmem [shape: f32[1,512], index: 12, kind: input, shape index: {}]   ;;  %s8659_s13 = inlined_call_operand.vmem [shape: bf16[512,128], index: 13, kind: input, shape index: {}]   ;;  %s8660_s14 = inlined_call_operand.vmem [shape: f32[1,128], index: 14, kind: input, shape index: {}]   ;;  %s8661_s15 = inlined_call_operand.vmem [shape: f32[8,128], index: 15, kind: output, shape index: {0}]   ;;  %s8662_s16 = inlined_call_operand.vmem [shape: f32[8,128], index: 16, kind: output, shape index: {1}]  }
   0x1   :  { %8664 = sst [smem:[#allocation23_spill]] %s8646_s1  ;;  %v5886_v2 = vld [vmem:[%s8647_s0] sm:$0xff]  ;;  %v5931_v3 = vld [vmem:[%s8647_s0 + $0x168] sm:$0xff]  ;;  %v5932_v6 = vld [vmem:[%s8647_s0 + $0x170] sm:$0xff]  ;;  %vm2818_vm4 = vcmask 1042434   ;;  %vm2820_vm5 = vcmask 1043459  }
   0x2   :  { %s8665_s23 = sld [smem:[#allocation23_spill]]  ;;  %v5959_v4 = vld [vmem:[%s8647_s0 + $0x248] sm:$0xff]  ;;  %v5960_v7 = vld [vmem:[%s8647_s0 + $0x250] sm:$0xff]  ;;  %v5933_v10 = vld [vmem:[%s8647_s0 + $0x178] sm:$0xff]  ;;  %vm2822_vm6 = vcmask 1044484   ;;  %vm2824_vm7 = vcmask 1045509  }
   0x3   :  { %v5887_v5 = vld [vmem:[%s8647_s0 + $0x8] sm:$0xff]  ;;  %v5984_v8 = vld [vmem:[%s8647_s0 + $0x310] sm:$0xff]  ;;  %v5961_v11 = vld [vmem:[%s8647_s0 + $0x258] sm:$0xff]  ;;  %vm2826_vm8 = vcmask 1046534   ;;  %vm2828_vm9 = vcmask 1047559   ;;  %vm3112_vm10 = vcmask 523264  }
   0x4   :  { %v5888_v9 = vld [vmem:[%s8647_s0 + $0x10] sm:$0xff]  ;;  %v5985_v12 = vld [vmem:[%s8647_s0 + $0x318] sm:$0xff]  ;;  %v5934_v14 = vld [vmem:[%s8647_s0 + $0x180] sm:$0xff] }
   0x5   :  { %v5889_v13 = vld [vmem:[%s8647_s0 + $0x18] sm:$0xff]  ;;  %v5962_v15 = vld [vmem:[%s8647_s0 + $0x260] sm:$0xff]  ;;  %v5935_v18 = vld [vmem:[%s8647_s0 + $0x188] sm:$0xff] }
   0x6   :  { %v5986_v16 = vld [vmem:[%s8647_s0 + $0x320] sm:$0xff]  ;;  %v5963_v19 = vld [vmem:[%s8647_s0 + $0x268] sm:$0xff]  ;;  %v5936_v22 = vld [vmem:[%s8647_s0 + $0x190] sm:$0xff] }
   0x7   :  { %v5890_v17 = vld [vmem:[%s8647_s0 + $0x20] sm:$0xff]  ;;  %v5987_v20 = vld [vmem:[%s8647_s0 + $0x328] sm:$0xff]  ;;  %v5964_v23 = vld [vmem:[%s8647_s0 + $0x270] sm:$0xff] }
   0x8   :  { %v315_v0 = vld [vmem:[%s8665_s23] sm:$0x3]  ;;  %v5891_v21 = vld [vmem:[%s8647_s0 + $0x28] sm:$0xff]  ;;  %v5988_v24 = vld [vmem:[%s8647_s0 + $0x330] sm:$0xff] }
   0x9   :  { %v1347_v1 = vsel %vm1345_vm0, %v315_v0, 0  ;;  %v5892_v25 = vld [vmem:[%s8647_s0 + $0x30] sm:$0xff]  ;;  %v5937_v26 = vld [vmem:[%s8647_s0 + $0x198] sm:$0xff]  ;;  %v5938_v30 = vld [vmem:[%s8647_s0 + $0x1a0] sm:$0xff] }
   0xa   :  { %1356 = vmatpush.bf16.msra.mxu0 %v1347_v1  ;;  %6198 = vmatpush.bf16.msra.mxu1 %v1347_v1  ;;  %v5965_v27 = vld [vmem:[%s8647_s0 + $0x278] sm:$0xff]  ;;  %v5966_v31 = vld [vmem:[%s8647_s0 + $0x280] sm:$0xff]  ;;  %v5939_v34 = vld [vmem:[%s8647_s0 + $0x1a8] sm:$0xff] }
   0xb   :  { %6199 = vmatpush.bf16.msra.mxu2 %v1347_v1  ;;  %6200 = vmatpush.bf16.msra.mxu3 %v1347_v1  ;;  %v5989_v28 = vld [vmem:[%s8647_s0 + $0x338] sm:$0xff]  ;;  %v5990_v32 = vld [vmem:[%s8647_s0 + $0x340] sm:$0xff]  ;;  %v5967_v37 = vld [vmem:[%s8647_s0 + $0x288] sm:$0xff] }
   0xc   :  { %v5893_v29 = vld [vmem:[%s8647_s0 + $0x38] sm:$0xff]  ;;  %v5894_v33 = vld [vmem:[%s8647_s0 + $0x40] sm:$0xff]  ;;  %v5991_v46 = vld [vmem:[%s8647_s0 + $0x348] sm:$0xff] }
   0xd   :  { %5015 = vmatmul.msk.bf16.vlgmr.msra.gmra.mxu0 %vm960_vm1, %v5886_v2  ;;  %5060 = vmatmul.msk.bf16.vlgmr.msra.gmra.mxu1 %vm960_vm1, %v5931_v3  ;;  %v6440_v38 = vld [vmem:[%s8648_s2] ss:$0 sm:$0xff]  ;;  %v5895_v51 = vld [vmem:[%s8647_s0 + $0x48] sm:$0xff]  ;;  %v5940_v52 = vld [vmem:[%s8647_s0 + $0x1b0] sm:$0xff] }
   0xe   :  { %5088 = vmatmul.msk.bf16.vlgmr.msra.gmra.mxu2 %vm960_vm1, %v5959_v4  ;;  %5113 = vmatmul.msk.bf16.vlgmr.msra.gmra.mxu3 %vm960_vm1, %v5984_v8  ;;  %v5968_v55 = vld [vmem:[%s8647_s0 + $0x290] sm:$0xff] }
   0xf   :  { %v5992_v1 = vld [vmem:[%s8647_s0 + $0x350] sm:$0xff] }
  0x1d   :  { %5016 = vmatmul.msk.bf16.gmra.mxu0 %vm960_vm1, %v5887_v5  ;;  %5061 = vmatmul.msk.bf16.gmra.mxu1 %vm960_vm1, %v5932_v6  ;;  %v5896_v5 = vld [vmem:[%s8647_s0 + $0x50] sm:$0xff]  ;;  %v5941_v6 = vld [vmem:[%s8647_s0 + $0x1b8] sm:$0xff] }
  0x1e   :  { %5089 = vmatmul.msk.bf16.gmra.mxu2 %vm960_vm1, %v5960_v7  ;;  %5114 = vmatmul.msk.bf16.gmra.mxu3 %vm960_vm1, %v5985_v12 }
  0x2d   :  { %5017 = vmatmul.msk.bf16.gmra.mxu0 %vm960_vm1, %v5888_v9  ;;  %5062 = vmatmul.msk.bf16.gmra.mxu1 %vm960_vm1, %v5933_v10  ;;  %v5969_v9 = vld [vmem:[%s8647_s0 + $0x298] sm:$0xff] }
  0x2e   :  { %5090 = vmatmul.msk.bf16.gmra.mxu2 %vm960_vm1, %v5961_v11  ;;  %5115 = vmatmul.msk.bf16.gmra.mxu3 %vm960_vm1, %v5986_v16 }
  0x3d   :  { %5018 = vmatmul.msk.bf16.gmra.mxu0 %vm960_vm1, %v5889_v13  ;;  %5063 = vmatmul.msk.bf16.gmra.mxu1 %vm960_vm1, %v5934_v14 }
  0x3e   :  { %5091 = vmatmul.msk.bf16.gmra.mxu2 %vm960_vm1, %v5962_v15  ;;  %5116 = vmatmul.msk.bf16.gmra.mxu3 %vm960_vm1, %v5987_v20 }
  0x4d   :  { %5019 = vmatmul.msk.bf16.gmra.mxu0 %vm960_vm1, %v5890_v17  ;;  %5064 = vmatmul.msk.bf16.gmra.mxu1 %vm960_vm1, %v5935_v18 }
  0x4e   :  { %5092 = vmatmul.msk.bf16.gmra.mxu2 %vm960_vm1, %v5963_v19  ;;  %5117 = vmatmul.msk.bf16.gmra.mxu3 %vm960_vm1, %v5988_v24 }
  0x5d   :  { %5020 = vmatmul.msk.bf16.gmra.mxu0 %vm960_vm1, %v5891_v21  ;;  %5065 = vmatmul.msk.bf16.gmra.mxu1 %vm960_vm1, %v5936_v22  ;;  %v5993_v21 = vld [vmem:[%s8647_s0 + $0x358] sm:$0xff] }
  0x5e   :  { %5093 = vmatmul.msk.bf16.gmra.mxu2 %vm960_vm1, %v5964_v23  ;;  %5118 = vmatmul.msk.bf16.gmra.mxu3 %vm960_vm1, %v5989_v28 }
  0x6d   :  { %5021 = vmatmul.msk.bf16.gmra.mxu0 %vm960_vm1, %v5892_v25  ;;  %5066 = vmatmul.msk.bf16.gmra.mxu1 %vm960_vm1, %v5937_v26  ;;  %v5897_v25 = vld [vmem:[%s8647_s0 + $0x58] sm:$0xff]  ;;  %v5942_v26 = vld [vmem:[%s8647_s0 + $0x1c0] sm:$0xff] }
  0x6e   :  { %5094 = vmatmul.msk.bf16.gmra.mxu2 %vm960_vm1, %v5965_v27  ;;  %5119 = vmatmul.msk.bf16.gmra.mxu3 %vm960_vm1, %v5990_v32 }
  0x7d   :  { %5022 = vmatmul.msk.bf16.gmra.mxu0 %vm960_vm1, %v5893_v29  ;;  %5067 = vmatmul.msk.bf16.gmra.mxu1 %vm960_vm1, %v5938_v30  ;;  %v5970_v29 = vld [vmem:[%s8647_s0 + $0x2a0] sm:$0xff] }
  0x7e   :  { %5095 = vmatmul.msk.bf16.gmra.mxu2 %vm960_vm1, %v5966_v31  ;;  %5120 = vmatmul.msk.bf16.gmra.mxu3 %vm960_vm1, %v5991_v46 }
  0x8a   :  { %v1358_v35 = vpop.f32.mrf.mxu0  ;;  %v6432_v36 = vpop.f32.mrf.mxu1 }
  0x8b   :  { %8666 = vst [vmem:[#allocation3_spill] sm:$0xff] %v6432_v36  ;;  %v1359_v39 = vadd.f32 %v6440_v38, %v1358_v35 }
  0x8d   :  { %5023 = vmatmul.msk.bf16.gmra.mxu0 %vm960_vm1, %v5894_v33  ;;  %5068 = vmatmul.msk.bf16.gmra.mxu1 %vm960_vm1, %v5939_v34  ;;  %v1998_v43 = vmax.f32 %v1359_v39, 0.0 }
  0x8e   :  { %5096 = vmatmul.msk.bf16.gmra.mxu2 %vm960_vm1, %v5967_v37  ;;  %5121 = vmatmul.msk.bf16.gmra.mxu3 %vm960_vm1, %v5992_v1 }
  0x8f   :  { %v2256_v47 = vsel %vm57_vm2, %v1998_v43, 0.0 }
  0x91   :  { %v6446_v40 = vpop.f32.mrf.mxu2  ;;  %v6499_v11 = vpop.f32.mrf.mxu3 }
  0x92   :  { %v1360_v41 = vpop.f32.mrf.mxu0  ;;  %v6448_v42 = vpop.f32.mrf.mxu1 }
  0x93   :  { %8667 = vst [vmem:[#allocation4_spill] sm:$0xff] %v6448_v42  ;;  %v1361_v44 = vadd.f32 %v6440_v38, %v1360_v41 }
  0x95   :  { %v1999_v45 = vmax.f32 %v1361_v44, 0.0 }
  0x97   :  { %v2257_v48 = vsel %vm57_vm2, %v1999_v45, 0.0 }
  0x98   :  { %v2258_v49 = vadd.f32 %v2257_v48, %v2256_v47 }
  0x99   :  { %v6457_v50 = vpop.f32.mrf.mxu2  ;;  %v6510_v19 = vpop.f32.mrf.mxu3 }
  0x9a   :  { %v1363_v53 = vpop.f32.mrf.mxu0  ;;  %v6465_v54 = vpop.f32.mrf.mxu1 }
  0x9b   :  { %8668 = vst [vmem:[#allocation5_spill] sm:$0xff] %v6465_v54  ;;  %v1364_v56 = vadd.f32 %v6440_v38, %v1363_v53 }
  0x9d   :  { %v2000_v57 = vmax.f32 %v1364_v56, 0.0  ;;  %5024 = vmatmul.msk.bf16.gmra.mxu0 %vm960_vm1, %v5895_v51  ;;  %5069 = vmatmul.msk.bf16.gmra.mxu1 %vm960_vm1, %v5940_v52  ;;  %v5994_v51 = vld [vmem:[%s8647_s0 + $0x360] sm:$0xff] }
  0x9e   :  { %5097 = vmatmul.msk.bf16.gmra.mxu2 %vm960_vm1, %v5968_v55  ;;  %5122 = vmatmul.msk.bf16.gmra.mxu3 %vm960_vm1, %v5993_v21 }
  0x9f   :  { %v2259_v58 = vsel %vm57_vm2, %v2000_v57, 0.0 }
  0xa0   :  { %v2260_v59 = vadd.f32 %v2259_v58, %v2258_v49  ;;  %v5898_v58 = vld [vmem:[%s8647_s0 + $0x60] sm:$0xff] }
  0xa1   :  { %v6475_v60 = vpop.f32.mrf.mxu2  ;;  %v6529_v31 = vpop.f32.mrf.mxu3 }
  0xa2   :  { %v1365_v61 = vpop.f32.mrf.mxu0  ;;  %v6477_v62 = vpop.f32.mrf.mxu1 }
  0xa3   :  { %8669 = vst [vmem:[#allocation6_spill] sm:$0xff] %v6477_v62  ;;  %v1366_v63 = vadd.f32 %v6440_v38, %v1365_v61 }
  0xa5   :  { %v2001_v0 = vmax.f32 %v1366_v63, 0.0 }
  0xa7   :  { %v2261_v2 = vsel %vm57_vm2, %v2001_v0, 0.0  ;;  %v5971_v0 = vld [vmem:[%s8647_s0 + $0x2a8] sm:$0xff] }
  0xa8   :  { %v2262_v3 = vadd.f32 %v2261_v2, %v2260_v59  ;;  %v5943_v59 = vld [vmem:[%s8647_s0 + $0x1c8] sm:$0xff] }
  0xa9   :  { %v6485_v4 = vpop.f32.mrf.mxu2  ;;  %v6540_v46 = vpop.f32.mrf.mxu3 }
  0xaa   :  { %v1368_v7 = vpop.f32.mrf.mxu0  ;;  %v6493_v8 = vpop.f32.mrf.mxu1 }
  0xab   :  { %8670 = vst [vmem:[#allocation7_spill] sm:$0xff] %v6493_v8  ;;  %v1369_v10 = vadd.f32 %v6440_v38, %v1368_v7 }
  0xad   :  { %v2002_v12 = vmax.f32 %v1369_v10, 0.0  ;;  %5025 = vmatmul.msk.bf16.gmra.mxu0 %vm960_vm1, %v5896_v5  ;;  %5070 = vmatmul.msk.bf16.gmra.mxu1 %vm960_vm1, %v5941_v6 }
  0xae   :  { %5098 = vmatmul.msk.bf16.gmra.mxu2 %vm960_vm1, %v5969_v9  ;;  %5123 = vmatmul.msk.bf16.gmra.mxu3 %vm960_vm1, %v5994_v51 }
  0xaf   :  { %v2263_v13 = vsel %vm57_vm2, %v2002_v12, 0.0 }
  0xb0   :  { %v2264_v14 = vadd.f32 %v2263_v13, %v2262_v3 }
  0xb1   :  { %v6505_v15 = vpop.f32.mrf.mxu2  ;;  %v6562_v3 = vpop.f32.mrf.mxu3 }
  0xb2   :  { %v1370_v16 = vpop.f32.mrf.mxu0  ;;  %v6507_v17 = vpop.f32.mrf.mxu1 }
  0xb3   :  { %8671 = vst [vmem:[#allocation8_spill] sm:$0xff] %v6507_v17  ;;  %v1371_v18 = vadd.f32 %v6440_v38, %v1370_v16 }
  0xb5   :  { %v2003_v20 = vmax.f32 %v1371_v18, 0.0 }
  0xb7   :  { %v2265_v22 = vsel %vm57_vm2, %v2003_v20, 0.0 }
  0xb8   :  { %v2266_v23 = vadd.f32 %v2265_v22, %v2264_v14 }
  0xb9   :  { %v6517_v24 = vpop.f32.mrf.mxu2  ;;  %v6573_v21 = vpop.f32.mrf.mxu3 }
  0xba   :  { %v1373_v27 = vpop.f32.mrf.mxu0  ;;  %v1598_v28 = vpop.f32.mrf.mxu1 }
  0xbb   :  { %v1374_v30 = vadd.f32 %v6440_v38, %v1373_v27  ;;  %v1599_v33 = vadd.f32 %v6440_v38, %v1598_v28 }
  0xbd   :  { %v2004_v32 = vmax.f32 %v1374_v30, 0.0  ;;  %5026 = vmatmul.msk.bf16.gmra.mxu0 %vm960_vm1, %v5897_v25  ;;  %5071 = vmatmul.msk.bf16.gmra.mxu1 %vm960_vm1, %v5942_v26  ;;  %v2094_v37 = vmax.f32 %v1599_v33, 0.0  ;;  %v5995_v25 = vld [vmem:[%s8647_s0 + $0x368] sm:$0xff]  ;;  %v5944_v33 = vld [vmem:[%s8647_s0 + $0x1d0] sm:$0xff] }
  0xbe   :  { %5099 = vmatmul.msk.bf16.gmra.mxu2 %vm960_vm1, %v5970_v29  ;;  %5124 = vmatmul.msk.bf16.gmra.mxu3 %vm960_vm1, %v5995_v25 }
  0xbf   :  { %v2267_v34 = vsel %vm57_vm2, %v2004_v32, 0.0  ;;  %v2463_v47 = vsel %vm57_vm2, %v2094_v37, 0.0  ;;  %v5899_v32 = vld [vmem:[%s8647_s0 + $0x68] sm:$0xff]  ;;  %v5972_v37 = vld [vmem:[%s8647_s0 + $0x2b0] sm:$0xff] }
  0xc0   :  { %v2268_v35 = vadd.f32 %v2267_v34, %v2266_v23 }
  0xc1   :  { %v6536_v39 = vpop.f32.mrf.mxu2 }
  0xc2   :  { %v1375_v41 = vpop.f32.mrf.mxu0  ;;  %v1600_v43 = vpop.f32.mrf.mxu1 }
  0xc3   :  { %v1376_v44 = vadd.f32 %v6440_v38, %v1375_v41  ;;  %v1601_v45 = vadd.f32 %v6440_v38, %v1600_v43 }
  0xc5   :  { %v2005_v48 = vmax.f32 %v1376_v44, 0.0  ;;  %v2095_v49 = vmax.f32 %v1601_v45, 0.0  ;;  %v6594_v44 = vpop.f32.mrf.mxu3 }
  0xc7   :  { %v2269_v52 = vsel %vm57_vm2, %v2005_v48, 0.0  ;;  %v2464_v53 = vsel %vm57_vm2, %v2095_v49, 0.0 }
  0xc8   :  { %v2270_v55 = vadd.f32 %v2269_v52, %v2268_v35  ;;  %v2465_v56 = vadd.f32 %v2464_v53, %v2463_v47 }
  0xc9   :  { %v6549_v57 = vpop.f32.mrf.mxu2 }
  0xca   :  { %8672 = vst [vmem:[#allocation9_spill] sm:$0xff] %v6549_v57  ;;  %v1378_v61 = vpop.f32.mrf.mxu0  ;;  %v1603_v63 = vpop.f32.mrf.mxu1 }
  0xcb   :  { %v1379_v1 = vadd.f32 %v6440_v38, %v1378_v61  ;;  %v1604_v2 = vadd.f32 %v6440_v38, %v1603_v63 }
  0xcd   :  { %v2006_v5 = vmax.f32 %v1379_v1, 0.0  ;;  %v2096_v6 = vmax.f32 %v1604_v2, 0.0  ;;  %5027 = vmatmul.msk.bf16.gmra.mxu0 %vm960_vm1, %v5898_v58  ;;  %5072 = vmatmul.msk.bf16.gmra.mxu1 %vm960_vm1, %v5943_v59  ;;  %v6605_v61 = vpop.f32.mrf.mxu3  ;;  %v5996_v1 = vld [vmem:[%s8647_s0 + $0x370] sm:$0xff] }
  0xce   :  { %5100 = vmatmul.msk.bf16.gmra.mxu2 %vm960_vm1, %v5971_v0  ;;  %5125 = vmatmul.msk.bf16.gmra.mxu3 %vm960_vm1, %v5996_v1  ;;  %v5974_v1 = vld [vmem:[%s8647_s0 + $0x2c0] sm:$0xff] }
  0xcf   :  { %v2271_v7 = vsel %vm57_vm2, %v2006_v5, 0.0  ;;  %v2466_v9 = vsel %vm57_vm2, %v2096_v6, 0.0 }
  0xd0   :  { %v2272_v10 = vadd.f32 %v2271_v7, %v2270_v55  ;;  %v2467_v12 = vadd.f32 %v2466_v9, %v2465_v56 }
  0xd1   :  { %v6569_v13 = vpop.f32.mrf.mxu2 }
  0xd2   :  { %8673 = vst [vmem:[#allocation10_spill] sm:$0xff] %v6569_v13  ;;  %v1380_v14 = vpop.f32.mrf.mxu0  ;;  %v1605_v16 = vpop.f32.mrf.mxu1 }
  0xd3   :  { %v1381_v18 = vadd.f32 %v6440_v38, %v1380_v14  ;;  %v1606_v20 = vadd.f32 %v6440_v38, %v1605_v16 }
  0xd5   :  { %v2007_v22 = vmax.f32 %v1381_v18, 0.0  ;;  %v2097_v23 = vmax.f32 %v1606_v20, 0.0  ;;  %v5973_v18 = vld [vmem:[%s8647_s0 + $0x2b8] sm:$0xff] }
  0xd7   :  { %v2273_v26 = vsel %vm57_vm2, %v2007_v22, 0.0  ;;  %v2468_v27 = vsel %vm57_vm2, %v2097_v23, 0.0  ;;  %v6626_v23 = vpop.f32.mrf.mxu3 }
  0xd8   :  { %v2274_v28 = vadd.f32 %v2273_v26, %v2272_v10  ;;  %v2469_v29 = vadd.f32 %v2468_v27, %v2467_v12  ;;  %v5900_v10 = vld [vmem:[%s8647_s0 + $0x70] sm:$0xff]  ;;  %v5945_v12 = vld [vmem:[%s8647_s0 + $0x1d8] sm:$0xff] }
  0xd9   :  { %v6581_v30 = vpop.f32.mrf.mxu2 }
  0xda   :  { %8674 = vst [vmem:[#allocation11_spill] sm:$0xff] %v6581_v30  ;;  %v1383_v34 = vpop.f32.mrf.mxu0  ;;  %v1608_v35 = vpop.f32.mrf.mxu1 }
  0xdb   :  { %v1384_v41 = vadd.f32 %v6440_v38, %v1383_v34  ;;  %v1609_v43 = vadd.f32 %v6440_v38, %v1608_v35 }
  0xdd   :  { %v2008_v45 = vmax.f32 %v1384_v41, 0.0  ;;  %v2098_v47 = vmax.f32 %v1609_v43, 0.0  ;;  %5028 = vmatmul.msk.bf16.gmra.mxu0 %vm960_vm1, %v5899_v32  ;;  %5073 = vmatmul.msk.bf16.gmra.mxu1 %vm960_vm1, %v5944_v33 }
  0xde   :  { %5101 = vmatmul.msk.bf16.gmra.mxu2 %vm960_vm1, %v5972_v37 }
  0xdf   :  { %v2275_v48 = vsel %vm57_vm2, %v2008_v45, 0.0  ;;  %v2470_v49 = vsel %vm57_vm2, %v2098_v47, 0.0  ;;  %v6637_v43 = vpop.f32.mrf.mxu3 }
  0xe0   :  { %v2276_v51 = vadd.f32 %v2275_v48, %v2274_v28  ;;  %v2471_v52 = vadd.f32 %v2470_v49, %v2469_v29  ;;  %v5997_v48 = vld [vmem:[%s8647_s0 + $0x378] sm:$0xff] }
  0xe1   :  { %v6601_v53 = vpop.f32.mrf.mxu2  ;;  %5126 = vmatmul.msk.bf16.gmra.mxu3 %vm960_vm1, %v5997_v48 }
  0xe2   :  { %8675 = vst [vmem:[#allocation12_spill] sm:$0xff] %v6601_v53  ;;  %v1385_v55 = vpop.f32.mrf.mxu0  ;;  %v1610_v56 = vpop.f32.mrf.mxu1 }
  0xe3   :  { %v1386_v58 = vadd.f32 %v6440_v38, %v1385_v55  ;;  %v1611_v59 = vadd.f32 %v6440_v38, %v1610_v56 }
  0xe5   :  { %v2009_v63 = vmax.f32 %v1386_v58, 0.0  ;;  %v2099_v0 = vmax.f32 %v1611_v59, 0.0  ;;  %v5901_v58 = vld [vmem:[%s8647_s0 + $0x78] sm:$0xff]  ;;  %v5946_v59 = vld [vmem:[%s8647_s0 + $0x1e0] sm:$0xff] }
  0xe7   :  { %v2277_v2 = vsel %vm57_vm2, %v2009_v63, 0.0  ;;  %v2472_v5 = vsel %vm57_vm2, %v2099_v0, 0.0 }
  0xe8   :  { %v2278_v6 = vadd.f32 %v2277_v2, %v2276_v51  ;;  %v2473_v7 = vadd.f32 %v2472_v5, %v2471_v52 }
  0xe9   :  { %v6613_v9 = vpop.f32.mrf.mxu2 }
  0xea   :  { %8676 = vst [vmem:[#allocation13_spill] sm:$0xff] %v6613_v9  ;;  %v1388_v14 = vpop.f32.mrf.mxu0  ;;  %v1613_v16 = vpop.f32.mrf.mxu1 }
  0xeb   :  { %v1389_v20 = vadd.f32 %v6440_v38, %v1388_v14  ;;  %v1614_v22 = vadd.f32 %v6440_v38, %v1613_v16 }
  0xed   :  { %v2010_v25 = vmax.f32 %v1389_v20, 0.0  ;;  %v2100_v26 = vmax.f32 %v1614_v22, 0.0  ;;  %5029 = vmatmul.msk.bf16.gmra.mxu0 %vm960_vm1, %v5900_v10  ;;  %5074 = vmatmul.msk.bf16.gmra.mxu1 %vm960_vm1, %v5945_v12 }
  0xee   :  { %5102 = vmatmul.msk.bf16.gmra.mxu2 %vm960_vm1, %v5973_v18 }
  0xef   :  { %v2279_v27 = vsel %vm57_vm2, %v2010_v25, 0.0  ;;  %v2474_v28 = vsel %vm57_vm2, %v2100_v26, 0.0 }
  0xf0   :  { %v2280_v29 = vadd.f32 %v2279_v27, %v2278_v6  ;;  %v2475_v32 = vadd.f32 %v2474_v28, %v2473_v7  ;;  %v6658_v6 = vpop.f32.mrf.mxu3 }
  0xf1   :  { %v6633_v33 = vpop.f32.mrf.mxu2 }
  0xf2   :  { %8677 = vst [vmem:[#allocation14_spill] sm:$0xff] %v6633_v33  ;;  %v1390_v34 = vpop.f32.mrf.mxu0  ;;  %v1615_v35 = vpop.f32.mrf.mxu1 }
  0xf3   :  { %v1391_v37 = vadd.f32 %v6440_v38, %v1390_v34  ;;  %v1616_v41 = vadd.f32 %v6440_v38, %v1615_v35  ;;  %v5998_v35 = vld [vmem:[%s8647_s0 + $0x380] sm:$0xff] }
  0xf4   :  { %5127 = vmatmul.msk.bf16.gmra.mxu3 %vm960_vm1, %v5998_v35 }
  0xf5   :  { %v2011_v45 = vmax.f32 %v1391_v37, 0.0  ;;  %v2101_v47 = vmax.f32 %v1616_v41, 0.0 }
  0xf7   :  { %v2281_v49 = vsel %vm57_vm2, %v2011_v45, 0.0  ;;  %v2476_v51 = vsel %vm57_vm2, %v2101_v47, 0.0 }
  0xf8   :  { %v2282_v52 = vadd.f32 %v2281_v49, %v2280_v29  ;;  %v2477_v55 = vadd.f32 %v2476_v51, %v2475_v32  ;;  %v6667_v28 = vpop.f32.mrf.mxu3  ;;  %v5902_v51 = vld [vmem:[%s8647_s0 + $0x80] sm:$0xff] }
  0xf9   :  { %v6645_v56 = vpop.f32.mrf.mxu2 }
  0xfa   :  { %8678 = vst [vmem:[#allocation15_spill] sm:$0xff] %v6645_v56  ;;  %v1393_v63 = vpop.f32.mrf.mxu0  ;;  %v1618_v0 = vpop.f32.mrf.mxu1 }
  0xfb   :  { %v1394_v2 = vadd.f32 %v6440_v38, %v1393_v63  ;;  %v1619_v5 = vadd.f32 %v6440_v38, %v1618_v0  ;;  %v5975_v63 = vld [vmem:[%s8647_s0 + $0x2c8] sm:$0xff] }
  0xfd   :  { %v2012_v7 = vmax.f32 %v1394_v2, 0.0  ;;  %v2102_v10 = vmax.f32 %v1619_v5, 0.0  ;;  %5030 = vmatmul.msk.bf16.gmra.mxu0 %vm960_vm1, %v5901_v58  ;;  %5075 = vmatmul.msk.bf16.gmra.mxu1 %vm960_vm1, %v5946_v59 }
  0xfe   :  { %5103 = vmatmul.msk.bf16.gmra.mxu2 %vm960_vm1, %v5974_v1 }
  0xff   :  { %v2283_v12 = vsel %vm57_vm2, %v2012_v7, 0.0  ;;  %v2478_v14 = vsel %vm57_vm2, %v2102_v10, 0.0 }
 0x100   :  { %v2284_v16 = vadd.f32 %v2283_v12, %v2282_v52  ;;  %v2479_v18 = vadd.f32 %v2478_v14, %v2477_v55  ;;  %v5947_v52 = vld [vmem:[%s8647_s0 + $0x1e8] sm:$0xff]  ;;  %v6688_v2 = vpop.f32.mrf.mxu3 }
 0x101   :  { %v1758_v20 = vpop.f32.mrf.mxu2 }
 0x102   :  { %v1395_v22 = vpop.f32.mrf.mxu0  ;;  %v1620_v25 = vpop.f32.mrf.mxu1  ;;  %v1759_v29 = vadd.f32 %v6440_v38, %v1758_v20 }
 0x103   :  { %v1396_v26 = vadd.f32 %v6440_v38, %v1395_v22  ;;  %v1621_v27 = vadd.f32 %v6440_v38, %v1620_v25 }
 0x104   :  { %v2158_v45 = vmax.f32 %v1759_v29, 0.0 }
 0x105   :  { %v2013_v32 = vmax.f32 %v1396_v26, 0.0  ;;  %v2103_v34 = vmax.f32 %v1621_v27, 0.0 }
 0x106   :  { %v2601_v5 = vsel %vm57_vm2, %v2158_v45, 0.0 }
 0x107   :  { %v2285_v37 = vsel %vm57_vm2, %v2013_v32, 0.0  ;;  %v2480_v41 = vsel %vm57_vm2, %v2103_v34, 0.0 }
 0x108   :  { %v2286_v47 = vadd.f32 %v2285_v37, %v2284_v16  ;;  %v2481_v48 = vadd.f32 %v2480_v41, %v2479_v18  ;;  %v6700_v37 = vpop.f32.mrf.mxu3 }
 0x109   :  { %v1760_v49 = vpop.f32.mrf.mxu2 }
 0x10a   :  { %v1761_v55 = vadd.f32 %v6440_v38, %v1760_v49  ;;  %v1398_v58 = vpop.f32.mrf.mxu0  ;;  %v1623_v59 = vpop.f32.mrf.mxu1 }
 0x10b   :  { %v1399_v0 = vadd.f32 %v6440_v38, %v1398_v58  ;;  %v1624_v1 = vadd.f32 %v6440_v38, %v1623_v59 }
 0x10c   :  { %v2159_v7 = vmax.f32 %v1761_v55, 0.0 }
 0x10d   :  { %v2014_v10 = vmax.f32 %v1399_v0, 0.0  ;;  %v2104_v12 = vmax.f32 %v1624_v1, 0.0  ;;  %5031 = vmatmul.msk.bf16.gmra.mxu0 %vm960_vm1, %v5902_v51  ;;  %5076 = vmatmul.msk.bf16.gmra.mxu1 %vm960_vm1, %v5947_v52  ;;  %v5999_v51 = vld [vmem:[%s8647_s0 + $0x388] sm:$0xff]  ;;  %v5948_v1 = vld [vmem:[%s8647_s0 + $0x1f0] sm:$0xff] }
 0x10e   :  { %v2602_v14 = vsel %vm57_vm2, %v2159_v7, 0.0  ;;  %5104 = vmatmul.msk.bf16.gmra.mxu2 %vm960_vm1, %v5975_v63  ;;  %5128 = vmatmul.msk.bf16.gmra.mxu3 %vm960_vm1, %v5999_v51  ;;  %v5903_v0 = vld [vmem:[%s8647_s0 + $0x88] sm:$0xff] }
 0x10f   :  { %v2603_v16 = vadd.f32 %v2602_v14, %v2601_v5  ;;  %v2287_v18 = vsel %vm57_vm2, %v2014_v10, 0.0  ;;  %v2482_v20 = vsel %vm57_vm2, %v2104_v12, 0.0  ;;  %v5976_v12 = vld [vmem:[%s8647_s0 + $0x2d0] sm:$0xff] }
 0x110   :  { %v2288_v22 = vadd.f32 %v2287_v18, %v2286_v47  ;;  %v2483_v25 = vadd.f32 %v2482_v20, %v2481_v48  ;;  %v6721_v18 = vpop.f32.mrf.mxu3 }
 0x111   :  { %v1763_v26 = vpop.f32.mrf.mxu2 }
 0x112   :  { %v1764_v27 = vadd.f32 %v6440_v38, %v1763_v26  ;;  %v1400_v29 = vpop.f32.mrf.mxu0  ;;  %v1625_v32 = vpop.f32.mrf.mxu1 }
 0x113   :  { %v1401_v34 = vadd.f32 %v6440_v38, %v1400_v29  ;;  %v1626_v35 = vadd.f32 %v6440_v38, %v1625_v32 }
 0x114   :  { %v2160_v41 = vmax.f32 %v1764_v27, 0.0 }
 0x115   :  { %v2015_v45 = vmax.f32 %v1401_v34, 0.0  ;;  %v2105_v49 = vmax.f32 %v1626_v35, 0.0 }
 0x116   :  { %v2604_v47 = vsel %vm57_vm2, %v2160_v41, 0.0 }
 0x117   :  { %v2605_v48 = vadd.f32 %v2604_v47, %v2603_v16  ;;  %v2289_v52 = vsel %vm57_vm2, %v2015_v45, 0.0  ;;  %v2484_v55 = vsel %vm57_vm2, %v2105_v49, 0.0 }
 0x118   :  { %v2290_v58 = vadd.f32 %v2289_v52, %v2288_v22  ;;  %v2485_v59 = vadd.f32 %v2484_v55, %v2483_v25  ;;  %v6732_v55 = vpop.f32.mrf.mxu3 }
 0x119   :  { %v1765_v63 = vpop.f32.mrf.mxu2 }
 0x11a   :  { %v1766_v5 = vadd.f32 %v6440_v38, %v1765_v63  ;;  %v1403_v7 = vpop.f32.mrf.mxu0  ;;  %v1628_v10 = vpop.f32.mrf.mxu1 }
 0x11b   :  { %v1404_v14 = vadd.f32 %v6440_v38, %v1403_v7  ;;  %v1629_v16 = vadd.f32 %v6440_v38, %v1628_v10 }
 0x11c   :  { %v2161_v20 = vmax.f32 %v1766_v5, 0.0 }
 0x11d   :  { %v2016_v22 = vmax.f32 %v1404_v14, 0.0  ;;  %v2106_v25 = vmax.f32 %v1629_v16, 0.0  ;;  %5032 = vmatmul.msk.bf16.gmra.mxu0 %vm960_vm1, %v5903_v0  ;;  %5077 = vmatmul.msk.bf16.gmra.mxu1 %vm960_vm1, %v5948_v1  ;;  %v6000_v1 = vld [vmem:[%s8647_s0 + $0x390] sm:$0xff] }
 0x11e   :  { %v2606_v26 = vsel %vm57_vm2, %v2161_v20, 0.0  ;;  %5105 = vmatmul.msk.bf16.gmra.mxu2 %vm960_vm1, %v5976_v12  ;;  %5129 = vmatmul.msk.bf16.gmra.mxu3 %vm960_vm1, %v6000_v1  ;;  %v5904_v16 = vld [vmem:[%s8647_s0 + $0x90] sm:$0xff]  ;;  %v5949_v20 = vld [vmem:[%s8647_s0 + $0x1f8] sm:$0xff] }
 0x11f   :  { %v2607_v27 = vadd.f32 %v2606_v26, %v2605_v48  ;;  %v2291_v29 = vsel %vm57_vm2, %v2016_v22, 0.0  ;;  %v2486_v32 = vsel %vm57_vm2, %v2106_v25, 0.0 }
 0x120   :  { %v2292_v34 = vadd.f32 %v2291_v29, %v2290_v58  ;;  %v2487_v35 = vadd.f32 %v2486_v32, %v2485_v59 }
 0x121   :  { %v1768_v41 = vpop.f32.mrf.mxu2 }
 0x122   :  { %v1769_v45 = vadd.f32 %v6440_v38, %v1768_v41  ;;  %v1405_v49 = vpop.f32.mrf.mxu0  ;;  %v1630_v51 = vpop.f32.mrf.mxu1 }
 0x123   :  { %v1406_v47 = vadd.f32 %v6440_v38, %v1405_v49  ;;  %v1631_v52 = vadd.f32 %v6440_v38, %v1630_v51 }
 0x124   :  { %v2162_v63 = vmax.f32 %v1769_v45, 0.0 }
 0x125   :  { %v2017_v0 = vmax.f32 %v1406_v47, 0.0  ;;  %v2107_v48 = vmax.f32 %v1631_v52, 0.0 }
 0x126   :  { %v2608_v58 = vsel %vm57_vm2, %v2162_v63, 0.0 }
 0x127   :  { %v2609_v59 = vadd.f32 %v2608_v58, %v2607_v27  ;;  %v2293_v5 = vsel %vm57_vm2, %v2017_v0, 0.0  ;;  %v2488_v7 = vsel %vm57_vm2, %v2107_v48, 0.0  ;;  %v5977_v27 = vld [vmem:[%s8647_s0 + $0x2d8] sm:$0xff] }
 0x128   :  { %v2294_v10 = vadd.f32 %v2293_v5, %v2292_v34  ;;  %v2489_v12 = vadd.f32 %v2488_v7, %v2487_v35  ;;  %v6753_v34 = vpop.f32.mrf.mxu3 }
 0x129   :  { %v1770_v14 = vpop.f32.mrf.mxu2 }
 0x12a   :  { %v1771_v22 = vadd.f32 %v6440_v38, %v1770_v14  ;;  %v1408_v25 = vpop.f32.mrf.mxu0  ;;  %v1633_v26 = vpop.f32.mrf.mxu1 }
 0x12b   :  { %v1409_v29 = vadd.f32 %v6440_v38, %v1408_v25  ;;  %v1634_v32 = vadd.f32 %v6440_v38, %v1633_v26  ;;  %v6001_v25 = vld [vmem:[%s8647_s0 + $0x398] sm:$0xff] }
 0x12c   :  { %v2163_v35 = vmax.f32 %v1771_v22, 0.0 }
 0x12d   :  { %v2018_v41 = vmax.f32 %v1409_v29, 0.0  ;;  %v2108_v45 = vmax.f32 %v1634_v32, 0.0  ;;  %5033 = vmatmul.msk.bf16.gmra.mxu0 %vm960_vm1, %v5904_v16  ;;  %5078 = vmatmul.msk.bf16.gmra.mxu1 %vm960_vm1, %v5949_v20 }
 0x12e   :  { %v2610_v49 = vsel %vm57_vm2, %v2163_v35, 0.0  ;;  %5106 = vmatmul.msk.bf16.gmra.mxu2 %vm960_vm1, %v5977_v27  ;;  %5130 = vmatmul.msk.bf16.gmra.mxu3 %vm960_vm1, %v6001_v25 }
 0x12f   :  { %v2611_v51 = vadd.f32 %v2610_v49, %v2609_v59  ;;  %v2295_v47 = vsel %vm57_vm2, %v2018_v41, 0.0  ;;  %v2490_v52 = vsel %vm57_vm2, %v2108_v45, 0.0  ;;  %v5905_v41 = vld [vmem:[%s8647_s0 + $0x98] sm:$0xff]  ;;  %v5950_v45 = vld [vmem:[%s8647_s0 + $0x200] sm:$0xff] }
 0x130   :  { %v2296_v63 = vadd.f32 %v2295_v47, %v2294_v10  ;;  %v2491_v0 = vadd.f32 %v2490_v52, %v2489_v12  ;;  %v6764_v16 = vpop.f32.mrf.mxu3  ;;  %v5978_v52 = vld [vmem:[%s8647_s0 + $0x2e0] sm:$0xff] }
 0x131   :  { %v1773_v48 = vpop.f32.mrf.mxu2 }
 0x132   :  { %v1774_v1 = vadd.f32 %v6440_v38, %v1773_v48  ;;  %v1410_v58 = vpop.f32.mrf.mxu0  ;;  %v1635_v5 = vpop.f32.mrf.mxu1 }
 0x133   :  { %v1411_v7 = vadd.f32 %v6440_v38, %v1410_v58  ;;  %v1636_v14 = vadd.f32 %v6440_v38, %v1635_v5 }
 0x134   :  { %v2164_v20 = vmax.f32 %v1774_v1, 0.0 }
 0x135   :  { %v2019_v22 = vmax.f32 %v1411_v7, 0.0  ;;  %v2109_v59 = vmax.f32 %v1636_v14, 0.0 }
 0x136   :  { %v2612_v10 = vsel %vm57_vm2, %v2164_v20, 0.0 }
 0x137   :  { %v2613_v12 = vadd.f32 %v2612_v10, %v2611_v51  ;;  %v2297_v26 = vsel %vm57_vm2, %v2019_v22, 0.0  ;;  %v2492_v27 = vsel %vm57_vm2, %v2109_v59, 0.0 }
 0x138   :  { %v2298_v29 = vadd.f32 %v2297_v26, %v2296_v63  ;;  %v2493_v32 = vadd.f32 %v2492_v27, %v2491_v0  ;;  %v6785_v48 = vpop.f32.mrf.mxu3 }
 0x139   :  { %v1775_v35 = vpop.f32.mrf.mxu2 }
 0x13a   :  { %v1776_v49 = vadd.f32 %v6440_v38, %v1775_v35  ;;  %v1413_v51 = vpop.f32.mrf.mxu0  ;;  %v1638_v47 = vpop.f32.mrf.mxu1 }
 0x13b   :  { %v1414_v63 = vadd.f32 %v6440_v38, %v1413_v51  ;;  %v1639_v0 = vadd.f32 %v6440_v38, %v1638_v47 }
 0x13c   :  { %v2165_v1 = vmax.f32 %v1776_v49, 0.0 }
 0x13d   :  { %v2020_v58 = vmax.f32 %v1414_v63, 0.0  ;;  %v2110_v5 = vmax.f32 %v1639_v0, 0.0  ;;  %5034 = vmatmul.msk.bf16.gmra.mxu0 %vm960_vm1, %v5905_v41  ;;  %5079 = vmatmul.msk.bf16.gmra.mxu1 %vm960_vm1, %v5950_v45 }
 0x13e   :  { %v2614_v7 = vsel %vm57_vm2, %v2165_v1, 0.0  ;;  %5107 = vmatmul.msk.bf16.gmra.mxu2 %vm960_vm1, %v5978_v52  ;;  %v6002_v52 = vld [vmem:[%s8647_s0 + $0x3a0] sm:$0xff] }
 0x13f   :  { %v2615_v14 = vadd.f32 %v2614_v7, %v2613_v12  ;;  %v2299_v20 = vsel %vm57_vm2, %v2020_v58, 0.0  ;;  %v2494_v22 = vsel %vm57_vm2, %v2110_v5, 0.0  ;;  %5131 = vmatmul.msk.bf16.gmra.mxu3 %vm960_vm1, %v6002_v52  ;;  %v5906_v7 = vld [vmem:[%s8647_s0 + $0xa0] sm:$0xff] }
 0x140   :  { %v2300_v59 = vadd.f32 %v2299_v20, %v2298_v29  ;;  %v2495_v25 = vadd.f32 %v2494_v22, %v2493_v32  ;;  %v6796_v49 = vpop.f32.mrf.mxu3  ;;  %v5951_v20 = vld [vmem:[%s8647_s0 + $0x208] sm:$0xff] }
 0x141   :  { %v1778_v10 = vpop.f32.mrf.mxu2 }
 0x142   :  { %v1779_v26 = vadd.f32 %v6440_v38, %v1778_v10  ;;  %v1415_v27 = vpop.f32.mrf.mxu0  ;;  %v1640_v35 = vpop.f32.mrf.mxu1 }
 0x143   :  { %v1416_v41 = vadd.f32 %v6440_v38, %v1415_v27  ;;  %v1641_v45 = vadd.f32 %v6440_v38, %v1640_v35 }
 0x144   :  { %v2166_v51 = vmax.f32 %v1779_v26, 0.0  ;;  %v5979_v26 = vld [vmem:[%s8647_s0 + $0x2e8] sm:$0xff] }
 0x145   :  { %v2021_v47 = vmax.f32 %v1416_v41, 0.0  ;;  %v2111_v12 = vmax.f32 %v1641_v45, 0.0 }
 0x146   :  { %v2616_v29 = vsel %vm57_vm2, %v2166_v51, 0.0 }
 0x147   :  { %v2617_v32 = vadd.f32 %v2616_v29, %v2615_v14  ;;  %v2301_v63 = vsel %vm57_vm2, %v2021_v47, 0.0  ;;  %v2496_v0 = vsel %vm57_vm2, %v2111_v12, 0.0 }
 0x148   :  { %v2302_v1 = vadd.f32 %v2301_v63, %v2300_v59  ;;  %v2497_v58 = vadd.f32 %v2496_v0, %v2495_v25  ;;  %v6817_v27 = vpop.f32.mrf.mxu3 }
 0x149   :  { %v1780_v5 = vpop.f32.mrf.mxu2 }
 0x14a   :  { %v1781_v22 = vadd.f32 %v6440_v38, %v1780_v5  ;;  %v1418_v14 = vpop.f32.mrf.mxu0  ;;  %v1643_v10 = vpop.f32.mrf.mxu1 }
 0x14b   :  { %v1419_v59 = vadd.f32 %v6440_v38, %v1418_v14  ;;  %v1644_v25 = vadd.f32 %v6440_v38, %v1643_v10 }
 0x14c   :  { %v2167_v35 = vmax.f32 %v1781_v22, 0.0 }
 0x14d   :  { %v2022_v41 = vmax.f32 %v1419_v59, 0.0  ;;  %v2112_v45 = vmax.f32 %v1644_v25, 0.0  ;;  %5035 = vmatmul.msk.bf16.gmra.mxu0 %vm960_vm1, %v5906_v7  ;;  %5080 = vmatmul.msk.bf16.gmra.mxu1 %vm960_vm1, %v5951_v20  ;;  %v6003_v25 = vld [vmem:[%s8647_s0 + $0x3a8] sm:$0xff] }
 0x14e   :  { %v2618_v51 = vsel %vm57_vm2, %v2167_v35, 0.0  ;;  %5108 = vmatmul.msk.bf16.gmra.mxu2 %vm960_vm1, %v5979_v26 }
 0x14f   :  { %v2619_v47 = vadd.f32 %v2618_v51, %v2617_v32  ;;  %v2303_v12 = vsel %vm57_vm2, %v2022_v41, 0.0  ;;  %v2498_v52 = vsel %vm57_vm2, %v2112_v45, 0.0  ;;  %5132 = vmatmul.msk.bf16.gmra.mxu3 %vm960_vm1, %v6003_v25 }
 0x150   :  { %v2304_v29 = vadd.f32 %v2303_v12, %v2302_v1  ;;  %v2499_v63 = vadd.f32 %v2498_v52, %v2497_v58  ;;  %v6828_v10 = vpop.f32.mrf.mxu3  ;;  %v5907_v52 = vld [vmem:[%s8647_s0 + $0xa8] sm:$0xff] }
 0x151   :  { %v1783_v0 = vpop.f32.mrf.mxu2 }
 0x152   :  { %v1784_v5 = vadd.f32 %v6440_v38, %v1783_v0  ;;  %v1420_v22 = vpop.f32.mrf.mxu0  ;;  %v1645_v14 = vpop.f32.mrf.mxu1  ;;  %v5952_v0 = vld [vmem:[%s8647_s0 + $0x210] sm:$0xff] }
 0x153   :  { %v1421_v7 = vadd.f32 %v6440_v38, %v1420_v22  ;;  %v1646_v20 = vadd.f32 %v6440_v38, %v1645_v14  ;;  %v5980_v14 = vld [vmem:[%s8647_s0 + $0x2f0] sm:$0xff] }
 0x154   :  { %v2168_v59 = vmax.f32 %v1784_v5, 0.0 }
 0x155   :  { %v2023_v26 = vmax.f32 %v1421_v7, 0.0  ;;  %v2113_v32 = vmax.f32 %v1646_v20, 0.0 }
 0x156   :  { %v2620_v1 = vsel %vm57_vm2, %v2168_v59, 0.0 }
 0x157   :  { %v2621_v58 = vadd.f32 %v2620_v1, %v2619_v47  ;;  %v2305_v35 = vsel %vm57_vm2, %v2023_v26, 0.0  ;;  %v2500_v41 = vsel %vm57_vm2, %v2113_v32, 0.0 }
 0x158   :  { %v2306_v45 = vadd.f32 %v2305_v35, %v2304_v29  ;;  %v2501_v51 = vadd.f32 %v2500_v41, %v2499_v63  ;;  %v6849_v7 = vpop.f32.mrf.mxu3 }
 0x159   :  { %v1785_v12 = vpop.f32.mrf.mxu2 }
 0x15a   :  { %v1786_v5 = vadd.f32 %v6440_v38, %v1785_v12  ;;  %v1423_v47 = vpop.f32.mrf.mxu0  ;;  %v1648_v22 = vpop.f32.mrf.mxu1 }
 0x15b   :  { %v1424_v29 = vadd.f32 %v6440_v38, %v1423_v47  ;;  %v1649_v63 = vadd.f32 %v6440_v38, %v1648_v22 }
 0x15c   :  { %v2169_v20 = vmax.f32 %v1786_v5, 0.0 }
 0x15d   :  { %v2024_v59 = vmax.f32 %v1424_v29, 0.0  ;;  %v2114_v26 = vmax.f32 %v1649_v63, 0.0  ;;  %5036 = vmatmul.msk.bf16.gmra.mxu0 %vm960_vm1, %v5907_v52  ;;  %5081 = vmatmul.msk.bf16.gmra.mxu1 %vm960_vm1, %v5952_v0 }
 0x15e   :  { %v2622_v32 = vsel %vm57_vm2, %v2169_v20, 0.0  ;;  %5109 = vmatmul.msk.bf16.gmra.mxu2 %vm960_vm1, %v5980_v14 }
 0x15f   :  { %v2623_v25 = vadd.f32 %v2622_v32, %v2621_v58  ;;  %v2307_v1 = vsel %vm57_vm2, %v2024_v59, 0.0  ;;  %v2502_v35 = vsel %vm57_vm2, %v2114_v26, 0.0  ;;  %v6004_v59 = vld [vmem:[%s8647_s0 + $0x3b0] sm:$0xff] }
 0x160   :  { %v2308_v41 = vadd.f32 %v2307_v1, %v2306_v45  ;;  %v2503_v12 = vadd.f32 %v2502_v35, %v2501_v51  ;;  %v6860_v63 = vpop.f32.mrf.mxu3  ;;  %5133 = vmatmul.msk.bf16.gmra.mxu3 %vm960_vm1, %v6004_v59 }
 0x161   :  { %v1788_v47 = vpop.f32.mrf.mxu2 }
 0x162   :  { %v1789_v5 = vadd.f32 %v6440_v38, %v1788_v47  ;;  %v1425_v22 = vpop.f32.mrf.mxu0  ;;  %v1650_v29 = vpop.f32.mrf.mxu1 }
 0x163   :  { %v1426_v52 = vadd.f32 %v6440_v38, %v1425_v22  ;;  %v1651_v0 = vadd.f32 %v6440_v38, %v1650_v29  ;;  %v5953_v22 = vld [vmem:[%s8647_s0 + $0x218] sm:$0xff] }
 0x164   :  { %v2170_v20 = vmax.f32 %v1789_v5, 0.0  ;;  %v5908_v5 = vld [vmem:[%s8647_s0 + $0xb0] sm:$0xff] }
 0x165   :  { %v2025_v14 = vmax.f32 %v1426_v52, 0.0  ;;  %v2115_v58 = vmax.f32 %v1651_v0, 0.0  ;;  %v5981_v0 = vld [vmem:[%s8647_s0 + $0x2f8] sm:$0xff] }
 0x166   :  { %v2624_v45 = vsel %vm57_vm2, %v2170_v20, 0.0 }
 0x167   :  { %v2625_v51 = vadd.f32 %v2624_v45, %v2623_v25  ;;  %v2309_v26 = vsel %vm57_vm2, %v2025_v14, 0.0  ;;  %v2504_v32 = vsel %vm57_vm2, %v2115_v58, 0.0 }
 0x168   :  { %v2310_v1 = vadd.f32 %v2309_v26, %v2308_v41  ;;  %v2505_v35 = vadd.f32 %v2504_v32, %v2503_v12  ;;  %v6881_v20 = vpop.f32.mrf.mxu3 }
 0x169   :  { %v1790_v47 = vpop.f32.mrf.mxu2 }
 0x16a   :  { %v1791_v29 = vadd.f32 %v6440_v38, %v1790_v47  ;;  %v1428_v25 = vpop.f32.mrf.mxu0  ;;  %v1653_v52 = vpop.f32.mrf.mxu1 }
 0x16b   :  { %v1429_v41 = vadd.f32 %v6440_v38, %v1428_v25  ;;  %v1654_v12 = vadd.f32 %v6440_v38, %v1653_v52 }
 0x16c   :  { %v2171_v14 = vmax.f32 %v1791_v29, 0.0 }
 0x16d   :  { %v2026_v58 = vmax.f32 %v1429_v41, 0.0  ;;  %v2116_v59 = vmax.f32 %v1654_v12, 0.0  ;;  %5037 = vmatmul.msk.bf16.gmra.mxu0 %vm960_vm1, %v5908_v5  ;;  %5082 = vmatmul.msk.bf16.gmra.mxu1 %vm960_vm1, %v5953_v22 }
 0x16e   :  { %5110 = vmatmul.msk.bf16.gmra.mxu2 %vm960_vm1, %v5981_v0  ;;  %v2626_v32 = vsel %vm57_vm2, %v2171_v14, 0.0 }
 0x16f   :  { %v2311_v45 = vsel %vm57_vm2, %v2026_v58, 0.0  ;;  %v2506_v26 = vsel %vm57_vm2, %v2116_v59, 0.0  ;;  %v2627_v12 = vadd.f32 %v2626_v32, %v2625_v51 }
 0x170   :  { %v2312_v47 = vadd.f32 %v2311_v45, %v2310_v1  ;;  %v2507_v25 = vadd.f32 %v2506_v26, %v2505_v35  ;;  %v6892_v8 = vpop.f32.mrf.mxu3  ;;  %v6005_v1 = vld [vmem:[%s8647_s0 + $0x3b8] sm:$0xff] }
 0x171   :  { %v1793_v52 = vpop.f32.mrf.mxu2  ;;  %5134 = vmatmul.msk.bf16.gmra.mxu3 %vm960_vm1, %v6005_v1 }
 0x172   :  { %v1794_v17 = vadd.f32 %v6440_v38, %v1793_v52  ;;  %v1430_v29 = vpop.f32.mrf.mxu0  ;;  %v1655_v41 = vpop.f32.mrf.mxu1  ;;  %v5954_v52 = vld [vmem:[%s8647_s0 + $0x220] sm:$0xff] }
 0x173   :  { %v1431_v5 = vadd.f32 %v6440_v38, %v1430_v29  ;;  %v1656_v22 = vadd.f32 %v6440_v38, %v1655_v41 }
 0x174   :  { %v2172_v0 = vmax.f32 %v1794_v17, 0.0  ;;  %v5909_v17 = vld [vmem:[%s8647_s0 + $0xb8] sm:$0xff] }
 0x175   :  { %v2027_v58 = vmax.f32 %v1431_v5, 0.0  ;;  %v2117_v62 = vmax.f32 %v1656_v22, 0.0 }
 0x176   :  { %v2628_v35 = vsel %vm57_vm2, %v2172_v0, 0.0 }
 0x177   :  { %v2629_v14 = vadd.f32 %v2628_v35, %v2627_v12  ;;  %v2313_v59 = vsel %vm57_vm2, %v2027_v58, 0.0  ;;  %v2508_v51 = vsel %vm57_vm2, %v2117_v62, 0.0  ;;  %v5982_v62 = vld [vmem:[%s8647_s0 + $0x300] sm:$0xff] }
 0x178   :  { %v2314_v45 = vadd.f32 %v2313_v59, %v2312_v47  ;;  %v2509_v26 = vadd.f32 %v2508_v51, %v2507_v25  ;;  %v6914_v47 = vld [vmem:[%s8648_s2] ss:$0 sm:$0xff]  ;;  %v6918_v22 = vpop.f32.mrf.mxu3 }
 0x179   :  { %v1795_v32 = vpop.f32.mrf.mxu2  ;;  %8679 = vst [vmem:[#allocation16_spill] sm:$0xff] %v6918_v22 }
 0x17a   :  { %v1796_v29 = vadd.f32 %v6440_v38, %v1795_v32  ;;  %v1433_v41 = vpop.f32.mrf.mxu0  ;;  %v1658_v12 = vpop.f32.mrf.mxu1 }
 0x17b   :  { %v1434_v25 = vadd.f32 %v6914_v47, %v1433_v41  ;;  %v1659_v5 = vadd.f32 %v6914_v47, %v1658_v12 }
 0x17c   :  { %v2173_v0 = vmax.f32 %v1796_v29, 0.0 }
 0x17d   :  { %v2028_v58 = vmax.f32 %v1434_v25, 0.0  ;;  %v2118_v38 = vmax.f32 %v1659_v5, 0.0  ;;  %5038 = vmatmul.msk.bf16.gmra.mxu0 %vm960_vm1, %v5909_v17  ;;  %5083 = vmatmul.msk.bf16.gmra.mxu1 %vm960_vm1, %v5954_v52 }
 0x17e   :  { %5111 = vmatmul.msk.bf16.gmra.mxu2 %vm960_vm1, %v5982_v62  ;;  %v2630_v59 = vsel %vm57_vm2, %v2173_v0, 0.0 }
 0x17f   :  { %v2315_v1 = vsel %vm57_vm2, %v2028_v58, 0.0  ;;  %v2510_v35 = vsel %vm57_vm2, %v2118_v38, 0.0  ;;  %v2631_v5 = vadd.f32 %v2630_v59, %v2629_v14 }
 0x180   :  { %v2316_v51 = vadd.f32 %v2315_v1, %v2314_v45  ;;  %v2511_v32 = vadd.f32 %v2510_v35, %v2509_v26  ;;  %v6929_v54 = vpop.f32.mrf.mxu3  ;;  %v6006_v45 = vld [vmem:[%s8647_s0 + $0x3c0] sm:$0xff] }
 0x181   :  { %v1798_v41 = vpop.f32.mrf.mxu2  ;;  %8680 = vst [vmem:[#allocation17_spill] sm:$0xff] %v6929_v54  ;;  %5135 = vmatmul.msk.bf16.gmra.mxu3 %vm960_vm1, %v6006_v45 }
 0x182   :  { %v1799_v12 = vadd.f32 %v6914_v47, %v1798_v41  ;;  %v1435_v29 = vpop.f32.mrf.mxu0  ;;  %v1660_v25 = vpop.f32.mrf.mxu1  ;;  %v5910_v41 = vld [vmem:[%s8647_s0 + $0xc0] sm:$0xff] }
 0x183   :  { %v1436_v17 = vadd.f32 %v6914_v47, %v1435_v29  ;;  %v1661_v52 = vadd.f32 %v6914_v47, %v1660_v25 }
 0x184   :  { %v2174_v62 = vmax.f32 %v1799_v12, 0.0  ;;  %v5955_v12 = vld [vmem:[%s8647_s0 + $0x228] sm:$0xff] }
 0x185   :  { %v2029_v58 = vmax.f32 %v1436_v17, 0.0  ;;  %v2119_v42 = vmax.f32 %v1661_v52, 0.0 }
 0x186   :  { %v2632_v26 = vsel %vm57_vm2, %v2174_v62, 0.0 }
 0x187   :  { %v2633_v0 = vadd.f32 %v2632_v26, %v2631_v5  ;;  %v2317_v38 = vsel %vm57_vm2, %v2029_v58, 0.0  ;;  %v2512_v14 = vsel %vm57_vm2, %v2119_v42, 0.0  ;;  %v5983_v42 = vld [vmem:[%s8647_s0 + $0x308] sm:$0xff] }
 0x188   :  { %v6938_v1 = vadd.f32 %v2317_v38, %v2316_v51  ;;  %v2513_v35 = vadd.f32 %v2512_v14, %v2511_v32  ;;  %v1918_v32 = vpop.f32.mrf.mxu3 }
 0x189   :  { %v1800_v59 = vpop.f32.mrf.mxu2  ;;  %v1919_v14 = vadd.f32 %v6914_v47, %v1918_v32 }
 0x18a   :  { %8681 = vst [vmem:[#allocation18_spill] sm:$0xff] %v6938_v1  ;;  %v1801_v29 = vadd.f32 %v6914_v47, %v1800_v59  ;;  %v1438_v25 = vpop.f32.mrf.mxu0  ;;  %v1663_v5 = vpop.f32.mrf.mxu1 }
 0x18b   :  { %v1664_v51 = vadd.f32 %v6914_v47, %v1663_v5  ;;  %v1439_v62 = vadd.f32 %v6914_v47, %v1438_v25  ;;  %v2222_v56 = vmax.f32 %v1919_v14, 0.0  ;;  %v5911_v14 = vld [vmem:[%s8647_s0 + $0xc8] sm:$0xff] }
 0x18c   :  { %v2175_v17 = vmax.f32 %v1801_v29, 0.0 }
 0x18d   :  { %v2120_v52 = vmax.f32 %v1664_v51, 0.0  ;;  %5039 = vmatmul.msk.bf16.gmra.mxu0 %vm960_vm1, %v5910_v41  ;;  %5084 = vmatmul.msk.bf16.gmra.mxu1 %vm960_vm1, %v5955_v12  ;;  %v2030_v41 = vmax.f32 %v1439_v62, 0.0 }
 0x18e   :  { %5112 = vmatmul.msk.bf16.gmra.mxu2 %vm960_vm1, %v5983_v42  ;;  %v2634_v45 = vsel %vm57_vm2, %v2175_v17, 0.0 }
 0x18f   :  { %v2514_v58 = vsel %vm57_vm2, %v2120_v52, 0.0  ;;  %v2635_v51 = vadd.f32 %v2634_v45, %v2633_v0  ;;  %v2325_v17 = vsel %vm57_vm2, %v2030_v41, 0.0 }
 0x190   :  { %v2515_v26 = vadd.f32 %v2514_v58, %v2513_v35  ;;  %v1920_v36 = vpop.f32.mrf.mxu3  ;;  %v6007_v35 = vld [vmem:[%s8647_s0 + $0x3c8] sm:$0xff] }
 0x191   :  { %v1803_v38 = vpop.f32.mrf.mxu2  ;;  %v1921_v62 = vadd.f32 %v6914_v47, %v1920_v36  ;;  %5136 = vmatmul.msk.bf16.gmra.mxu3 %vm960_vm1, %v6007_v35 }
 0x192   :  { %v1804_v59 = vadd.f32 %v6914_v47, %v1803_v38  ;;  %v1440_v29 = vpop.f32.mrf.mxu0  ;;  %v1665_v5 = vpop.f32.mrf.mxu1 }
 0x193   :  { %v1441_v12 = vadd.f32 %v6914_v47, %v1440_v29  ;;  %v1666_v42 = vadd.f32 %v6914_v47, %v1665_v5  ;;  %v5956_v29 = vld [vmem:[%s8647_s0 + $0x230] sm:$0xff]  ;;  %v2739_v5 = vsel %vm57_vm2, %v2222_v56, 0.0 }
 0x194   :  { %v2176_v25 = vmax.f32 %v1804_v59, 0.0 }
 0x195   :  { %v2031_v1 = vmax.f32 %v1441_v12, 0.0  ;;  %v2121_v52 = vmax.f32 %v1666_v42, 0.0 }
 0x196   :  { %v2636_v32 = vsel %vm57_vm2, %v2176_v25, 0.0 }
 0x197   :  { %v2637_v58 = vadd.f32 %v2636_v32, %v2635_v51  ;;  %v2326_v0 = vsel %vm57_vm2, %v2031_v1, 0.0  ;;  %v2516_v38 = vsel %vm57_vm2, %v2121_v52, 0.0  ;;  %v2223_v51 = vmax.f32 %v1921_v62, 0.0 }
 0x198   :  { %v2327_v45 = vadd.f32 %v2326_v0, %v2325_v17  ;;  %v1923_v52 = vpop.f32.mrf.mxu3  ;;  %v2517_v35 = vadd.f32 %v2516_v38, %v2515_v26 }
 0x199   :  { %v1805_v59 = vpop.f32.mrf.mxu2  ;;  %v2740_v25 = vsel %vm57_vm2, %v2223_v51, 0.0 }
 0x19a   :  { %v1806_v1 = vadd.f32 %v6914_v47, %v1805_v59  ;;  %v1443_v36 = vpop.f32.mrf.mxu0  ;;  %v1668_v41 = vpop.f32.mrf.mxu1  ;;  %v2741_v17 = vadd.f32 %v2740_v25, %v2739_v5 }
 0x19b   :  { %v1444_v12 = vadd.f32 %v6914_v47, %v1443_v36  ;;  %v1669_v42 = vadd.f32 %v6914_v47, %v1668_v41 }
 0x19c   :  { %v2177_v32 = vmax.f32 %v1806_v1, 0.0 }
 0x19d   :  { %v2032_v0 = vmax.f32 %v1444_v12, 0.0  ;;  %v2122_v33 = vmax.f32 %v1669_v42, 0.0  ;;  %5040 = vmatmul.msk.bf16.gmra.mxu0 %vm960_vm1, %v5911_v14  ;;  %5085 = vmatmul.msk.bf16.gmra.mxu1 %vm960_vm1, %v5956_v29  ;;  %v1924_v42 = vadd.f32 %v6914_v47, %v1923_v52 }
 0x19e   :  { %v2638_v59 = vsel %vm57_vm2, %v2177_v32, 0.0 }
 0x19f   :  { %v2328_v56 = vsel %vm57_vm2, %v2032_v0, 0.0  ;;  %v2518_v62 = vsel %vm57_vm2, %v2122_v33, 0.0  ;;  %v2639_v5 = vadd.f32 %v2638_v59, %v2637_v58 }
 0x1a0   :  { %v2329_v36 = vadd.f32 %v2328_v56, %v2327_v45  ;;  %v2519_v41 = vadd.f32 %v2518_v62, %v2517_v35  ;;  %v1925_v12 = vpop.f32.mrf.mxu3  ;;  %v6008_v45 = vld [vmem:[%s8647_s0 + $0x3d0] sm:$0xff] }
 0x1a1   :  { %v1808_v9 = vpop.f32.mrf.mxu2  ;;  %v1926_v0 = vadd.f32 %v6914_v47, %v1925_v12  ;;  %5137 = vmatmul.msk.bf16.gmra.mxu3 %vm960_vm1, %v6008_v45 }
 0x1a2   :  { %v1809_v51 = vadd.f32 %v6914_v47, %v1808_v9  ;;  %v1445_v26 = vpop.f32.mrf.mxu0  ;;  %v1670_v38 = vpop.f32.mrf.mxu1  ;;  %v2224_v9 = vmax.f32 %v1924_v42, 0.0 }
 0x1a3   :  { %v1446_v1 = vadd.f32 %v6914_v47, %v1445_v26  ;;  %v1671_v14 = vadd.f32 %v6914_v47, %v1670_v38  ;;  %v5957_v26 = vld [vmem:[%s8647_s0 + $0x238] sm:$0xff] }
 0x1a4   :  { %v2178_v29 = vmax.f32 %v1809_v51, 0.0  ;;  %v2742_v62 = vsel %vm57_vm2, %v2224_v9, 0.0  ;;  %v5912_v51 = vld [vmem:[%s8647_s0 + $0xd0] sm:$0xff] }
 0x1a5   :  { %v2033_v25 = vmax.f32 %v1446_v1, 0.0  ;;  %v2123_v33 = vmax.f32 %v1671_v14, 0.0  ;;  %v2743_v38 = vadd.f32 %v2742_v62, %v2741_v17 }
 0x1a6   :  { %v2640_v35 = vsel %vm57_vm2, %v2178_v29, 0.0 }
 0x1a7   :  { %v2641_v32 = vadd.f32 %v2640_v35, %v2639_v5  ;;  %v2330_v58 = vsel %vm57_vm2, %v2033_v25, 0.0  ;;  %v2520_v52 = vsel %vm57_vm2, %v2123_v33, 0.0  ;;  %v2225_v5 = vmax.f32 %v1926_v0, 0.0 }
 0x1a8   :  { %v2331_v56 = vadd.f32 %v2330_v58, %v2329_v36  ;;  %v1928_v25 = vpop.f32.mrf.mxu3  ;;  %v2521_v33 = vadd.f32 %v2520_v52, %v2519_v41 }
 0x1a9   :  { %v1810_v59 = vpop.f32.mrf.mxu2  ;;  %v2744_v42 = vsel %vm57_vm2, %v2225_v5, 0.0  ;;  %v1929_v62 = vadd.f32 %v6914_v47, %v1928_v25 }
 0x1aa   :  { %v1811_v1 = vadd.f32 %v6914_v47, %v1810_v59  ;;  %v1448_v14 = vpop.f32.mrf.mxu0  ;;  %v1673_v12 = vpop.f32.mrf.mxu1  ;;  %v2745_v35 = vadd.f32 %v2744_v42, %v2743_v38 }
 0x1ab   :  { %v1449_v36 = vadd.f32 %v6914_v47, %v1448_v14  ;;  %v1674_v29 = vadd.f32 %v6914_v47, %v1673_v12  ;;  %v2226_v52 = vmax.f32 %v1929_v62, 0.0  ;;  %v5958_v62 = vld [vmem:[%s8647_s0 + $0x240] sm:$0xff] }
 0x1ac   :  { %v2179_v45 = vmax.f32 %v1811_v1, 0.0 }
 0x1ad   :  { %v2034_v9 = vmax.f32 %v1449_v36, 0.0  ;;  %v2124_v58 = vmax.f32 %v1674_v29, 0.0  ;;  %5041 = vmatmul.msk.bf16.gmra.mxu0 %vm960_vm1, %v5912_v51  ;;  %5086 = vmatmul.msk.bf16.gmra.mxu1 %vm960_vm1, %v5957_v26  ;;  %v2746_v36 = vsel %vm57_vm2, %v2226_v52, 0.0 }
 0x1ae   :  { %v2642_v59 = vsel %vm57_vm2, %v2179_v45, 0.0  ;;  %v2747_v25 = vadd.f32 %v2746_v36, %v2745_v35  ;;  %v5913_v35 = vld [vmem:[%s8647_s0 + $0xd8] sm:$0xff] }
 0x1af   :  { %v2332_v17 = vsel %vm57_vm2, %v2034_v9, 0.0  ;;  %v2522_v0 = vsel %vm57_vm2, %v2124_v58, 0.0  ;;  %v2643_v51 = vadd.f32 %v2642_v59, %v2641_v32 }
 0x1b0   :  { %v2333_v14 = vadd.f32 %v2332_v17, %v2331_v56  ;;  %v7015_v5 = vadd.f32 %v2522_v0, %v2521_v33  ;;  %v1930_v29 = vpop.f32.mrf.mxu3  ;;  %v6009_v56 = vld [vmem:[%s8647_s0 + $0x3d8] sm:$0xff] }
 0x1b1   :  { %v1813_v41 = vpop.f32.mrf.mxu2  ;;  %v1931_v17 = vadd.f32 %v6914_v47, %v1930_v29  ;;  %5138 = vmatmul.msk.bf16.gmra.mxu3 %vm960_vm1, %v6009_v56 }
 0x1b2   :  { %8682 = vst [vmem:[#allocation19_spill] sm:$0xff] %v7015_v5  ;;  %v1814_v38 = vadd.f32 %v6914_v47, %v1813_v41  ;;  %v1450_v1 = vpop.f32.mrf.mxu0  ;;  %v7018_v12 = vpop.f32.mrf.mxu1 }
 0x1b3   :  { %8683 = vst [vmem:[#allocation20_spill] sm:$0xff] %v7018_v12  ;;  %v1451_v26 = vadd.f32 %v6914_v47, %v1450_v1  ;;  %v2227_v59 = vmax.f32 %v1931_v17, 0.0 }
 0x1b4   :  { %v2180_v42 = vmax.f32 %v1814_v38, 0.0 }
 0x1b5   :  { %v2035_v9 = vmax.f32 %v1451_v26, 0.0 }
 0x1b6   :  { %v2644_v33 = vsel %vm57_vm2, %v2180_v42, 0.0 }
 0x1b7   :  { %v2645_v45 = vadd.f32 %v2644_v33, %v2643_v51  ;;  %v2334_v58 = vsel %vm57_vm2, %v2035_v9, 0.0  ;;  %v2748_v51 = vsel %vm57_vm2, %v2227_v59, 0.0 }
 0x1b8   :  { %v2335_v32 = vadd.f32 %v2334_v58, %v2333_v14  ;;  %v1933_v26 = vpop.f32.mrf.mxu3  ;;  %v2749_v36 = vadd.f32 %v2748_v51, %v2747_v25 }
 0x1b9   :  { %v1815_v0 = vpop.f32.mrf.mxu2  ;;  %v1934_v9 = vadd.f32 %v6914_v47, %v1933_v26 }
 0x1ba   :  { %v1816_v41 = vadd.f32 %v6914_v47, %v1815_v0  ;;  %v1453_v52 = vpop.f32.mrf.mxu0  ;;  %v1678_v38 = vpop.f32.mrf.mxu1 }
 0x1bb   :  { %v1454_v1 = vadd.f32 %v6914_v47, %v1453_v52  ;;  %v1679_v58 = vadd.f32 %v6914_v47, %v1678_v38  ;;  %v2228_v0 = vmax.f32 %v1934_v9, 0.0  ;;  %v6010_v38 = vld [vmem:[%s8647_s0 + $0x3e0] sm:$0xff] }
 0x1bc   :  { %v2181_v14 = vmax.f32 %v1816_v41, 0.0 }
 0x1bd   :  { %v2036_v29 = vmax.f32 %v1454_v1, 0.0  ;;  %5042 = vmatmul.msk.bf16.gmra.mxu0 %vm960_vm1, %v5913_v35  ;;  %5087 = vmatmul.msk.bf16.gmra.mxu1 %vm960_vm1, %v5958_v62  ;;  %v2750_v1 = vsel %vm57_vm2, %v2228_v0, 0.0 }
 0x1be   :  { %v2646_v56 = vsel %vm57_vm2, %v2181_v14, 0.0  ;;  %v2126_v14 = vmax.f32 %v1679_v58, 0.0 }
 0x1bf   :  { %v2336_v42 = vsel %vm57_vm2, %v2036_v29, 0.0  ;;  %v2647_v52 = vadd.f32 %v2646_v56, %v2645_v45  ;;  %v2751_v29 = vadd.f32 %v2750_v1, %v2749_v36 }
 0x1c0   :  { %v2337_v33 = vadd.f32 %v2336_v42, %v2335_v32  ;;  %v1935_v51 = vpop.f32.mrf.mxu3 }
 0x1c1   :  { %v1818_v17 = vpop.f32.mrf.mxu2  ;;  %v1936_v56 = vadd.f32 %v6914_v47, %v1935_v51  ;;  %5139 = vmatmul.msk.bf16.gmra.mxu3 %vm960_vm1, %v6010_v38 }
 0x1c2   :  { %v1819_v59 = vadd.f32 %v6914_v47, %v1818_v17  ;;  %v1455_v41 = vpop.f32.mrf.mxu0  ;;  %v1680_v25 = vpop.f32.mrf.mxu1 }
 0x1c3   :  { %v1456_v35 = vadd.f32 %v6914_v47, %v1455_v41  ;;  %v1681_v62 = vadd.f32 %v6914_v47, %v1680_v25  ;;  %v5914_v41 = vld [vmem:[%s8647_s0 + $0xe0] sm:$0xff]  ;;  %v2229_v25 = vmax.f32 %v1936_v56, 0.0 }
 0x1c4   :  { %v2182_v26 = vmax.f32 %v1819_v59, 0.0  ;;  %v2532_v59 = vsel %vm57_vm2, %v2126_v14, 0.0 }
 0x1c5   :  { %v2037_v32 = vmax.f32 %v1456_v35, 0.0  ;;  %v2127_v42 = vmax.f32 %v1681_v62, 0.0 }
 0x1c6   :  { %v2648_v9 = vsel %vm57_vm2, %v2182_v26, 0.0 }
 0x1c7   :  { %v2649_v17 = vadd.f32 %v2648_v9, %v2647_v52  ;;  %v2338_v45 = vsel %vm57_vm2, %v2037_v32, 0.0  ;;  %v2533_v36 = vsel %vm57_vm2, %v2127_v42, 0.0 }
 0x1c8   :  { %v2339_v0 = vadd.f32 %v2338_v45, %v2337_v33  ;;  %v2752_v33 = vsel %vm57_vm2, %v2229_v25, 0.0  ;;  %v1938_v26 = vpop.f32.mrf.mxu3  ;;  %v2534_v14 = vadd.f32 %v2533_v36, %v2532_v59  ;;  %v5165_v59 = vld [vmem:[%s8649_s3 + $0x28] sm:$0xf] }
 0x1c9   :  { %v1820_v58 = vpop.f32.mrf.mxu2  ;;  %v2753_v42 = vadd.f32 %v2752_v33, %v2751_v29  ;;  %v6021_v29 = vld [vmem:[%s8649_s3 + $0x38] sm:$0xf0] }
 0x1ca   :  { %v1821_v35 = vadd.f32 %v6914_v47, %v1820_v58  ;;  %v1458_v52 = vpop.f32.mrf.mxu0  ;;  %v1683_v62 = vpop.f32.mrf.mxu1  ;;  %v1939_v58 = vadd.f32 %v6914_v47, %v1938_v26  ;;  %v5166_v25 = vor.u32 %v6021_v29, %v5165_v59 }
 0x1cb   :  { %v1459_v1 = vadd.f32 %v6914_v47, %v1458_v52  ;;  %v1684_v51 = vadd.f32 %v6914_v47, %v1683_v62 }
 0x1cc   :  { %v2183_v32 = vmax.f32 %v1821_v35, 0.0  ;;  %2924 = vmatpush.bf16.msrb.mxu1 %v5166_v25 }
 0x1cd   :  { %v2038_v38 = vmax.f32 %v1459_v1, 0.0  ;;  %v2128_v9 = vmax.f32 %v1684_v51, 0.0  ;;  %5043 = vmatmul.msk.bf16.gmra.mxu0 %vm960_vm1, %v5914_v41  ;;  %v2230_v41 = vmax.f32 %v1939_v58, 0.0  ;;  %v6011_v58 = vld [vmem:[%s8647_s0 + $0x3e8] sm:$0xff] }
 0x1ce   :  { %v2650_v52 = vsel %vm57_vm2, %v2183_v32, 0.0 }
 0x1cf   :  { %v2340_v45 = vsel %vm57_vm2, %v2038_v38, 0.0  ;;  %v2535_v56 = vsel %vm57_vm2, %v2128_v9, 0.0  ;;  %v2651_v33 = vadd.f32 %v2650_v52, %v2649_v17 }
 0x1d0   :  { %v2341_v5 = vadd.f32 %v2340_v45, %v2339_v0  ;;  %v2536_v62 = vadd.f32 %v2535_v56, %v2534_v14  ;;  %v2754_v14 = vsel %vm57_vm2, %v2230_v41, 0.0  ;;  %v1940_v32 = vpop.f32.mrf.mxu3 }
 0x1d1   :  { %v1823_v36 = vpop.f32.mrf.mxu2  ;;  %v2755_v9 = vadd.f32 %v2754_v14, %v2753_v42  ;;  %5140 = vmatmul.msk.bf16.gmra.mxu3 %vm960_vm1, %v6011_v58  ;;  %v5915_v42 = vld [vmem:[%s8647_s0 + $0xe8] sm:$0xff] }
 0x1d2   :  { %v1824_v35 = vadd.f32 %v6914_v47, %v1823_v36  ;;  %v1460_v1 = vpop.f32.mrf.mxu0  ;;  %v1685_v51 = vpop.f32.mrf.mxu1 }
 0x1d3   :  { %v1461_v26 = vadd.f32 %v6914_v47, %v1460_v1  ;;  %v1686_v0 = vadd.f32 %v6914_v47, %v1685_v51 }
 0x1d4   :  { %v2184_v38 = vmax.f32 %v1824_v35, 0.0 }
 0x1d5   :  { %v2039_v45 = vmax.f32 %v1461_v26, 0.0  ;;  %v2129_v56 = vmax.f32 %v1686_v0, 0.0 }
 0x1d6   :  { %v2652_v59 = vsel %vm57_vm2, %v2184_v38, 0.0 }
 0x1d7   :  { %v2653_v29 = vadd.f32 %v2652_v59, %v2651_v33  ;;  %v2342_v17 = vsel %vm57_vm2, %v2039_v45, 0.0  ;;  %v2537_v36 = vsel %vm57_vm2, %v2129_v56, 0.0 }
 0x1d8   :  { %v2343_v52 = vadd.f32 %v2342_v17, %v2341_v5  ;;  %v2538_v26 = vadd.f32 %v2537_v36, %v2536_v62  ;;  %v1943_v14 = vpop.f32.mrf.mxu3 }
 0x1d9   :  { %v1825_v41 = vpop.f32.mrf.mxu2 }
 0x1da   :  { %v1826_v25 = vadd.f32 %v6914_v47, %v1825_v41  ;;  %v1463_v35 = vpop.f32.mrf.mxu0  ;;  %v1688_v1 = vpop.f32.mrf.mxu1 }
 0x1db   :  { %v1464_v51 = vadd.f32 %v6914_v47, %v1463_v35  ;;  %v1689_v33 = vadd.f32 %v6914_v47, %v1688_v1  ;;  %v1941_v35 = vadd.f32 %v6914_v47, %v1940_v32 }
 0x1dc   :  { %v2185_v0 = vmax.f32 %v1826_v25, 0.0 }
 0x1dd   :  { %v2040_v38 = vmax.f32 %v1464_v51, 0.0  ;;  %v2130_v5 = vmax.f32 %v1689_v33, 0.0  ;;  %5044 = vmatmul.msk.bf16.gmra.mxu0 %vm960_vm1, %v5915_v42 }
 0x1de   :  { %v2654_v58 = vsel %vm57_vm2, %v2185_v0, 0.0 }
 0x1df   :  { %v2344_v45 = vsel %vm57_vm2, %v2040_v38, 0.0  ;;  %v2539_v56 = vsel %vm57_vm2, %v2130_v5, 0.0  ;;  %v2655_v25 = vadd.f32 %v2654_v58, %v2653_v29  ;;  %v2231_v5 = vmax.f32 %v1941_v35, 0.0 }
 0x1e0   :  { %v2345_v59 = vadd.f32 %v2344_v45, %v2343_v52  ;;  %v2540_v17 = vadd.f32 %v2539_v56, %v2538_v26  ;;  %v6012_v52 = vld [vmem:[%s8647_s0 + $0x3f0] sm:$0xff]  ;;  %v1945_v32 = vpop.f32.mrf.mxu3 }
 0x1e1   :  { %v1828_v41 = vpop.f32.mrf.mxu2  ;;  %5141 = vmatmul.msk.bf16.gmra.mxu3 %vm960_vm1, %v6012_v52  ;;  %v2756_v35 = vsel %vm57_vm2, %v2231_v5, 0.0 }
 0x1e2   :  { %v1829_v1 = vadd.f32 %v6914_v47, %v1828_v41  ;;  %v1465_v62 = vpop.f32.mrf.mxu0  ;;  %v1690_v36 = vpop.f32.mrf.mxu1  ;;  %v5916_v41 = vld [vmem:[%s8647_s0 + $0xf0] sm:$0xff] }
 0x1e3   :  { %v1466_v51 = vadd.f32 %v6914_v47, %v1465_v62  ;;  %v1691_v42 = vadd.f32 %v6914_v47, %v1690_v36 }
 0x1e4   :  { %v2186_v33 = vmax.f32 %v1829_v1, 0.0 }
 0x1e5   :  { %v2041_v38 = vmax.f32 %v1466_v51, 0.0  ;;  %v2131_v12 = vmax.f32 %v1691_v42, 0.0  ;;  %v1944_v42 = vadd.f32 %v6914_v47, %v1943_v14 }
 0x1e6   :  { %v2656_v26 = vsel %vm57_vm2, %v2186_v33, 0.0 }
 0x1e7   :  { %v2657_v0 = vadd.f32 %v2656_v26, %v2655_v25  ;;  %v2346_v45 = vsel %vm57_vm2, %v2041_v38, 0.0  ;;  %v2541_v56 = vsel %vm57_vm2, %v2131_v12, 0.0  ;;  %v2757_v38 = vadd.f32 %v2756_v35, %v2755_v9 }
 0x1e8   :  { %v2347_v29 = vadd.f32 %v2346_v45, %v2345_v59  ;;  %v1946_v59 = vadd.f32 %v6914_v47, %v1945_v32  ;;  %v2542_v12 = vadd.f32 %v2541_v56, %v2540_v17  ;;  %v2232_v5 = vmax.f32 %v1944_v42, 0.0  ;;  %v1948_v32 = vpop.f32.mrf.mxu3 }
 0x1e9   :  { %v1830_v58 = vpop.f32.mrf.mxu2 }
 0x1ea   :  { %v1831_v1 = vadd.f32 %v6914_v47, %v1830_v58  ;;  %v1468_v62 = vpop.f32.mrf.mxu0  ;;  %v1693_v36 = vpop.f32.mrf.mxu1  ;;  %v2233_v45 = vmax.f32 %v1946_v59, 0.0 }
 0x1eb   :  { %v1469_v25 = vadd.f32 %v6914_v47, %v1468_v62  ;;  %v1694_v51 = vadd.f32 %v6914_v47, %v1693_v36  ;;  %v2758_v36 = vsel %vm57_vm2, %v2232_v5, 0.0 }
 0x1ec   :  { %v2187_v33 = vmax.f32 %v1831_v1, 0.0  ;;  %v2759_v17 = vadd.f32 %v2758_v36, %v2757_v38  ;;  %v2760_v9 = vsel %vm57_vm2, %v2233_v45, 0.0 }
 0x1ed   :  { %v2042_v52 = vmax.f32 %v1469_v25, 0.0  ;;  %v2132_v26 = vmax.f32 %v1694_v51, 0.0  ;;  %5045 = vmatmul.msk.bf16.gmra.mxu0 %vm960_vm1, %v5916_v41  ;;  %v1949_v41 = vadd.f32 %v6914_v47, %v1948_v32 }
 0x1ee   :  { %v2658_v58 = vsel %vm57_vm2, %v2187_v33, 0.0  ;;  %v2761_v51 = vadd.f32 %v2760_v9, %v2759_v17 }
 0x1ef   :  { %v2348_v53 = vsel %vm57_vm2, %v2042_v52, 0.0  ;;  %v2543_v62 = vsel %vm57_vm2, %v2132_v26, 0.0  ;;  %v2659_v42 = vadd.f32 %v2658_v58, %v2657_v0  ;;  %v2234_v33 = vmax.f32 %v1949_v41, 0.0 }
 0x1f0   :  { %v2349_v14 = vadd.f32 %v2348_v53, %v2347_v29  ;;  %v7121_v30 = vadd.f32 %v2543_v62, %v2542_v12  ;;  %v6013_v12 = vld [vmem:[%s8647_s0 + $0x3f8] sm:$0xff] }
 0x1f1   :  { %v1833_v56 = vpop.f32.mrf.mxu2  ;;  %v2762_v29 = vsel %vm57_vm2, %v2234_v33, 0.0  ;;  %5142 = vmatmul.msk.bf16.gmra.mxu3 %vm960_vm1, %v6013_v12  ;;  %v5917_v62 = vld [vmem:[%s8647_s0 + $0xf8] sm:$0xff]  ;;  %v5918_v12 = vld [vmem:[%s8647_s0 + $0x100] sm:$0xff] }
 0x1f2   :  { %v1834_v35 = vadd.f32 %v6914_v47, %v1833_v56  ;;  %v1470_v1 = vpop.f32.mrf.mxu0  ;;  %v1695_v25 = vpop.f32.mrf.mxu1  ;;  %v7132_v26 = vadd.f32 %v2762_v29, %v2761_v51 }
 0x1f3   :  { %v1471_v59 = vadd.f32 %v6914_v47, %v1470_v1  ;;  %v7145_v56 = vpop.f32.mrf.mxu3 }
 0x1f4   :  { %v2188_v52 = vmax.f32 %v1834_v35, 0.0 }
 0x1f5   :  { %v2043_v53 = vmax.f32 %v1471_v59, 0.0 }
 0x1f6   :  { %v2660_v38 = vsel %vm57_vm2, %v2188_v52, 0.0 }
 0x1f7   :  { %v7134_v5 = vadd.f32 %v2660_v38, %v2659_v42  ;;  %v2350_v45 = vsel %vm57_vm2, %v2043_v53, 0.0 }
 0x1f8   :  { %v2351_v0 = vadd.f32 %v2350_v45, %v2349_v14 }
 0x1f9   :  { %8684 = vst [vmem:[#allocation21_spill] sm:$0xff] %v7134_v5  ;;  %v7138_v58 = vpop.f32.mrf.mxu2 }
 0x1fa   :  { %8685 = vst [vmem:[#allocation22_spill] sm:$0xff] %v7138_v58  ;;  %v1473_v36 = vpop.f32.mrf.mxu0  ;;  %v1698_v17 = vpop.f32.mrf.mxu1 }
 0x1fb   :  { %v1474_v9 = vadd.f32 %v6914_v47, %v1473_v36  ;;  %v7150_v52 = vpop.f32.mrf.mxu3 }
 0x1fd   :  { %v2044_v32 = vmax.f32 %v1474_v9, 0.0  ;;  %5046 = vmatmul.msk.bf16.gmra.mxu0 %vm960_vm1, %v5917_v62 }
 0x1ff   :  { %v2352_v41 = vsel %vm57_vm2, %v2044_v32, 0.0  ;;  %v1724_v32 = vadd.f32 %v6914_v47, %v6446_v40 }
 0x200   :  { %v2353_v35 = vadd.f32 %v2352_v41, %v2351_v0 }
 0x201   :  { %v1838_v1 = vpop.f32.mrf.mxu2  ;;  %v2144_v5 = vmax.f32 %v1724_v32, 0.0 }
 0x202   :  { %v1475_v14 = vpop.f32.mrf.mxu0  ;;  %v1700_v51 = vpop.f32.mrf.mxu1  ;;  %v1839_v62 = vadd.f32 %v6914_v47, %v1838_v1 }
 0x203   :  { %v1476_v42 = vadd.f32 %v6914_v47, %v1475_v14  ;;  %v7180_v32 = vsel %vm57_vm2, %v2144_v5, 0.0  ;;  %v1854_v5 = vadd.f32 %v6914_v47, %v6529_v31  ;;  %v5919_v31 = vld [vmem:[%s8647_s0 + $0x108] sm:$0xff] }
 0x205   :  { %v2045_v59 = vmax.f32 %v1476_v42, 0.0  ;;  %v2196_v57 = vmax.f32 %v1854_v5, 0.0 }
 0x207   :  { %v2354_v33 = vsel %vm57_vm2, %v2045_v59, 0.0 }
 0x208   :  { %v2355_v53 = vadd.f32 %v2354_v33, %v2353_v35  ;;  %v2190_v35 = vmax.f32 %v1839_v62, 0.0  ;;  %v7164_v33 = vpop.f32.mrf.mxu3 }
 0x209   :  { %v1840_v29 = vpop.f32.mrf.mxu2 }
 0x20a   :  { %v1478_v38 = vpop.f32.mrf.mxu0  ;;  %v7155_v45 = vpop.f32.mrf.mxu1  ;;  %v1841_v36 = vadd.f32 %v6914_v47, %v1840_v29  ;;  %v1696_v29 = vadd.f32 %v6914_v47, %v1695_v25  ;;  %v2670_v40 = vsel %vm57_vm2, %v2190_v35, 0.0  ;;  %v7184_v25 = vadd.f32 %v6914_v47, %v6475_v60 }
 0x20b   :  { %v1479_v0 = vadd.f32 %v6914_v47, %v1478_v38  ;;  %v1851_v35 = vadd.f32 %v6914_v47, %v6510_v19  ;;  %v1856_v60 = vadd.f32 %v6914_v47, %v6540_v46  ;;  %v1859_v19 = vadd.f32 %v6914_v47, %v6562_v3 }
 0x20c   :  { %v2191_v14 = vmax.f32 %v1841_v36, 0.0  ;;  %v1849_v36 = vadd.f32 %v6914_v47, %v6499_v11  ;;  %v1704_v5 = vadd.f32 %v6914_v47, %v7155_v45  ;;  %v1869_v45 = vadd.f32 %v6914_v47, %v6626_v23 }
 0x20d   :  { %v2046_v9 = vmax.f32 %v1479_v0, 0.0  ;;  %5047 = vmatmul.msk.bf16.gmra.mxu0 %vm960_vm1, %v5918_v12  ;;  %v2195_v46 = vmax.f32 %v1851_v35, 0.0  ;;  %v2197_v54 = vmax.f32 %v1856_v60, 0.0  ;;  %v1874_v23 = vadd.f32 %v6914_v47, %v6658_v6 }
 0x20e   :  { %v2671_v0 = vsel %vm57_vm2, %v2191_v14, 0.0  ;;  %v1699_v14 = vadd.f32 %v6914_v47, %v1698_v17  ;;  %v1861_v17 = vadd.f32 %v6914_v47, %v6573_v21 }
 0x20f   :  { %v2356_v41 = vsel %vm57_vm2, %v2046_v9, 0.0 }
 0x210   :  { %v2357_v42 = vadd.f32 %v2356_v41, %v2355_v53  ;;  %v7175_v53 = vadd.f32 %v6914_v47, %v6457_v50  ;;  %v7188_v41 = vadd.f32 %v6914_v47, %v6485_v4  ;;  %v2133_v50 = vmax.f32 %v1696_v29, 0.0  ;;  %v7212_v4 = vpop.f32.mrf.mxu3 }
 0x211   :  { %v1843_v59 = vpop.f32.mrf.mxu2  ;;  %v2134_v3 = vmax.f32 %v1699_v14, 0.0  ;;  %v2199_v22 = vmax.f32 %v1861_v17, 0.0  ;;  %v2683_v17 = vsel %vm57_vm2, %v2197_v54, 0.0  ;;  %v1951_v54 = vadd.f32 %v6914_v47, %v7145_v56 }
 0x212   :  { %v1844_v38 = vadd.f32 %v6914_v47, %v1843_v59  ;;  %v1480_v1 = vpop.f32.mrf.mxu0  ;;  %v7167_v58 = vpop.f32.mrf.mxu1  ;;  %v2672_v59 = vadd.f32 %v2671_v0, %v2670_v40  ;;  %v1701_v0 = vadd.f32 %v6914_v47, %v1700_v51  ;;  %v2147_v13 = vmax.f32 %v7188_v41, 0.0 }
 0x213   :  { %v1481_v12 = vadd.f32 %v6914_v47, %v1480_v1  ;;  %v2198_v51 = vmax.f32 %v1859_v19, 0.0  ;;  %v2681_v19 = vsel %vm57_vm2, %v2196_v57, 0.0 }
 0x214   :  { %v2192_v62 = vmax.f32 %v1844_v38, 0.0 }
 0x215   :  { %v2047_v9 = vmax.f32 %v1481_v12, 0.0  ;;  %v2194_v12 = vmax.f32 %v1849_v36, 0.0 }
 0x216   :  { %v2673_v38 = vsel %vm57_vm2, %v2192_v62, 0.0 }
 0x217   :  { %v2358_v11 = vsel %vm57_vm2, %v2047_v9, 0.0  ;;  %v2545_v9 = vsel %vm57_vm2, %v2133_v50, 0.0  ;;  %v2677_v35 = vsel %vm57_vm2, %v2194_v12, 0.0  ;;  %v2679_v50 = vsel %vm57_vm2, %v2195_v46, 0.0 }
 0x218   :  { %v2359_v1 = vadd.f32 %v2358_v11, %v2357_v42  ;;  %v2674_v11 = vadd.f32 %v2673_v38, %v2672_v59  ;;  %v2546_v14 = vadd.f32 %v2545_v9, %v7121_v30  ;;  %v2135_v59 = vmax.f32 %v1701_v0, 0.0 }
 0x219   :  { %v1845_v29 = vpop.f32.mrf.mxu2  ;;  %v2685_v30 = vsel %vm57_vm2, %v2198_v51, 0.0  ;;  %v1866_v0 = vadd.f32 %v6914_v47, %v6605_v61  ;;  %v1876_v51 = vadd.f32 %v6914_v47, %v6667_v28  ;;  %v2204_v28 = vmax.f32 %v1874_v23, 0.0 }
 0x21a   :  { %v1846_v42 = vadd.f32 %v6914_v47, %v1845_v29  ;;  %v1483_v62 = vpop.f32.mrf.mxu0  ;;  %v1708_v36 = vpop.f32.mrf.mxu1  ;;  %v2549_v57 = vsel %vm57_vm2, %v2135_v59, 0.0 }
 0x21b   :  { %v1484_v21 = vadd.f32 %v6914_v47, %v1483_v62  ;;  %v2547_v62 = vsel %vm57_vm2, %v2134_v3, 0.0  ;;  %v2201_v56 = vmax.f32 %v1866_v0, 0.0  ;;  %v2205_v0 = vmax.f32 %v1876_v51, 0.0 }
 0x21c   :  { %v2193_v40 = vmax.f32 %v1846_v42, 0.0  ;;  %v2548_v9 = vadd.f32 %v2547_v62, %v2546_v14  ;;  %v2235_v62 = vmax.f32 %v1951_v54, 0.0 }
 0x21d   :  { %v2048_v29 = vmax.f32 %v1484_v21, 0.0  ;;  %5048 = vmatmul.msk.bf16.gmra.mxu0 %vm960_vm1, %v5919_v31  ;;  %v1864_v31 = vadd.f32 %v6914_v47, %v6594_v44  ;;  %v2699_v23 = vsel %vm57_vm2, %v2205_v0, 0.0 }
 0x21e   :  { %v2675_v38 = vsel %vm57_vm2, %v2193_v40, 0.0  ;;  %v2687_v40 = vsel %vm57_vm2, %v2199_v22, 0.0 }
 0x21f   :  { %v2676_v60 = vadd.f32 %v2675_v38, %v2674_v11  ;;  %v2360_v12 = vsel %vm57_vm2, %v2048_v29, 0.0  ;;  %v1706_v11 = vadd.f32 %v6914_v47, %v7167_v58  ;;  %v2200_v61 = vmax.f32 %v1864_v31, 0.0  ;;  %v1960_v58 = vpop.f32.mrf.mxu3 }
 0x220   :  { %v2361_v46 = vadd.f32 %v2360_v12, %v2359_v1  ;;  %v2136_v1 = vmax.f32 %v1704_v5, 0.0  ;;  %v1879_v29 = vadd.f32 %v6914_v47, %v6688_v2  ;;  %v2550_v38 = vadd.f32 %v2549_v57, %v2548_v9 }
 0x221   :  { %v2678_v42 = vadd.f32 %v2677_v35, %v2676_v60  ;;  %v1871_v35 = vadd.f32 %v6914_v47, %v6637_v43  ;;  %v1709_v5 = vadd.f32 %v6914_v47, %v1708_v36  ;;  %v2137_v60 = vmax.f32 %v1706_v11, 0.0  ;;  %v5920_v36 = vld [vmem:[%s8647_s0 + $0x110] sm:$0xff] }
 0x222   :  { %v1485_v3 = vpop.f32.mrf.mxu0  ;;  %v1710_v44 = vpop.f32.mrf.mxu1  ;;  %v2551_v43 = vsel %vm57_vm2, %v2136_v1, 0.0  ;;  %v2689_v2 = vsel %vm57_vm2, %v2200_v61, 0.0  ;;  %v2764_v11 = vsel %vm57_vm2, %v2235_v62, 0.0  ;;  %v1954_v62 = vadd.f32 %v6914_v47, %v7150_v52  ;;  %v7286_v52 = vld [vmem:[%s8648_s2] ss:$0 sm:$0xff] }
 0x223   :  { %v2680_v22 = vadd.f32 %v2679_v50, %v2678_v42  ;;  %v1486_v21 = vadd.f32 %v6914_v47, %v1485_v3  ;;  %v2202_v50 = vmax.f32 %v1869_v45, 0.0  ;;  %v2203_v31 = vmax.f32 %v1871_v35, 0.0 }
 0x224   :  { %v7254_v45 = vadd.f32 %v6914_v47, %v6700_v37  ;;  %v2552_v57 = vadd.f32 %v2551_v43, %v2550_v38  ;;  %v2138_v54 = vmax.f32 %v1709_v5, 0.0  ;;  %v1711_v3 = vadd.f32 %v6914_v47, %v1710_v44 }
 0x225   :  { %v2682_v14 = vadd.f32 %v2681_v19, %v2680_v22  ;;  %v2049_v59 = vmax.f32 %v1486_v21, 0.0  ;;  %v2206_v19 = vmax.f32 %v1879_v29, 0.0  ;;  %v2553_v22 = vsel %vm57_vm2, %v2137_v60, 0.0 }
 0x226   :  { %v2695_v61 = vsel %vm57_vm2, %v2203_v31, 0.0  ;;  %v2697_v35 = vsel %vm57_vm2, %v2204_v28, 0.0  ;;  %v2207_v44 = vmax.f32 %v7254_v45, 0.0  ;;  %v1956_v5 = vadd.f32 %v6914_v47, %v7164_v33 }
 0x227   :  { %v2684_v12 = vadd.f32 %v2683_v17, %v2682_v14  ;;  %v2362_v6 = vsel %vm57_vm2, %v2049_v59, 0.0  ;;  %v2691_v17 = vsel %vm57_vm2, %v2201_v56, 0.0  ;;  %v2701_v51 = vsel %vm57_vm2, %v2206_v19, 0.0  ;;  %v1963_v60 = vpop.f32.mrf.mxu3 }
 0x228   :  { %v2363_v42 = vadd.f32 %v2362_v6, %v2361_v46  ;;  %v2554_v14 = vadd.f32 %v2553_v22, %v2552_v57  ;;  %v2555_v59 = vsel %vm57_vm2, %v2138_v54, 0.0  ;;  %v1959_v43 = vadd.f32 %v6914_v47, %v7212_v4 }
 0x229   :  { %v2686_v9 = vadd.f32 %v2685_v30, %v2684_v12  ;;  %v2693_v30 = vsel %vm57_vm2, %v2202_v50, 0.0  ;;  %v2139_v50 = vmax.f32 %v1711_v3, 0.0  ;;  %v1964_v31 = vadd.f32 %v6914_v47, %v1963_v60 }
 0x22a   :  { %v1488_v1 = vpop.f32.mrf.mxu0  ;;  %v1713_v46 = vpop.f32.mrf.mxu1  ;;  %v2236_v0 = vmax.f32 %v1954_v62, 0.0  ;;  %v2238_v19 = vmax.f32 %v1959_v43, 0.0  ;;  %v1884_v33 = vadd.f32 %v7286_v52, %v6721_v18  ;;  %v2556_v4 = vadd.f32 %v2555_v59, %v2554_v14 }
 0x22b   :  { %v2688_v21 = vadd.f32 %v2687_v40, %v2686_v9  ;;  %v1489_v37 = vadd.f32 %v6914_v47, %v1488_v1  ;;  %v2765_v40 = vadd.f32 %v2764_v11, %v7132_v26  ;;  %v1714_v6 = vadd.f32 %v6914_v47, %v1713_v46 }
 0x22c   :  { %v1961_v26 = vadd.f32 %v6914_v47, %v1960_v58  ;;  %v2557_v45 = vsel %vm57_vm2, %v2139_v50, 0.0  ;;  %v5173_v47 = vld [vmem:[%s8649_s3 + $0x30] sm:$0xf]  ;;  %v2766_v54 = vsel %vm57_vm2, %v2236_v0, 0.0  ;;  %v2240_v11 = vmax.f32 %v1964_v31, 0.0 }
 0x22d   :  { %v2690_v56 = vadd.f32 %v2689_v2, %v2688_v21  ;;  %v2050_v29 = vmax.f32 %v1489_v37, 0.0  ;;  %5049 = vmatmul.msk.bf16.gmra.mxu0 %vm960_vm1, %v5920_v36  ;;  %v2237_v2 = vmax.f32 %v1956_v5, 0.0  ;;  %v2767_v1 = vadd.f32 %v2766_v54, %v2765_v40 }
 0x22e   :  { %v2239_v18 = vmax.f32 %v1961_v26, 0.0  ;;  %v2140_v46 = vmax.f32 %v1714_v6, 0.0  ;;  %v2770_v21 = vsel %vm57_vm2, %v2238_v19, 0.0  ;;  %v2703_v59 = vsel %vm57_vm2, %v2207_v44, 0.0  ;;  %v5921_v44 = vld [vmem:[%s8647_s0 + $0x118] sm:$0xff] }
 0x22f   :  { %v2692_v38 = vadd.f32 %v2691_v17, %v2690_v56  ;;  %v2364_v12 = vsel %vm57_vm2, %v2050_v29, 0.0  ;;  %v6022_v17 = vld [vmem:[%s8649_s3 + $0x40] sm:$0xf0]  ;;  %v2768_v3 = vsel %vm57_vm2, %v2237_v2, 0.0  ;;  %v2208_v56 = vmax.f32 %v1884_v33, 0.0 }
 0x230   :  { %v2365_v9 = vadd.f32 %v2364_v12, %v2363_v42  ;;  %v2769_v29 = vadd.f32 %v2768_v3, %v2767_v1  ;;  %v1889_v40 = vadd.f32 %v7286_v52, %v6753_v34  ;;  %v2559_v5 = vsel %vm57_vm2, %v2140_v46, 0.0 }
 0x231   :  { %v2694_v28 = vadd.f32 %v2693_v30, %v2692_v38  ;;  %v5174_v30 = vor.u32 %v6022_v17, %v5173_v47  ;;  %v2772_v38 = vsel %vm57_vm2, %v2239_v18, 0.0  ;;  %v2774_v6 = vsel %vm57_vm2, %v2240_v11, 0.0 }
 0x232   :  { %v1490_v36 = vpop.f32.mrf.mxu0  ;;  %v1715_v58 = vpop.f32.mrf.mxu1  ;;  %v2771_v62 = vadd.f32 %v2770_v21, %v2769_v29  ;;  %v2705_v34 = vsel %vm57_vm2, %v2208_v56, 0.0  ;;  %v1891_v26 = vadd.f32 %v7286_v52, %v6764_v16  ;;  %v2210_v2 = vmax.f32 %v1889_v40, 0.0 }
 0x233   :  { %v2696_v57 = vadd.f32 %v2695_v61, %v2694_v28  ;;  %v1491_v42 = vadd.f32 %v7286_v52, %v1490_v36  ;;  %v1716_v37 = vadd.f32 %v7286_v52, %v1715_v58  ;;  %v1886_v61 = vadd.f32 %v7286_v52, %v6732_v55  ;;  %2950 = vmatpush.bf16.msrb.mxu3 %v5174_v30 }
 0x234   :  { %v2773_v31 = vadd.f32 %v2772_v38, %v2771_v62  ;;  %v2211_v3 = vmax.f32 %v1891_v26, 0.0  ;;  %v8687_v18 = vmax.f32 %v7184_v25, 0.0  ;;  %v1734_v46 = vadd.f32 %v7286_v52, %v6505_v15 }
 0x235   :  { %v2698_v22 = vadd.f32 %v2697_v35, %v2696_v57  ;;  %v2051_v14 = vmax.f32 %v1491_v42, 0.0  ;;  %v2558_v35 = vadd.f32 %v2557_v45, %v2556_v4  ;;  %v2141_v55 = vmax.f32 %v1716_v37, 0.0 }
 0x236   :  { %v1894_v4 = vadd.f32 %v7286_v52, %v6785_v48  ;;  %v1896_v45 = vadd.f32 %v7286_v52, %v6796_v49  ;;  %v7323_v36 = vadd.f32 %v2774_v6, %v2773_v31  ;;  %v8686_v57 = vmax.f32 %v7175_v53, 0.0 }
 0x237   :  { %v2700_v50 = vadd.f32 %v2699_v23, %v2698_v22  ;;  %v2366_v43 = vsel %vm57_vm2, %v2051_v14, 0.0  ;;  %v2209_v23 = vmax.f32 %v1886_v61, 0.0  ;;  %v2561_v16 = vsel %vm57_vm2, %v2141_v55, 0.0  ;;  %v1965_v61 = vpop.f32.mrf.mxu3 }
 0x238   :  { %v2367_v12 = vadd.f32 %v2366_v43, %v2365_v9  ;;  %v2560_v9 = vadd.f32 %v2559_v5, %v2558_v35  ;;  %v7330_v54 = vsel %vm57_vm2, %v8686_v57, 0.0  ;;  %v1899_v49 = vadd.f32 %v7286_v52, %v6817_v27  ;;  %v8688_v57 = vld [vmem:[#allocation16_spill] sm:$0xff] }
 0x239   :  { %v2702_v60 = vadd.f32 %v2701_v51, %v2700_v50  ;;  %v2707_v48 = vsel %vm57_vm2, %v2209_v23, 0.0  ;;  %v7338_v1 = vsel %vm57_vm2, %v8687_v18, 0.0  ;;  %v2709_v11 = vsel %vm57_vm2, %v2210_v2, 0.0 }
 0x23a   :  { %v1493_v28 = vpop.f32.mrf.mxu0  ;;  %v1718_v0 = vpop.f32.mrf.mxu1  ;;  %v2212_v22 = vmax.f32 %v1894_v4, 0.0  ;;  %v2562_v21 = vadd.f32 %v2561_v16, %v2560_v9  ;;  %v7347_v27 = vsel %vm57_vm2, %v2147_v13, 0.0  ;;  %v2213_v25 = vmax.f32 %v1896_v45, 0.0 }
 0x23b   :  { %v2704_v19 = vadd.f32 %v2703_v59, %v2702_v60  ;;  %v1494_v51 = vadd.f32 %v7286_v52, %v1493_v28  ;;  %v1719_v33 = vadd.f32 %v7286_v52, %v1718_v0  ;;  %v2711_v15 = vsel %vm57_vm2, %v2211_v3, 0.0 }
 0x23c   :  { %v2214_v29 = vmax.f32 %v1899_v49, 0.0  ;;  %v1901_v14 = vadd.f32 %v7286_v52, %v6828_v10  ;;  %v1966_v59 = vadd.f32 %v7286_v52, %v1965_v61  ;;  %v2148_v38 = vmax.f32 %v1734_v46, 0.0 }
 0x23d   :  { %v2706_v58 = vadd.f32 %v2705_v34, %v2704_v19  ;;  %v2052_v47 = vmax.f32 %v1494_v51, 0.0  ;;  %v2142_v17 = vmax.f32 %v1719_v33, 0.0  ;;  %5050 = vmatmul.msk.bf16.gmra.mxu0 %vm960_vm1, %v5921_v44  ;;  %v1736_v62 = vadd.f32 %v7286_v52, %v6517_v24 }
 0x23e   :  { %v2713_v5 = vsel %vm57_vm2, %v2212_v22, 0.0  ;;  %v1904_v43 = vadd.f32 %v7286_v52, %v6849_v7  ;;  %v2715_v10 = vsel %vm57_vm2, %v2213_v25, 0.0  ;;  %v2717_v44 = vsel %vm57_vm2, %v2214_v29, 0.0  ;;  %v8690_v25 = vld [vmem:[#allocation9_spill] sm:$0xff] }
 0x23f   :  { %v2708_v42 = vadd.f32 %v2707_v48, %v2706_v58  ;;  %v2368_v53 = vsel %vm57_vm2, %v2052_v47, 0.0  ;;  %v2563_v56 = vsel %vm57_vm2, %v2142_v17, 0.0  ;;  %v2215_v34 = vmax.f32 %v1901_v14, 0.0  ;;  %v1968_v49 = vpop.f32.mrf.mxu3 }
 0x240   :  { %v2369_v37 = vadd.f32 %v2368_v53, %v2367_v12  ;;  %v2564_v60 = vadd.f32 %v2563_v56, %v2562_v21  ;;  %v1906_v23 = vadd.f32 %v7286_v52, %v6860_v63  ;;  %v2241_v26 = vmax.f32 %v1966_v59, 0.0 }
 0x241   :  { %v2710_v30 = vadd.f32 %v2709_v11, %v2708_v42  ;;  %v1909_v24 = vadd.f32 %v7286_v52, %v6881_v20  ;;  %v2216_v0 = vmax.f32 %v1904_v43, 0.0  ;;  %v1911_v2 = vadd.f32 %v7286_v52, %v6892_v8  ;;  %v5922_v20 = vld [vmem:[%s8647_s0 + $0x120] sm:$0xff]  ;;  %v8689_v11 = vld [vmem:[#allocation17_spill] sm:$0xff] }
 0x242   :  { %v1495_v40 = vpop.f32.mrf.mxu0  ;;  %v1720_v50 = vpop.f32.mrf.mxu1  ;;  %v2575_v33 = vsel %vm57_vm2, %v2148_v38, 0.0  ;;  %v2149_v4 = vmax.f32 %v1736_v62, 0.0  ;;  %v1739_v63 = vadd.f32 %v7286_v52, %v6536_v39  ;;  %v2719_v9 = vsel %vm57_vm2, %v2215_v34, 0.0 }
 0x243   :  { %v2712_v41 = vadd.f32 %v2711_v15, %v2710_v30  ;;  %v1496_v13 = vadd.f32 %v7286_v52, %v1495_v40  ;;  %v1721_v35 = vadd.f32 %v7286_v52, %v1720_v50  ;;  %v2217_v58 = vmax.f32 %v1906_v23, 0.0 }
 0x244   :  { %v2776_v16 = vsel %vm57_vm2, %v2241_v26, 0.0  ;;  %v2218_v17 = vmax.f32 %v1909_v24, 0.0  ;;  %v1914_v48 = vadd.f32 %v7286_v52, %v8688_v57  ;;  %v2721_v18 = vsel %vm57_vm2, %v2216_v0, 0.0  ;;  %v5923_v57 = vld [vmem:[%s8647_s0 + $0x128] sm:$0xff] }
 0x245   :  { %v2714_v12 = vadd.f32 %v2713_v5, %v2712_v41  ;;  %v2053_v55 = vmax.f32 %v1496_v13, 0.0  ;;  %v2143_v6 = vmax.f32 %v1721_v35, 0.0  ;;  %v2219_v46 = vmax.f32 %v1911_v2, 0.0  ;;  %v8691_v41 = vld [vmem:[#allocation10_spill] sm:$0xff] }
 0x246   :  { %v1969_v53 = vadd.f32 %v7286_v52, %v1968_v49  ;;  %v1916_v22 = vadd.f32 %v7286_v52, %v8689_v11  ;;  %v2777_v21 = vadd.f32 %v2776_v16, %v7323_v36  ;;  %v1741_v30 = vadd.f32 %v7286_v52, %v8690_v25 }
 0x247   :  { %v2716_v31 = vadd.f32 %v2715_v10, %v2714_v12  ;;  %v2370_v28 = vsel %vm57_vm2, %v2053_v55, 0.0  ;;  %v2565_v7 = vsel %vm57_vm2, %v2143_v6, 0.0  ;;  %v2723_v56 = vsel %vm57_vm2, %v2217_v58, 0.0  ;;  %v8692_v55 = vld [vmem:[#allocation11_spill] sm:$0xff] }
 0x248   :  { %v2371_v19 = vadd.f32 %v2370_v28, %v2369_v37  ;;  %v2566_v51 = vadd.f32 %v2565_v7, %v2564_v60  ;;  %v2242_v15 = vmax.f32 %v1969_v53, 0.0  ;;  %v2220_v29 = vmax.f32 %v1914_v48, 0.0 }
 0x249   :  { %v2718_v45 = vadd.f32 %v2717_v44, %v2716_v31  ;;  %v2150_v40 = vmax.f32 %v1739_v63, 0.0  ;;  %v1744_v13 = vadd.f32 %v7286_v52, %v8691_v41  ;;  %v2727_v35 = vsel %vm57_vm2, %v2219_v46, 0.0  ;;  %v8693_v31 = vld [vmem:[#allocation12_spill] sm:$0xff] }
 0x24a   :  { %v2568_v8 = vadd.f32 %v7180_v32, %v2566_v51  ;;  %v1498_v47 = vpop.f32.mrf.mxu0  ;;  %v2778_v50 = vsel %vm57_vm2, %v2242_v15, 0.0  ;;  %v2221_v62 = vmax.f32 %v1916_v22, 0.0  ;;  %v2577_v5 = vsel %vm57_vm2, %v2149_v4, 0.0  ;;  %v8694_v4 = vld [vmem:[#allocation13_spill] sm:$0xff]  ;;  %v5924_v41 = vld [vmem:[%s8647_s0 + $0x130] sm:$0xff] }
 0x24b   :  { %v2720_v3 = vadd.f32 %v2719_v9, %v2718_v45  ;;  %v1499_v39 = vadd.f32 %v7286_v52, %v1498_v47  ;;  %v2151_v12 = vmax.f32 %v1741_v30, 0.0  ;;  %v2729_v6 = vsel %vm57_vm2, %v2220_v29, 0.0  ;;  %v8695_v47 = vld [vmem:[#allocation14_spill] sm:$0xff] }
 0x24c   :  { %v2570_v42 = vadd.f32 %v7330_v54, %v2568_v8  ;;  %v2725_v54 = vsel %vm57_vm2, %v2218_v17, 0.0  ;;  %v2579_v34 = vsel %vm57_vm2, %v2150_v40, 0.0  ;;  %v2152_v24 = vmax.f32 %v1744_v13, 0.0 }
 0x24d   :  { %v2722_v32 = vadd.f32 %v2721_v18, %v2720_v3  ;;  %v2054_v37 = vmax.f32 %v1499_v39, 0.0  ;;  %5051 = vmatmul.msk.bf16.gmra.mxu0 %vm960_vm1, %v5922_v20  ;;  %v1749_v28 = vadd.f32 %v7286_v52, %v8693_v31  ;;  %v2731_v7 = vsel %vm57_vm2, %v2221_v62, 0.0  ;;  %v8696_v18 = vld [vmem:[#allocation15_spill] sm:$0xff] }
 0x24e   :  { %v2572_v61 = vadd.f32 %v7338_v1, %v2570_v42  ;;  %v7401_v1 = vadd.f32 %v2778_v50, %v2777_v21  ;;  %v2581_v51 = vsel %vm57_vm2, %v2151_v12, 0.0  ;;  %v1751_v63 = vadd.f32 %v7286_v52, %v8694_v4 }
 0x24f   :  { %v2724_v14 = vadd.f32 %v2723_v56, %v2722_v32  ;;  %v2372_v59 = vsel %vm57_vm2, %v2054_v37, 0.0  ;;  %v2583_v16 = vsel %vm57_vm2, %v2152_v24, 0.0  ;;  %v2154_v8 = vmax.f32 %v1749_v28, 0.0  ;;  %v8697_v24 = vld [vmem:[#allocation18_spill] sm:$0xff] }
 0x250   :  { %v2574_v36 = vadd.f32 %v7347_v27, %v2572_v61  ;;  %v2373_v38 = vadd.f32 %v2372_v59, %v2371_v19  ;;  %v1746_v27 = vadd.f32 %v7286_v52, %v8692_v55  ;;  %v1754_v17 = vadd.f32 %v7286_v52, %v8695_v47 }
 0x251   :  { %v2726_v10 = vadd.f32 %v2725_v54, %v2724_v14  ;;  %v2155_v39 = vmax.f32 %v1751_v63, 0.0  ;;  %v1756_v46 = vadd.f32 %v7286_v52, %v8696_v18  ;;  %v2587_v11 = vsel %vm57_vm2, %v2154_v8, 0.0  ;;  %v5926_v63 = vld [vmem:[%s8647_s0 + $0x140] sm:$0xff] }
 0x252   :  { %v2576_v43 = vadd.f32 %v2575_v33, %v2574_v36  ;;  %v1500_v60 = vpop.f32.mrf.mxu0  ;;  %v2153_v33 = vmax.f32 %v1746_v27, 0.0  ;;  %v2156_v22 = vmax.f32 %v1754_v17, 0.0  ;;  %v2319_v31 = vrot.slane %v8697_v24, 4 }
 0x253   :  { %v1501_v44 = vadd.f32 %v7286_v52, %v1500_v60  ;;  %v2728_v26 = vadd.f32 %v2727_v35, %v2726_v10  ;;  %v2589_v37 = vsel %vm57_vm2, %v2155_v39, 0.0  ;;  %v2157_v25 = vmax.f32 %v1756_v46, 0.0 }
 0x254   :  { %v2578_v23 = vadd.f32 %v2577_v5, %v2576_v43  ;;  %v2585_v49 = vsel %vm57_vm2, %v2153_v33, 0.0  ;;  %v2591_v15 = vsel %vm57_vm2, %v2156_v22, 0.0 }
 0x255   :  { %v2055_v0 = vmax.f32 %v1501_v44, 0.0  ;;  %v2730_v19 = vadd.f32 %v2729_v6, %v2728_v26  ;;  %v2593_v14 = vsel %vm57_vm2, %v2157_v25, 0.0  ;;  %v5925_v6 = vld [vmem:[%s8647_s0 + $0x138] sm:$0xff] }
 0x256   :  { %v2580_v2 = vadd.f32 %v2579_v34, %v2578_v23 }
 0x257   :  { %v2374_v45 = vsel %vm57_vm2, %v2055_v0, 0.0  ;;  %v7416_v58 = vadd.f32 %v2731_v7, %v2730_v19 }
 0x258   :  { %v2582_v20 = vadd.f32 %v2581_v51, %v2580_v2  ;;  %v2375_v9 = vadd.f32 %v2374_v45, %v2373_v38  ;;  %v2320_v2 = vadd.f32 %v2319_v31, %v8697_v24 }
 0x25a   :  { %v2584_v48 = vadd.f32 %v2583_v16, %v2582_v20  ;;  %v1503_v3 = vpop.f32.mrf.mxu0  ;;  %v2321_v33 = vrot.slane %v2320_v2, 2 }
 0x25b   :  { %v1504_v42 = vadd.f32 %v7286_v52, %v1503_v3 }
 0x25c   :  { %v2586_v53 = vadd.f32 %v2585_v49, %v2584_v48 }
 0x25d   :  { %v2056_v32 = vmax.f32 %v1504_v42, 0.0  ;;  %5052 = vmatmul.msk.bf16.gmra.mxu0 %vm960_vm1, %v5923_v57 }
 0x25e   :  { %v2588_v21 = vadd.f32 %v2587_v11, %v2586_v53 }
 0x25f   :  { %v2376_v30 = vsel %vm57_vm2, %v2056_v32, 0.0 }
 0x260   :  { %v2590_v56 = vadd.f32 %v2589_v37, %v2588_v21  ;;  %v2377_v61 = vadd.f32 %v2376_v30, %v2375_v9  ;;  %v2322_v9 = vadd.f32 %v2321_v33, %v2320_v2  ;;  %v5927_v21 = vld [vmem:[%s8647_s0 + $0x148] sm:$0xff] }
 0x262   :  { %v2592_v54 = vadd.f32 %v2591_v15, %v2590_v56  ;;  %v1505_v29 = vpop.f32.mrf.mxu0  ;;  %v2323_v17 = vrot.slane %v2322_v9, 1 }
 0x263   :  { %v1506_v59 = vadd.f32 %v7286_v52, %v1505_v29 }
 0x264   :  { %v7435_v40 = vadd.f32 %v2593_v14, %v2592_v54  ;;  %v2324_v18 = vadd.f32 %v2323_v17, %v2322_v9 }
 0x265   :  { %v2057_v36 = vmax.f32 %v1506_v59, 0.0 }
 0x267   :  { %v2378_v50 = vsel %vm57_vm2, %v2057_v36, 0.0  ;;  %v5928_v36 = vld [vmem:[%s8647_s0 + $0x150] sm:$0xff] }
 0x268   :  { %v2379_v38 = vadd.f32 %v2378_v50, %v2377_v61 }
 0x26a   :  { %v1508_v13 = vpop.f32.mrf.mxu0 }
 0x26b   :  { %v1509_v35 = vadd.f32 %v7286_v52, %v1508_v13 }
 0x26d   :  { %v2058_v62 = vmax.f32 %v1509_v35, 0.0  ;;  %5053 = vmatmul.msk.bf16.gmra.mxu0 %vm960_vm1, %v5924_v41 }
 0x26f   :  { %v2380_v5 = vsel %vm57_vm2, %v2058_v62, 0.0  ;;  %v5145_v62 = vld [vmem:[%s8649_s3] sm:$0xf] }
 0x270   :  { %v2381_v43 = vadd.f32 %v2380_v5, %v2379_v38  ;;  %v6016_v5 = vld [vmem:[%s8649_s3 + $0x10] sm:$0xf0] }
 0x272   :  { %v1510_v60 = vpop.f32.mrf.mxu0 }
 0x273   :  { %v1511_v10 = vadd.f32 %v7286_v52, %v1510_v60 }
 0x275   :  { %v2059_v12 = vmax.f32 %v1511_v10, 0.0 }
 0x277   :  { %v2382_v55 = vsel %vm57_vm2, %v2059_v12, 0.0 }
 0x278   :  { %v2383_v27 = vadd.f32 %v2382_v55, %v2381_v43  ;;  %v5146_v43 = vor.u32 %v6016_v5, %v5145_v62 }
 0x27a   :  { %v1513_v44 = vpop.f32.mrf.mxu0  ;;  %2925 = vmatpush.bf16.msrb.mxu1 %v5146_v43  ;;  %v6019_v43 = vld [vmem:[%s8649_s3 + $0x2c] sm:$0xf] }
 0x27b   :  { %v1514_v34 = vadd.f32 %v7286_v52, %v1513_v44 }
 0x27d   :  { %v2060_v23 = vmax.f32 %v1514_v34, 0.0  ;;  %5054 = vmatmul.msk.bf16.gmra.mxu0 %vm960_vm1, %v5925_v6  ;;  %v5929_v6 = vld [vmem:[%s8647_s0 + $0x158] sm:$0xff] }
 0x27f   :  { %v2384_v26 = vsel %vm57_vm2, %v2060_v23, 0.0 }
 0x280   :  { %v2385_v28 = vadd.f32 %v2384_v26, %v2383_v27 }
 0x282   :  { %v1515_v7 = vpop.f32.mrf.mxu0 }
 0x283   :  { %v1516_v0 = vadd.f32 %v7286_v52, %v1515_v7 }
 0x285   :  { %v2061_v19 = vmax.f32 %v1516_v0, 0.0 }
 0x287   :  { %v2386_v51 = vsel %vm57_vm2, %v2061_v19, 0.0  ;;  %v5930_v19 = vld [vmem:[%s8647_s0 + $0x160] sm:$0xff] }
 0x288   :  { %v2387_v4 = vadd.f32 %v2386_v51, %v2385_v28 }
 0x28a   :  { %v2388_v45 = vrot.slane %v2387_v4, 4  ;;  %v1518_v20 = vpop.f32.mrf.mxu0 }
 0x28b   :  { %v1519_v47 = vadd.f32 %v7286_v52, %v1518_v20 }
 0x28c   :  { %v2389_v16 = vadd.f32 %v2388_v45, %v2387_v4 }
 0x28d   :  { %5055 = vmatmul.msk.bf16.gmra.mxu0 %vm960_vm1, %v5926_v63  ;;  %v2062_v49 = vmax.f32 %v1519_v47, 0.0 }
 0x28e   :  { %v2390_v8 = vrot.slane %v2389_v16, 2 }
 0x28f   :  { %v2394_v11 = vsel %vm57_vm2, %v2062_v49, 0.0 }
 0x290   :  { %v2391_v57 = vadd.f32 %v2390_v8, %v2389_v16 }
 0x292   :  { %v2392_v48 = vrot.slane %v2391_v57, 1  ;;  %v1520_v3 = vpop.f32.mrf.mxu0 }
 0x293   :  { %v1521_v39 = vadd.f32 %v7286_v52, %v1520_v3 }
 0x294   :  { %v2393_v46 = vadd.f32 %v2392_v48, %v2391_v57 }
 0x295   :  { %v2063_v42 = vmax.f32 %v1521_v39, 0.0 }
 0x296   :  { %v7462_v53 = vsel %vm2816_vm3, %v2393_v46, %v2324_v18 }
 0x297   :  { %v2395_v22 = vsel %vm57_vm2, %v2063_v42, 0.0 }
 0x298   :  { %v2396_v32 = vadd.f32 %v2395_v22, %v2394_v11 }
 0x29a   :  { %v1523_v37 = vpop.f32.mrf.mxu0 }
 0x29b   :  { %v1524_v25 = vadd.f32 %v7286_v52, %v1523_v37 }
 0x29d   :  { %v2064_v30 = vmax.f32 %v1524_v25, 0.0  ;;  %5056 = vmatmul.msk.bf16.gmra.mxu0 %vm960_vm1, %v5927_v21 }
 0x29f   :  { %v2397_v56 = vsel %vm57_vm2, %v2064_v30, 0.0 }
 0x2a0   :  { %v2398_v61 = vadd.f32 %v2397_v56, %v2396_v32  ;;  %v1970_v32 = vpop.f32.mrf.mxu3 }
 0x2a2   :  { %v1525_v15 = vpop.f32.mrf.mxu0 }
 0x2a3   :  { %v1526_v54 = vadd.f32 %v7286_v52, %v1525_v15 }
 0x2a5   :  { %v2065_v29 = vmax.f32 %v1526_v54, 0.0 }
 0x2a7   :  { %v2399_v14 = vsel %vm57_vm2, %v2065_v29, 0.0 }
 0x2a8   :  { %v2400_v59 = vadd.f32 %v2399_v14, %v2398_v61  ;;  %v1973_v15 = vpop.f32.mrf.mxu3 }
 0x2aa   :  { %v1528_v50 = vpop.f32.mrf.mxu0 }
 0x2ab   :  { %v1529_v38 = vadd.f32 %v7286_v52, %v1528_v50 }
 0x2ad   :  { %v2066_v41 = vmax.f32 %v1529_v38, 0.0  ;;  %5057 = vmatmul.msk.bf16.gmra.mxu0 %vm960_vm1, %v5928_v36 }
 0x2af   :  { %v2401_v13 = vsel %vm57_vm2, %v2066_v41, 0.0 }
 0x2b0   :  { %v2402_v35 = vadd.f32 %v2401_v13, %v2400_v59  ;;  %v1975_v38 = vpop.f32.mrf.mxu3 }
 0x2b2   :  { %v1530_v60 = vpop.f32.mrf.mxu0 }
 0x2b3   :  { %v1531_v10 = vadd.f32 %v7286_v52, %v1530_v60  ;;  %v5167_v60 = vld [vmem:[%s8649_s3 + $0x3c] sm:$0xf0] }
 0x2b5   :  { %v2067_v12 = vmax.f32 %v1531_v10, 0.0  ;;  %v5153_v10 = vld [vmem:[%s8649_s3 + $0x8] sm:$0xf] }
 0x2b7   :  { %v2403_v55 = vsel %vm57_vm2, %v2067_v12, 0.0  ;;  %v5170_v12 = vor.u32 %v6019_v43, %v5167_v60 }
 0x2b8   :  { %v2404_v27 = vadd.f32 %v2403_v55, %v2402_v35  ;;  %v1978_v62 = vpop.f32.mrf.mxu3  ;;  %v6017_v55 = vld [vmem:[%s8649_s3 + $0x18] sm:$0xf0] }
 0x2b9   :  { %2937 = vmatpush.bf16.msrb.mxu2 %v5170_v12 }
 0x2ba   :  { %v1533_v44 = vpop.f32.mrf.mxu0 }
 0x2bb   :  { %v1534_v34 = vadd.f32 %v7286_v52, %v1533_v44 }
 0x2bd   :  { %v2068_v23 = vmax.f32 %v1534_v34, 0.0  ;;  %5058 = vmatmul.msk.bf16.gmra.mxu0 %vm960_vm1, %v5929_v6  ;;  %v5154_v6 = vor.u32 %v6017_v55, %v5153_v10 }
 0x2bf   :  { %v2405_v26 = vsel %vm57_vm2, %v2068_v23, 0.0  ;;  %2951 = vmatpush.bf16.msrb.mxu3 %v5154_v6 }
 0x2c0   :  { %v2406_v24 = vadd.f32 %v2405_v26, %v2404_v27  ;;  %v1980_v44 = vpop.f32.mrf.mxu3 }
 0x2c2   :  { %v1535_v31 = vpop.f32.mrf.mxu0 }
 0x2c3   :  { %v1536_v28 = vadd.f32 %v7286_v52, %v1535_v31  ;;  %v1971_v31 = vadd.f32 %v7286_v52, %v1970_v32 }
 0x2c5   :  { %v2069_v7 = vmax.f32 %v1536_v28, 0.0 }
 0x2c7   :  { %v2407_v0 = vsel %vm57_vm2, %v2069_v7, 0.0  ;;  %v2243_v7 = vmax.f32 %v1971_v31, 0.0 }
 0x2c8   :  { %v2408_v2 = vadd.f32 %v2407_v0, %v2406_v24  ;;  %v1983_v23 = vpop.f32.mrf.mxu3  ;;  %v1974_v0 = vadd.f32 %v7286_v52, %v1973_v15 }
 0x2ca   :  { %v1538_v51 = vpop.f32.mrf.mxu0 }
 0x2cb   :  { %v1539_v33 = vadd.f32 %v7286_v52, %v1538_v51  ;;  %v2780_v51 = vsel %vm57_vm2, %v2243_v7, 0.0 }
 0x2cd   :  { %v2070_v4 = vmax.f32 %v1539_v33, 0.0  ;;  %5059 = vmatmul.msk.bf16.gmra.mxu0 %vm960_vm1, %v5930_v19  ;;  %v6213_v19 = vmov 0.0   ;;  %v2244_v33 = vmax.f32 %v1974_v0, 0.0 }
 0x2ce   :  { %58 = vst.msk [vmem:[#allocation2] sm:$0xff] %vm57_vm2, %v6213_v19 }
 0x2cf   :  { %v2409_v63 = vsel %vm57_vm2, %v2070_v4, 0.0  ;;  %v1976_v4 = vadd.f32 %v7286_v52, %v1975_v38 }
 0x2d0   :  { %v2410_v45 = vadd.f32 %v2409_v63, %v2408_v2  ;;  %v1985_v24 = vpop.f32.mrf.mxu3 }
 0x2d2   :  { %v1540_v20 = vpop.f32.mrf.mxu0 }
 0x2d3   :  { %v1541_v9 = vadd.f32 %v7286_v52, %v1540_v20  ;;  %v2782_v20 = vsel %vm57_vm2, %v2244_v33, 0.0 }
 0x2d5   :  { %v2071_v16 = vmax.f32 %v1541_v9, 0.0  ;;  %v2245_v9 = vmax.f32 %v1976_v4, 0.0  ;;  %v8698_v4 = vld [vmem:[#allocation20_spill] sm:$0xff] }
 0x2d7   :  { %v2411_v8 = vsel %vm57_vm2, %v2071_v16, 0.0  ;;  %v1979_v16 = vadd.f32 %v7286_v52, %v1978_v62 }
 0x2d8   :  { %v2412_v47 = vadd.f32 %v2411_v8, %v2410_v45  ;;  %v1988_v2 = vpop.f32.mrf.mxu3  ;;  %v2781_v45 = vadd.f32 %v2780_v51, %v7401_v1 }
 0x2d9   :  { %v1989_v10 = vadd.f32 %v7286_v52, %v1988_v2 }
 0x2da   :  { %v1543_v17 = vpop.f32.mrf.mxu0  ;;  %v2783_v8 = vadd.f32 %v2782_v20, %v2781_v45 }
 0x2db   :  { %v1544_v57 = vadd.f32 %v7286_v52, %v1543_v17  ;;  %v2784_v17 = vsel %vm57_vm2, %v2245_v9, 0.0  ;;  %v2250_v31 = vmax.f32 %v1989_v10, 0.0  ;;  %v8703_v10 = vld [vmem:[#allocation6_spill] sm:$0xff] }
 0x2dd   :  { %v2072_v48 = vmax.f32 %v1544_v57, 0.0  ;;  %v2246_v57 = vmax.f32 %v1979_v16, 0.0  ;;  %v2794_v16 = vsel %vm57_vm2, %v2250_v31, 0.0 }
 0x2df   :  { %v2413_v3 = vsel %vm57_vm2, %v2072_v48, 0.0  ;;  %v1981_v48 = vadd.f32 %v7286_v52, %v1980_v44 }
 0x2e0   :  { %v2414_v49 = vadd.f32 %v2413_v3, %v2412_v47 }
 0x2e2   :  { %v1545_v39 = vpop.f32.mrf.mxu0 }
 0x2e3   :  { %v1546_v18 = vadd.f32 %v7286_v52, %v1545_v39 }
 0x2e5   :  { %v2073_v46 = vmax.f32 %v1546_v18, 0.0  ;;  %v2785_v18 = vadd.f32 %v2784_v17, %v2783_v8 }
 0x2e7   :  { %v2415_v42 = vsel %vm57_vm2, %v2073_v46, 0.0 }
 0x2e8   :  { %v2416_v11 = vadd.f32 %v2415_v42, %v2414_v49  ;;  %v1990_v49 = vpop.f32.mrf.mxu3  ;;  %v2786_v42 = vsel %vm57_vm2, %v2246_v57, 0.0  ;;  %v8699_v57 = vld [vmem:[#allocation22_spill] sm:$0xff] }
 0x2ea   :  { %v1548_v22 = vpop.f32.mrf.mxu0 }
 0x2eb   :  { %v1549_v21 = vadd.f32 %v7286_v52, %v1548_v22  ;;  %v1984_v22 = vadd.f32 %v7286_v52, %v1983_v23 }
 0x2ed   :  { %v2074_v37 = vmax.f32 %v1549_v21, 0.0  ;;  %v2248_v15 = vmax.f32 %v1984_v22, 0.0 }
 0x2ef   :  { %v2417_v25 = vsel %vm57_vm2, %v2074_v37, 0.0  ;;  %v2787_v37 = vadd.f32 %v2786_v42, %v2785_v18  ;;  %v2790_v43 = vsel %vm57_vm2, %v2248_v15, 0.0  ;;  %v8700_v18 = vld [vmem:[#allocation3_spill] sm:$0xff] }
 0x2f0   :  { %v2418_v30 = vadd.f32 %v2417_v25, %v2416_v11  ;;  %v2247_v11 = vmax.f32 %v1981_v48, 0.0  ;;  %v1836_v48 = vadd.f32 %v7286_v52, %v8699_v57 }
 0x2f2   :  { %v1550_v56 = vpop.f32.mrf.mxu0  ;;  %v2189_v15 = vmax.f32 %v1836_v48, 0.0  ;;  %v2595_v48 = vrot.slane %v7435_v40, 4 }
 0x2f3   :  { %v1551_v61 = vadd.f32 %v7286_v52, %v1550_v56 }
 0x2f5   :  { %v2075_v54 = vmax.f32 %v1551_v61, 0.0  ;;  %v2788_v61 = vsel %vm57_vm2, %v2247_v11, 0.0 }
 0x2f6   :  { %v2789_v38 = vadd.f32 %v2788_v61, %v2787_v37 }
 0x2f7   :  { %v2419_v29 = vsel %vm57_vm2, %v2075_v54, 0.0  ;;  %v1986_v54 = vadd.f32 %v7286_v52, %v1985_v24 }
 0x2f8   :  { %v2420_v14 = vadd.f32 %v2419_v29, %v2418_v30 }
 0x2f9   :  { %v2249_v60 = vmax.f32 %v1986_v54, 0.0 }
 0x2fa   :  { %v1553_v59 = vpop.f32.mrf.mxu0 }
 0x2fb   :  { %v1554_v36 = vadd.f32 %v7286_v52, %v1553_v59  ;;  %v2792_v24 = vsel %vm57_vm2, %v2249_v60, 0.0 }
 0x2fd   :  { %v2076_v50 = vmax.f32 %v1554_v36, 0.0 }
 0x2ff   :  { %v2421_v41 = vsel %vm57_vm2, %v2076_v50, 0.0 }
 0x300   :  { %v2422_v13 = vadd.f32 %v2421_v41, %v2420_v14  ;;  %v1993_v41 = vpop.f32.mrf.mxu3 }
 0x302   :  { %v1555_v35 = vpop.f32.mrf.mxu0 }
 0x303   :  { %v1556_v47 = vadd.f32 %v7286_v52, %v1555_v35 }
 0x305   :  { %v2077_v46 = vmax.f32 %v1556_v47, 0.0  ;;  %v1994_v47 = vadd.f32 %v7286_v52, %v1993_v41 }
 0x307   :  { %v2423_v25 = vsel %vm57_vm2, %v2077_v46, 0.0  ;;  %v1584_v46 = vadd.f32 %v7286_v52, %v8700_v18 }
 0x308   :  { %v2424_v50 = vadd.f32 %v2423_v25, %v2422_v13  ;;  %v2791_v13 = vadd.f32 %v2790_v43, %v2789_v38 }
 0x30a   :  { %v1558_v5 = vpop.f32.mrf.mxu0  ;;  %v2793_v45 = vadd.f32 %v2792_v24, %v2791_v13 }
 0x30b   :  { %v1559_v39 = vadd.f32 %v7286_v52, %v1558_v5 }
 0x30c   :  { %v2795_v11 = vadd.f32 %v2794_v16, %v2793_v45 }
 0x30d   :  { %v2078_v32 = vmax.f32 %v1559_v39, 0.0 }
 0x30f   :  { %v2425_v14 = vsel %vm57_vm2, %v2078_v32, 0.0 }
 0x310   :  { %v2426_v12 = vadd.f32 %v2425_v14, %v2424_v50  ;;  %v2088_v14 = vmax.f32 %v1584_v46, 0.0 }
 0x312   :  { %v1560_v27 = vpop.f32.mrf.mxu0 }
 0x313   :  { %v1561_v1 = vadd.f32 %v7286_v52, %v1560_v27 }
 0x315   :  { %v2079_v30 = vmax.f32 %v1561_v1, 0.0 }
 0x317   :  { %v2427_v35 = vsel %vm57_vm2, %v2079_v30, 0.0 }
 0x318   :  { %v2428_v44 = vadd.f32 %v2427_v35, %v2426_v12  ;;  %v1591_v12 = vadd.f32 %v7286_v52, %v8703_v10 }
 0x31a   :  { %v1563_v34 = vpop.f32.mrf.mxu0 }
 0x31b   :  { %v1564_v21 = vadd.f32 %v7286_v52, %v1563_v34 }
 0x31d   :  { %v2080_v59 = vmax.f32 %v1564_v21, 0.0  ;;  %v2252_v21 = vmax.f32 %v1994_v47, 0.0 }
 0x31f   :  { %v2429_v55 = vsel %vm57_vm2, %v2080_v59, 0.0 }
 0x320   :  { %v2430_v7 = vadd.f32 %v2429_v55, %v2428_v44  ;;  %v2662_v55 = vsel %vm57_vm2, %v2189_v15, 0.0 }
 0x322   :  { %v1565_v26 = vpop.f32.mrf.mxu0 }
 0x323   :  { %v1566_v56 = vadd.f32 %v7286_v52, %v1565_v26 }
 0x325   :  { %v2081_v62 = vmax.f32 %v1566_v56, 0.0  ;;  %v8701_v56 = vld [vmem:[#allocation4_spill] sm:$0xff] }
 0x326   :  { %v1586_v61 = vadd.f32 %v7286_v52, %v8701_v56 }
 0x327   :  { %v2431_v34 = vsel %vm57_vm2, %v2081_v62, 0.0  ;;  %v2798_v62 = vsel %vm57_vm2, %v2252_v21, 0.0 }
 0x328   :  { %v2432_v33 = vadd.f32 %v2431_v34, %v2430_v7  ;;  %v2089_v60 = vmax.f32 %v1586_v61, 0.0  ;;  %v8704_v34 = vld [vmem:[#allocation7_spill] sm:$0xff] }
 0x32a   :  { %v1568_v28 = vpop.f32.mrf.mxu0 }
 0x32b   :  { %v1569_v36 = vadd.f32 %v7286_v52, %v1568_v28  ;;  %v1991_v28 = vadd.f32 %v7286_v52, %v1990_v49 }
 0x32d   :  { %v2082_v27 = vmax.f32 %v1569_v36, 0.0  ;;  %v2251_v8 = vmax.f32 %v1991_v28, 0.0  ;;  %v8702_v36 = vld [vmem:[#allocation5_spill] sm:$0xff] }
 0x32e   :  { %v1589_v50 = vadd.f32 %v7286_v52, %v8702_v36  ;;  %v8706_v28 = vld [vmem:[#allocation21_spill] sm:$0xff] }
 0x32f   :  { %v2433_v2 = vsel %vm57_vm2, %v2082_v27, 0.0  ;;  %v2796_v32 = vsel %vm57_vm2, %v2251_v8, 0.0  ;;  %v2663_v7 = vadd.f32 %v2662_v55, %v8706_v28 }
 0x330   :  { %v2434_v17 = vadd.f32 %v2433_v2, %v2432_v33  ;;  %v2797_v38 = vadd.f32 %v2796_v32, %v2795_v11  ;;  %v2090_v13 = vmax.f32 %v1589_v50, 0.0  ;;  %v2447_v33 = vsel %vm57_vm2, %v2089_v60, 0.0  ;;  %v6023_v50 = vld [vmem:[%s8649_s3 + $0x48] sm:$0xf0]  ;;  %v6018_v60 = vld [vmem:[%s8649_s3 + $0x20] sm:$0xf0] }
 0x331   :  { %v2664_v57 = vrot.slane %v2663_v7, 4 }
 0x332   :  { %v1570_v63 = vpop.f32.mrf.mxu0  ;;  %v2799_v31 = vadd.f32 %v2798_v62, %v2797_v38  ;;  %v2449_v16 = vsel %vm57_vm2, %v2090_v13, 0.0  ;;  %v6015_v38 = vld [vmem:[%s8649_s3 + $0xc] sm:$0xf] }
 0x333   :  { %v1571_v5 = vadd.f32 %v7286_v52, %v1570_v63  ;;  %v1676_v63 = vadd.f32 %v7286_v52, %v8698_v4  ;;  %v2091_v4 = vmax.f32 %v1591_v12, 0.0  ;;  %v2665_v11 = vadd.f32 %v2664_v57, %v2663_v7 }
 0x335   :  { %v2083_v23 = vmax.f32 %v1571_v5, 0.0  ;;  %v2125_v42 = vmax.f32 %v1676_v63, 0.0  ;;  %v8707_v63 = vld [vmem:[#allocation8_spill] sm:$0xff]  ;;  %v2666_v61 = vrot.slane %v2665_v11, 2 }
 0x336   :  { %v1596_v45 = vadd.f32 %v7286_v52, %v8707_v63 }
 0x337   :  { %v2435_v20 = vsel %vm57_vm2, %v2083_v23, 0.0  ;;  %v2524_v35 = vsel %vm57_vm2, %v2125_v42, 0.0  ;;  %v1594_v23 = vadd.f32 %v7286_v52, %v8704_v34 }
 0x338   :  { %v2436_v1 = vadd.f32 %v2435_v20, %v2434_v17  ;;  %v2093_v18 = vmax.f32 %v1596_v45, 0.0 }
 0x339   :  { %v2092_v8 = vmax.f32 %v1594_v23, 0.0 }
 0x33a   :  { %v1573_v3 = vpop.f32.mrf.mxu0 }
 0x33b   :  { %v1574_v6 = vadd.f32 %v7286_v52, %v1573_v3  ;;  %v1995_v3 = vpop.f32.mrf.mxu3 }
 0x33c   :  { %v1996_v37 = vadd.f32 %v7286_v52, %v1995_v3 }
 0x33d   :  { %v2084_v19 = vmax.f32 %v1574_v6, 0.0  ;;  %v2445_v6 = vsel %vm57_vm2, %v2088_v14, 0.0  ;;  %v6020_v14 = vld [vmem:[%s8649_s3 + $0x34] sm:$0xf] }
 0x33e   :  { %v2253_v5 = vmax.f32 %v1996_v37, 0.0  ;;  %v2455_v37 = vsel %vm57_vm2, %v2093_v18, 0.0 }
 0x33f   :  { %v2437_v49 = vsel %vm57_vm2, %v2084_v19, 0.0  ;;  %v6014_v19 = vld [vmem:[%s8649_s3 + $0x4] sm:$0xf] }
 0x340   :  { %v2438_v25 = vadd.f32 %v2437_v49, %v2436_v1  ;;  %v2733_v49 = vrot.slane %v7416_v58, 4 }
 0x342   :  { %v1575_v29 = vpop.f32.mrf.mxu0  ;;  %v2734_v21 = vadd.f32 %v2733_v49, %v7416_v58  ;;  %v5181_v58 = vld [vmem:[%s8649_s3 + $0x38] sm:$0xf] }
 0x343   :  { %v1576_v26 = vadd.f32 %v7286_v52, %v1575_v29 }
 0x345   :  { %v2085_v9 = vmax.f32 %v1576_v26, 0.0  ;;  %v8705_v26 = vld [vmem:[#allocation19_spill] sm:$0xff] }
 0x346   :  { %v2525_v24 = vadd.f32 %v2524_v35, %v8705_v26 }
 0x347   :  { %v2439_v22 = vsel %vm57_vm2, %v2085_v9, 0.0 }
 0x348   :  { %v2440_v59 = vadd.f32 %v2439_v22, %v2438_v25  ;;  %v2526_v47 = vrot.slane %v2525_v24, 4  ;;  %v2596_v22 = vadd.f32 %v2595_v48, %v7435_v40  ;;  %v5175_v40 = vld [vmem:[%s8649_s3 + $0x44] sm:$0xf0] }
 0x349   :  { %v5178_v36 = vor.u32 %v6020_v14, %v5175_v40  ;;  %v6029_v48 = vld [vmem:[%s8650_s5 + $0x28] sm:$0xff]  ;;  %v5552_v14 = vld [vmem:[%s8651_s11 + $0x260] sm:$0xf]  ;;  %v6116_v40 = vld [vmem:[%s8651_s11 + $0x26c] sm:$0xf0] }
 0x34a   :  { %v1578_v0 = vpop.f32.mrf.mxu0  ;;  %v2527_v1 = vadd.f32 %v2526_v47, %v2525_v24  ;;  %v2597_v15 = vrot.slane %v2596_v22, 2  ;;  %v6031_v47 = vld [vmem:[%s8650_s5 + $0x38] sm:$0xff] }
 0x34b   :  { %v1579_v51 = vadd.f32 %v7286_v52, %v1578_v0  ;;  %v2800_v0 = vsel %vm57_vm2, %v2253_v5, 0.0  ;;  %v5182_v5 = vor.u32 %v6023_v50, %v5181_v58  ;;  %2963 = vmatpush.bf16.msra.mxu1 %v5178_v36  ;;  %3061 = vmatpush.bf16.msra.mxu3 %v6031_v47  ;;  %v5553_v58 = vor.u32 %v6116_v40, %v5552_v14  ;;  %v6112_v36 = vld [vmem:[%s8651_s11 + $0x24c] sm:$0xf0]  ;;  %v5426_v47 = vld [vmem:[%s8651_s11 + $0x170] sm:$0xf0] }
 0x34c   :  { %v2801_v17 = vadd.f32 %v2800_v0, %v2799_v31  ;;  %v2598_v10 = vadd.f32 %v2597_v15, %v2596_v22  ;;  %v6024_v22 = vld [vmem:[%s8650_s5] sm:$0xff]  ;;  %v5336_v40 = vld [vmem:[%s8651_s11 + $0xa8] sm:$0xf] }
 0x34d   :  { %v2086_v39 = vmax.f32 %v1579_v51, 0.0  ;;  %v5147_v51 = vld [vmem:[%s8649_s3 + $0x14] sm:$0xf0]  ;;  %v5568_v15 = vld [vmem:[%s8651_s11 + $0x280] sm:$0xf] }
 0x34e   :  { %v5150_v20 = vor.u32 %v6014_v19, %v5147_v51  ;;  %v2802_v42 = vrot.slane %v2801_v17, 4  ;;  %v2599_v24 = vrot.slane %v2598_v10, 1 }
 0x34f   :  { %v2441_v54 = vsel %vm57_vm2, %v2086_v39, 0.0  ;;  %v2451_v39 = vsel %vm57_vm2, %v2091_v4, 0.0 }
 0x350   :  { %v2442_v43 = vadd.f32 %v2441_v54, %v2440_v59  ;;  %2938 = vmatpush.bf16.msrb.mxu2 %v5150_v20  ;;  %v2803_v56 = vadd.f32 %v2802_v42, %v2801_v17  ;;  %v2600_v19 = vadd.f32 %v2599_v24, %v2598_v10  ;;  %v5616_v42 = vld [vmem:[%s8651_s11 + $0x2e0] sm:$0xf] }
 0x352   :  { %v1580_v30 = vpop.f32.mrf.mxu0  ;;  %v2804_v62 = vrot.slane %v2803_v56, 2 }
 0x353   :  { %v1581_v29 = vadd.f32 %v7286_v52, %v1580_v30  ;;  %v2453_v52 = vsel %vm57_vm2, %v2092_v8, 0.0  ;;  %v2528_v30 = vrot.slane %v2527_v1, 2 }
 0x354   :  { %2976 = vmatpush.bf16.msra.mxu2 %v5182_v5  ;;  %v2805_v23 = vadd.f32 %v2804_v62, %v2803_v56  ;;  %v6124_v56 = vld [vmem:[%s8651_s11 + $0x2ac] sm:$0xf0]  ;;  %v5504_v62 = vld [vmem:[%s8651_s11 + $0x200] sm:$0xf] }
 0x355   :  { %v2087_v41 = vmax.f32 %v1581_v29, 0.0  ;;  %v2735_v29 = vrot.slane %v2734_v21, 2  ;;  %v2529_v35 = vadd.f32 %v2528_v30, %v2527_v1  ;;  %v6025_v1 = vld [vmem:[%s8650_s5 + $0x8] sm:$0xff]  ;;  %v5584_v30 = vld [vmem:[%s8651_s11 + $0x2a0] sm:$0xf] }
 0x356   :  { %v6104_v5 = vld [vmem:[%s8651_s11 + $0x20c] sm:$0xf0] }
 0x357   :  { %v2443_v27 = vsel %vm57_vm2, %v2087_v41, 0.0  ;;  %v5155_v41 = vld [vmem:[%s8649_s3 + $0x1c] sm:$0xf0]  ;;  %v2736_v13 = vadd.f32 %v2735_v29, %v2734_v21  ;;  %v2530_v34 = vrot.slane %v2529_v35, 1 }
 0x358   :  { %v2444_v44 = vadd.f32 %v2443_v27, %v2442_v43  ;;  %v5161_v43 = vld [vmem:[%s8649_s3 + $0x10] sm:$0xf]  ;;  %v5158_v55 = vor.u32 %v6015_v38, %v5155_v41  ;;  %v2667_v27 = vadd.f32 %v2666_v61, %v2665_v11  ;;  %v5600_v21 = vld [vmem:[%s8651_s11 + $0x2c0] sm:$0xf]  ;;  %v5585_v61 = vor.u32 %v6124_v56, %v5584_v30 }
 0x359   :  { %v2737_v7 = vrot.slane %v2736_v13, 1  ;;  %v2531_v0 = vadd.f32 %v2530_v34, %v2529_v35  ;;  %v6132_v11 = vld [vmem:[%s8651_s11 + $0x2ec] sm:$0xf0]  ;;  %v5520_v38 = vld [vmem:[%s8651_s11 + $0x220] sm:$0xf] }
 0x35a   :  { %v2446_v2 = vadd.f32 %v2445_v6, %v2444_v44  ;;  %v5162_v6 = vor.u32 %v6018_v60, %v5161_v43  ;;  %2964 = vmatpush.bf16.msra.mxu1 %v5158_v55  ;;  %v2668_v31 = vrot.slane %v2667_v27, 1  ;;  %v6108_v41 = vld [vmem:[%s8651_s11 + $0x22c] sm:$0xf0]  ;;  %v5505_v43 = vor.u32 %v6104_v5, %v5504_v62  ;;  %v7714_v60 = vld [vmem:[%s8652_s4] sm:$0x1f] }
 0x35b   :  { %v2738_v63 = vadd.f32 %v2737_v7, %v2736_v13  ;;  %v5521_v35 = vor.u32 %v6108_v41, %v5520_v38  ;;  %v2853_v10 = vperm.slane %v7714_v60, 0  ;;  %v5304_v41 = vld [vmem:[%s8651_s11 + $0x68] sm:$0xf] }
 0x35c   :  { %v2448_v9 = vadd.f32 %v2447_v33, %v2446_v2  ;;  %2977 = vmatpush.bf16.msra.mxu2 %v5162_v6  ;;  %v2806_v2 = vrot.slane %v2805_v23, 1  ;;  %v2669_v33 = vadd.f32 %v2668_v31, %v2667_v27  ;;  %v6098_v27 = vld [vmem:[%s8651_s11 + $0x1e4] sm:$0xf]  ;;  %v5490_v6 = vld [vmem:[%s8651_s11 + $0x1f0] sm:$0xf0] }
 0x35d   :  { %v5493_v13 = vor.u32 %v6098_v27, %v5490_v6  ;;  %v5288_v5 = vld [vmem:[%s8651_s11 + $0x48] sm:$0xf]  ;;  %v6045_v27 = vld [vmem:[%s8651_s11 + $0x34] sm:$0xf0] }
 0x35e   :  { %v2450_v3 = vadd.f32 %v2449_v16, %v2448_v9  ;;  %v2807_v20 = vadd.f32 %v2806_v2, %v2805_v23  ;;  %v2254_v9 = vld [vmem:[#allocation2] sm:$0xff]  ;;  %v5458_v2 = vld [vmem:[%s8651_s11 + $0x1b0] sm:$0xf0] }
 0x35f   :  { %v6094_v23 = vld [vmem:[%s8651_s11 + $0x1c4] sm:$0xf] }
 0x360   :  { %v2452_v46 = vadd.f32 %v2451_v39, %v2450_v3  ;;  %v6028_v3 = vld [vmem:[%s8650_s5 + $0x20] sm:$0xff] }
 0x362   :  { %v2454_v32 = vadd.f32 %v2453_v52, %v2452_v46  ;;  %v6027_v46 = vld [vmem:[%s8650_s5 + $0x18] sm:$0xff]  ;;  %v6026_v52 = vld [vmem:[%s8650_s5 + $0x10] sm:$0xff] }
 0x364   :  { %v2456_v25 = vadd.f32 %v2455_v37, %v2454_v32  ;;  %v5617_v32 = vor.u32 %v6132_v11, %v5616_v42  ;;  %v6128_v37 = vld [vmem:[%s8651_s11 + $0x2cc] sm:$0xf0] }
 0x366   :  { %v2457_v54 = vrot.slane %v2456_v25, 4 }
 0x368   :  { %v2458_v59 = vadd.f32 %v2457_v54, %v2456_v25  ;;  %v5601_v25 = vor.u32 %v6128_v37, %v5600_v21  ;;  %v6120_v54 = vld [vmem:[%s8651_s11 + $0x28c] sm:$0xf0]  ;;  %v5368_v37 = vld [vmem:[%s8651_s11 + $0xe8] sm:$0xf] }
 0x369   :  { %v5569_v29 = vor.u32 %v6120_v54, %v5568_v15  ;;  %v5352_v15 = vld [vmem:[%s8651_s11 + $0xc8] sm:$0xf]  ;;  %v6065_v54 = vld [vmem:[%s8651_s11 + $0xd4] sm:$0xf0] }
 0x36a   :  { %v2459_v12 = vrot.slane %v2458_v59, 2  ;;  %v5353_v14 = vor.u32 %v6065_v54, %v5352_v15 }
 0x36c   :  { %v2460_v44 = vadd.f32 %v2459_v12, %v2458_v59  ;;  %v5536_v59 = vld [vmem:[%s8651_s11 + $0x240] sm:$0xf] }
 0x36d   :  { %v5537_v50 = vor.u32 %v6112_v36, %v5536_v59  ;;  %v5320_v36 = vld [vmem:[%s8651_s11 + $0x88] sm:$0xf] }
 0x36e   :  { %v2461_v26 = vrot.slane %v2460_v44, 1 }
 0x370   :  { %v2462_v28 = vadd.f32 %v2461_v26, %v2460_v44  ;;  %v5474_v26 = vld [vmem:[%s8651_s11 + $0x1d0] sm:$0xf0] }
 0x371   :  { %v5477_v7 = vor.u32 %v6094_v23, %v5474_v26  ;;  %v5752_v23 = vld [vmem:[%s8651_s11 + $0x3e8] sm:$0xf]  ;;  %v6165_v26 = vld [vmem:[%s8651_s11 + $0x3f4] sm:$0xf0] }
 0x372   :  { %v2819_v51 = vsel %vm2818_vm4, %v2462_v28, %v7462_v53  ;;  %v6030_v53 = vld [vmem:[%s8650_s5 + $0x30] sm:$0xff] }
 0x373   :  { %v2821_v4 = vsel %vm2820_vm5, %v2531_v0, %v2819_v51  ;;  %3062 = vmatpush.bf16.msra.mxu3 %v6030_v53  ;;  %v6090_v0 = vld [vmem:[%s8651_s11 + $0x1a4] sm:$0xf]  ;;  %v2856_v51 = vperm.slane %v7714_v60, 3 }
 0x374   :  { %v2823_v45 = vsel %vm2822_vm6, %v2600_v19, %v2821_v4  ;;  %v5461_v19 = vor.u32 %v6090_v0, %v5458_v2  ;;  %v5442_v4 = vld [vmem:[%s8651_s11 + $0x190] sm:$0xf0]  ;;  %v6161_v0 = vld [vmem:[%s8651_s11 + $0x3d4] sm:$0xf0] }
 0x375   :  { %v2825_v16 = vsel %vm2824_vm7, %v2669_v33, %v2823_v45  ;;  %v6086_v33 = vld [vmem:[%s8651_s11 + $0x184] sm:$0xf] }
 0x376   :  { %v2827_v8 = vsel %vm2826_vm8, %v2738_v63, %v2825_v16 }
 0x377   :  { %v2829_v17 = vsel %vm2828_vm9, %v2807_v20, %v2827_v8  ;;  %3063 = vmatpush.bf16.msra.mxu3 %v6029_v48  ;;  %v6082_v8 = vld [vmem:[%s8651_s11 + $0x164] sm:$0xf] }
 0x378   :  { %v2831_v57 = vadd.f32 %v2829_v17, %v2254_v9  ;;  %v5445_v9 = vor.u32 %v6086_v33, %v5442_v4  ;;  %v6078_v48 = vld [vmem:[%s8651_s11 + $0x144] sm:$0xf]  ;;  %v6157_v33 = vld [vmem:[%s8651_s11 + $0x3b4] sm:$0xf0] }
 0x37a   :  { %2832 = vst.msk [vmem:[#allocation2] sm:$0xff] %vm57_vm2, %v2831_v57  ;;  %v5429_v57 = vor.u32 %v6082_v8, %v5426_v47  ;;  %v6149_v8 = vld [vmem:[%s8651_s11 + $0x374] sm:$0xf0]  ;;  %v6034_v47 = vld [vmem:[%s8654_s7 + $0x10] sm:$0xff] }
 0x37b   :  { %3064 = vmatpush.bf16.msra.mxu3 %v6028_v3  ;;  %v5410_v3 = vld [vmem:[%s8651_s11 + $0x150] sm:$0xf0] }
 0x37f   :  { %3065 = vmatpush.bf16.msra.mxu3 %v6027_v46  ;;  %v2855_v46 = vperm.slane %v7714_v60, 2 }
 0x381   :  { %v2836_v49 = vld [vmem:[#allocation2] sm:$0xff] }
 0x382   :  { %v2837_v39 = vmul.f32 0.00390625, %v2836_v49 }
 0x383   :  { %3066 = vmatpush.bf16.msra.mxu3 %v6026_v52  ;;  %v6074_v52 = vld [vmem:[%s8651_s11 + $0x124] sm:$0xf] }
 0x384   :  { %v2838_v18 = vpack.c.bf16 %v2837_v39, %v2837_v39 }
 0x386   :  { %5183 = vmatmul.msk.bf16.vlgmr.msrb.gmra.mxu1 %vm57_vm2, %v2838_v18  ;;  %5184 = vmatmul.msk.bf16.vlgmr.msrb.gmra.mxu2 %vm57_vm2, %v2838_v18 }
 0x387   :  { %5185 = vmatmul.msk.bf16.vlgmr.msrb.gmra.mxu3 %vm57_vm2, %v2838_v18 }
 0x388   :  { %3067 = vmatpush.bf16.msra.mxu3 %v6025_v1  ;;  %v5394_v1 = vld [vmem:[%s8651_s11 + $0x130] sm:$0xf0] }
 0x389   :  { %v5397_v42 = vor.u32 %v6074_v52, %v5394_v1  ;;  %v2857_v52 = vperm.slane %v7714_v60, 4  ;;  %v6032_v1 = vld [vmem:[%s8654_s7] sm:$0xff] }
 0x38c   :  { %3068 = vmatpush.bf16.msra.mxu3 %v6024_v22  ;;  %v6070_v22 = vld [vmem:[%s8651_s11 + $0x104] sm:$0xf] }
 0x390   :  { %3992 = vmatpush.bf16.msrb.mxu3 %v5617_v32  ;;  %v5378_v32 = vld [vmem:[%s8651_s11 + $0x110] sm:$0xf0] }
 0x391   :  { %v5381_v30 = vor.u32 %v6070_v22, %v5378_v32 }
 0x394   :  { %3993 = vmatpush.bf16.msrb.mxu3 %v5601_v25  ;;  %v6069_v25 = vld [vmem:[%s8651_s11 + $0xf4] sm:$0xf0] }
 0x396   :  { %5186 = vmatmul.msk.bf16.vlgmr.msra.gmra.mxu1 %vm57_vm2, %v2838_v18  ;;  %5187 = vmatmul.msk.bf16.vlgmr.msra.gmra.mxu2 %vm57_vm2, %v2838_v18  ;;  %v5413_v18 = vor.u32 %v6078_v48, %v5410_v3  ;;  %v6145_v48 = vld [vmem:[%s8651_s11 + $0x354] sm:$0xf0]  ;;  %v6033_v3 = vld [vmem:[%s8654_s7 + $0x8] sm:$0xff] }
 0x398   :  { %3994 = vmatpush.bf16.msrb.mxu3 %v5585_v61  ;;  %v5369_v61 = vor.u32 %v6069_v25, %v5368_v37  ;;  %v6137_v37 = vld [vmem:[%s8651_s11 + $0x314] sm:$0xf0]  ;;  %v5344_v25 = vld [vmem:[%s8651_s11 + $0xc0] sm:$0xf] }
 0x39c   :  { %3995 = vmatpush.bf16.msrb.mxu3 %v5569_v29 }
 0x3a0   :  { %3996 = vmatpush.bf16.msrb.mxu3 %v5553_v58  ;;  %v6061_v58 = vld [vmem:[%s8651_s11 + $0xb4] sm:$0xf0] }
 0x3a1   :  { %v5337_v59 = vor.u32 %v6061_v58, %v5336_v40  ;;  %v5328_v40 = vld [vmem:[%s8651_s11 + $0xa0] sm:$0xf]  ;;  %v6060_v58 = vld [vmem:[%s8651_s11 + $0xac] sm:$0xf0] }
 0x3a4   :  { %3997 = vmatpush.bf16.msrb.mxu3 %v5537_v50  ;;  %v6057_v50 = vld [vmem:[%s8651_s11 + $0x94] sm:$0xf0] }
 0x3a5   :  { %v5321_v38 = vor.u32 %v6057_v50, %v5320_v36  ;;  %v5610_v36 = vld [vmem:[%s8651_s11 + $0x2d8] sm:$0xf0]  ;;  %v5329_v50 = vor.u32 %v6060_v58, %v5328_v40  ;;  %v5664_v58 = vld [vmem:[%s8651_s11 + $0x340] sm:$0xf] }
 0x3a8   :  { %3998 = vmatpush.bf16.msrb.mxu3 %v5521_v35  ;;  %v6053_v35 = vld [vmem:[%s8651_s11 + $0x74] sm:$0xf0] }
 0x3a9   :  { %v5305_v62 = vor.u32 %v6053_v35, %v5304_v41  ;;  %v6056_v41 = vld [vmem:[%s8651_s11 + $0x8c] sm:$0xf0] }
 0x3ac   :  { %3999 = vmatpush.bf16.msrb.mxu3 %v5505_v43  ;;  %v6049_v43 = vld [vmem:[%s8651_s11 + $0x54] sm:$0xf0] }
 0x403   :  { %v2927_v12 = vpop.f32.mrf.mxu1 }
 0x404   :  { %v2928_v55 = vadd.f32 %v2927_v12, %v2853_v10  ;;  %v5289_v10 = vor.u32 %v6049_v43, %v5288_v5  ;;  %v2854_v12 = vperm.slane %v7714_v60, 1  ;;  %v5640_v60 = vld [vmem:[%s8651_s11 + $0x308] sm:$0xf]  ;;  %v5296_v43 = vld [vmem:[%s8651_s11 + $0x60] sm:$0xf] }
 0x405   :  { %v5641_v15 = vor.u32 %v6137_v37, %v5640_v60  ;;  %v5712_v37 = vld [vmem:[%s8651_s11 + $0x3a0] sm:$0xf] }
 0x406   :  { %v2983_v44 = vmax.f32 %v2928_v55, 0.0  ;;  %v5272_v55 = vld [vmem:[%s8651_s11 + $0x28] sm:$0xf] }
 0x407   :  { %v5273_v6 = vor.u32 %v6045_v27, %v5272_v55  ;;  %v5594_v55 = vld [vmem:[%s8651_s11 + $0x2b8] sm:$0xf0] }
 0x408   :  { %v2988_v34 = vpack.c.bf16 %v2983_v44, %v2983_v44 }
 0x409   :  { %v7729_v24 = vpop.f32.mrf.mxu2 }
 0x40a   :  { %v2953_v31 = vpop.f32.mrf.mxu3  ;;  %3069 = vmatmul.bf16.vlgmr.msra.gmra.mxu3 %v2988_v34  ;;  %v2941_v44 = vadd.f32 %v7729_v24, %v2854_v12  ;;  %v6041_v34 = vld [vmem:[%s8651_s11 + $0x14] sm:$0xf0]  ;;  %v5753_v24 = vor.u32 %v6165_v26, %v5752_v23  ;;  %v6123_v12 = vld [vmem:[%s8651_s11 + $0x2ac] sm:$0xf]  ;;  %v5578_v23 = vld [vmem:[%s8651_s11 + $0x298] sm:$0xf0] }
 0x40b   :  { %4031 = vmatpush.bf16.msra.mxu3 %v5493_v13  ;;  %v2929_v28 = vpop.f32.mrf.mxu1  ;;  %v2954_v11 = vadd.f32 %v2953_v31, %v2855_v46  ;;  %v5256_v13 = vld [vmem:[%s8651_s11 + $0x8] sm:$0xf]  ;;  %v6141_v46 = vld [vmem:[%s8651_s11 + $0x334] sm:$0xf0] }
 0x40c   :  { %v5257_v31 = vor.u32 %v6041_v34, %v5256_v13  ;;  %v2984_v28 = vmax.f32 %v2941_v44, 0.0  ;;  %v5280_v44 = vld [vmem:[%s8651_s11 + $0x40] sm:$0xf]  ;;  %v6048_v13 = vld [vmem:[%s8651_s11 + $0x4c] sm:$0xf0] }
 0x40d   :  { %v2985_v56 = vmax.f32 %v2954_v11, 0.0  ;;  %v6068_v11 = vld [vmem:[%s8651_s11 + $0xec] sm:$0xf0]  ;;  %v6119_v34 = vld [vmem:[%s8651_s11 + $0x28c] sm:$0xf]  ;;  %v5281_v26 = vor.u32 %v6048_v13, %v5280_v44 }
 0x40e   :  { %v7839_v2 = vpack.c.bf16 %v2984_v28, %v2984_v28  ;;  %v6115_v28 = vld [vmem:[%s8651_s11 + $0x26c] sm:$0xf]  ;;  %v6126_v44 = vld [vmem:[%s8651_s11 + $0x2c4] sm:$0xf]  ;;  %v5602_v13 = vld [vmem:[%s8651_s11 + $0x2d0] sm:$0xf0] }
 0x40f   :  { %4032 = vmatpush.bf16.msra.mxu3 %v5477_v7  ;;  %v7786_v29 = vpack.c.bf16 %v2985_v56, %v2985_v56  ;;  %v5736_v7 = vld [vmem:[%s8651_s11 + $0x3c8] sm:$0xf]  ;;  %v6131_v56 = vld [vmem:[%s8651_s11 + $0x2ec] sm:$0xf] }
 0x411   :  { %v2942_v63 = vpop.f32.mrf.mxu2 }
 0x412   :  { %v2955_v45 = vpop.f32.mrf.mxu3  ;;  %v5704_v63 = vld [vmem:[%s8651_s11 + $0x388] sm:$0xf] }
 0x413   :  { %4033 = vmatpush.bf16.msra.mxu3 %v5461_v19  ;;  %v2966_v20 = vpop.f32.mrf.mxu1  ;;  %v5737_v19 = vor.u32 %v6161_v0, %v5736_v7  ;;  %v6153_v45 = vld [vmem:[%s8651_s11 + $0x394] sm:$0xf0]  ;;  %v5264_v0 = vld [vmem:[%s8651_s11 + $0x20] sm:$0xf] }
 0x414   :  { %v2967_v16 = vadd.f32 %v2966_v20, %v2856_v51  ;;  %v5720_v51 = vld [vmem:[%s8651_s11 + $0x3a8] sm:$0xf]  ;;  %v6035_v20 = vld [vmem:[%s8654_s7 + $0x18] sm:$0xff] }
 0x415   :  { %v5721_v4 = vor.u32 %v6157_v33, %v5720_v51  ;;  %3120 = vmatpush.bf16.msrb.mxu1 %v6035_v20  ;;  %v6111_v51 = vld [vmem:[%s8651_s11 + $0x24c] sm:$0xf]  ;;  %v5546_v33 = vld [vmem:[%s8651_s11 + $0x258] sm:$0xf0]  ;;  %v6040_v20 = vld [vmem:[%s8651_s11 + $0xc] sm:$0xf0] }
 0x416   :  { %v2986_v17 = vmax.f32 %v2967_v16, 0.0  ;;  %v5688_v16 = vld [vmem:[%s8651_s11 + $0x368] sm:$0xf] }
 0x417   :  { %4034 = vmatpush.bf16.msra.mxu3 %v5445_v9  ;;  %v5705_v9 = vor.u32 %v6153_v45, %v5704_v63  ;;  %v5549_v63 = vor.u32 %v6111_v51, %v5546_v33  ;;  %v5248_v45 = vld [vmem:[%s8651_s11] sm:$0xf]  ;;  %v5554_v51 = vld [vmem:[%s8651_s11 + $0x270] sm:$0xf0] }
 0x418   :  { %v7750_v53 = vpack.c.bf16 %v2986_v17, %v2986_v17  ;;  %v5689_v17 = vor.u32 %v6149_v8, %v5688_v16  ;;  %v5530_v16 = vld [vmem:[%s8651_s11 + $0x238] sm:$0xf0]  ;;  %v5249_v8 = vor.u32 %v6040_v20, %v5248_v45  ;;  %v6106_v20 = vld [vmem:[%s8651_s11 + $0x224] sm:$0xf] }
 0x419   :  { %v7758_v49 = vpop.f32.mrf.mxu2  ;;  %3121 = vmatpush.bf16.msrb.mxu1 %v6034_v47 }
 0x41a   :  { %4000 = vmatmul.bf16.vlgmr.msrb.gmra.mxu3 %v7750_v53 }
 0x41b   :  { %4035 = vmatpush.bf16.msra.mxu3 %v5429_v57  ;;  %v2968_v39 = vpop.f32.mrf.mxu1  ;;  %v5672_v57 = vld [vmem:[%s8651_s11 + $0x348] sm:$0xf] }
 0x41c   :  { %v5673_v39 = vor.u32 %v6145_v48, %v5672_v57  ;;  %v5514_v57 = vld [vmem:[%s8651_s11 + $0x218] sm:$0xf0] }
 0x41d   :  { %3122 = vmatpush.bf16.msrb.mxu1 %v6033_v3  ;;  %v6203_v3 = vld [vmem:[%s8653_s6] ss:$0 sm:$0xff] }
 0x41f   :  { %4036 = vmatpush.bf16.msra.mxu3 %v5413_v18  ;;  %v5656_v18 = vld [vmem:[%s8651_s11 + $0x328] sm:$0xf] }
 0x420   :  { %v5657_v32 = vor.u32 %v6141_v46, %v5656_v18  ;;  %v5744_v46 = vld [vmem:[%s8651_s11 + $0x3e0] sm:$0xf] }
 0x421   :  { %v2981_v21 = vpop.f32.mrf.mxu2  ;;  %3123 = vmatpush.bf16.msrb.mxu1 %v6032_v1 }
 0x422   :  { %v2980_v21 = vadd.f32 %v7758_v49, %v2857_v52  ;;  %v5626_v49 = vld [vmem:[%s8651_s11 + $0x2f8] sm:$0xf0]  ;;  %v6164_v52 = vld [vmem:[%s8651_s11 + $0x3ec] sm:$0xf0] }
 0x423   :  { %4037 = vmatpush.bf16.msra.mxu3 %v5397_v42  ;;  %v5360_v42 = vld [vmem:[%s8651_s11 + $0xe0] sm:$0xf] }
 0x424   :  { %v5361_v22 = vor.u32 %v6068_v11, %v5360_v42  ;;  %v2987_v54 = vmax.f32 %v2980_v21, 0.0  ;;  %v5745_v42 = vor.u32 %v6164_v52, %v5744_v46  ;;  %v6097_v46 = vld [vmem:[%s8651_s11 + $0x1d4] sm:$0xf0] }
 0x426   :  { %3966 = vmatpush.bf16.msra.mxu1 %v5361_v22  ;;  %v7928_v35 = vpack.c.bf16 %v2987_v54, %v2987_v54  ;;  %v5728_v22 = vld [vmem:[%s8651_s11 + $0x3c0] sm:$0xf] }
 0x427   :  { %4038 = vmatpush.bf16.msra.mxu3 %v5381_v30  ;;  %v6064_v30 = vld [vmem:[%s8651_s11 + $0xcc] sm:$0xf0]  ;;  %v5680_v54 = vld [vmem:[%s8651_s11 + $0x360] sm:$0xf] }
 0x42a   :  { %4039 = vmatmul.bf16.vlgmr.msra.gmra.mxu3 %v7786_v29 }
 0x42b   :  { %4070 = vmatpush.bf16.msrb.mxu3 %v5369_v61  ;;  %v5345_v61 = vor.u32 %v6064_v30, %v5344_v25  ;;  %v6156_v25 = vld [vmem:[%s8651_s11 + $0x3ac] sm:$0xf0] }
 0x42c   :  { %v5713_v30 = vor.u32 %v6156_v25, %v5712_v37  ;;  %v5432_v25 = vld [vmem:[%s8651_s11 + $0x168] sm:$0xf] }
 0x42d   :  { %3967 = vmatpush.bf16.msra.mxu1 %v5345_v61 }
 0x42f   :  { %4071 = vmatpush.bf16.msrb.mxu3 %v5353_v14  ;;  %v5629_v14 = vor.u32 %v6131_v56, %v5626_v49  ;;  %v5696_v56 = vld [vmem:[%s8651_s11 + $0x380] sm:$0xf]  ;;  %v6152_v49 = vld [vmem:[%s8651_s11 + $0x38c] sm:$0xf0] }
 0x431   :  { %3968 = vmatpush.bf16.msra.mxu1 %v5329_v50 }
 0x433   :  { %4072 = vmatpush.bf16.msrb.mxu3 %v5337_v59  ;;  %v6127_v59 = vld [vmem:[%s8651_s11 + $0x2cc] sm:$0xf] }
 0x437   :  { %4073 = vmatpush.bf16.msrb.mxu3 %v5321_v38  ;;  %v5312_v38 = vld [vmem:[%s8651_s11 + $0x80] sm:$0xf] }
 0x438   :  { %v5313_v5 = vor.u32 %v6056_v41, %v5312_v38  ;;  %v5648_v38 = vld [vmem:[%s8651_s11 + $0x320] sm:$0xf]  ;;  %v6140_v41 = vld [vmem:[%s8651_s11 + $0x32c] sm:$0xf0] }
 0x43a   :  { %3969 = vmatpush.bf16.msra.mxu1 %v5313_v5  ;;  %v5632_v5 = vld [vmem:[%s8651_s11 + $0x300] sm:$0xf] }
 0x43b   :  { %4074 = vmatpush.bf16.msrb.mxu3 %v5305_v62  ;;  %v5613_v62 = vor.u32 %v6127_v59, %v5610_v36  ;;  %v6144_v59 = vld [vmem:[%s8651_s11 + $0x34c] sm:$0xf0] }
 0x43c   :  { %v5665_v50 = vor.u32 %v6144_v59, %v5664_v58  ;;  %v6081_v58 = vld [vmem:[%s8651_s11 + $0x154] sm:$0xf0]  ;;  %v5472_v59 = vld [vmem:[%s8651_s11 + $0x1c0] sm:$0xf] }
 0x43f   :  { %4075 = vmatpush.bf16.msrb.mxu3 %v5289_v10  ;;  %v6052_v10 = vld [vmem:[%s8651_s11 + $0x6c] sm:$0xf0] }
 0x440   :  { %v5297_v27 = vor.u32 %v6052_v10, %v5296_v43  ;;  %v6136_v43 = vld [vmem:[%s8651_s11 + $0x30c] sm:$0xf0]  ;;  %v6130_v10 = vld [vmem:[%s8651_s11 + $0x2e4] sm:$0xf] }
 0x442   :  { %3970 = vmatpush.bf16.msra.mxu1 %v5297_v27  ;;  %v5633_v27 = vor.u32 %v6136_v43, %v5632_v5  ;;  %v5456_v5 = vld [vmem:[%s8651_s11 + $0x1a0] sm:$0xf]  ;;  %v6092_v43 = vld [vmem:[%s8651_s11 + $0x1ac] sm:$0xf0] }
 0x443   :  { %4076 = vmatpush.bf16.msrb.mxu3 %v5273_v6  ;;  %v5597_v6 = vor.u32 %v6123_v12, %v5594_v55  ;;  %v5618_v12 = vld [vmem:[%s8651_s11 + $0x2f0] sm:$0xf0] }
 0x446   :  { %3971 = vmatpush.bf16.msra.mxu1 %v5281_v26  ;;  %v5586_v26 = vld [vmem:[%s8651_s11 + $0x2b0] sm:$0xf0] }
 0x447   :  { %4077 = vmatpush.bf16.msrb.mxu3 %v5257_v31  ;;  %v5581_v31 = vor.u32 %v6119_v34, %v5578_v23  ;;  %v5605_v34 = vor.u32 %v6126_v44, %v5602_v13  ;;  %v6122_v23 = vld [vmem:[%s8651_s11 + $0x2a4] sm:$0xf]  ;;  %v5440_v44 = vld [vmem:[%s8651_s11 + $0x180] sm:$0xf]  ;;  %v6088_v13 = vld [vmem:[%s8651_s11 + $0x18c] sm:$0xf0] }
 0x44a   :  { %4078 = vmatmul.bf16.vlgmr.msrb.gmra.mxu3 %v7839_v2 }
 0x44b   :  { %4109 = vmatpush.bf16.msra.mxu3 %v5753_v24  ;;  %v5562_v24 = vld [vmem:[%s8651_s11 + $0x278] sm:$0xf0] }
 0x44c   :  { %v5565_v7 = vor.u32 %v6115_v28, %v5562_v24  ;;  %v5589_v28 = vor.u32 %v6122_v23, %v5586_v26  ;;  %v6118_v24 = vld [vmem:[%s8651_s11 + $0x284] sm:$0xf]  ;;  %v5370_v23 = vld [vmem:[%s8651_s11 + $0xf8] sm:$0xf0]  ;;  %v5441_v26 = vor.u32 %v6088_v13, %v5440_v44 }
 0x44d   :  { %v6066_v13 = vld [vmem:[%s8651_s11 + $0xe4] sm:$0xf] }
 0x44f   :  { %4110 = vmatpush.bf16.msra.mxu3 %v5737_v19  ;;  %v6044_v19 = vld [vmem:[%s8651_s11 + $0x2c] sm:$0xf0] }
 0x453   :  { %4111 = vmatpush.bf16.msra.mxu3 %v5721_v4  ;;  %v5265_v4 = vor.u32 %v6044_v19, %v5264_v0  ;;  %v6114_v19 = vld [vmem:[%s8651_s11 + $0x264] sm:$0xf] }
 0x454   :  { %v5557_v33 = vor.u32 %v6114_v19, %v5554_v51  ;;  %v5424_v19 = vld [vmem:[%s8651_s11 + $0x160] sm:$0xf]  ;;  %v6084_v51 = vld [vmem:[%s8651_s11 + $0x16c] sm:$0xf0] }
 0x455   :  { %3972 = vmatpush.bf16.msra.mxu1 %v5265_v4  ;;  %v6110_v4 = vld [vmem:[%s8651_s11 + $0x244] sm:$0xf] }
 0x457   :  { %4112 = vmatpush.bf16.msra.mxu3 %v5705_v9  ;;  %v6107_v9 = vld [vmem:[%s8651_s11 + $0x22c] sm:$0xf] }
 0x458   :  { %v5533_v47 = vor.u32 %v6107_v9, %v5530_v16  ;;  %v5522_v9 = vld [vmem:[%s8651_s11 + $0x230] sm:$0xf0] }
 0x459   :  { %3973 = vmatpush.bf16.msra.mxu1 %v5249_v8  ;;  %v5525_v16 = vor.u32 %v6106_v20, %v5522_v9  ;;  %v6102_v8 = vld [vmem:[%s8651_s11 + $0x204] sm:$0xf]  ;;  %v5408_v20 = vld [vmem:[%s8651_s11 + $0x140] sm:$0xf]  ;;  %v6080_v9 = vld [vmem:[%s8651_s11 + $0x14c] sm:$0xf0] }
 0x45b   :  { %4113 = vmatpush.bf16.msra.mxu3 %v5689_v17  ;;  %v6103_v17 = vld [vmem:[%s8651_s11 + $0x20c] sm:$0xf] }
 0x45c   :  { %v5517_v48 = vor.u32 %v6103_v17, %v5514_v57  ;;  %v5496_v17 = vld [vmem:[%s8651_s11 + $0x1e8] sm:$0xf]  ;;  %v6101_v57 = vld [vmem:[%s8651_s11 + $0x1f4] sm:$0xf0] }
 0x45f   :  { %4114 = vmatpush.bf16.msra.mxu3 %v5673_v39 }
 0x463   :  { %4115 = vmatpush.bf16.msra.mxu3 %v5657_v32  ;;  %v6160_v32 = vld [vmem:[%s8651_s11 + $0x3cc] sm:$0xf0] }
 0x464   :  { %v5729_v21 = vor.u32 %v6160_v32, %v5728_v22  ;;  %v5448_v32 = vld [vmem:[%s8651_s11 + $0x188] sm:$0xf] }
 0x467   :  { %4116 = vmatpush.bf16.msra.mxu3 %v5641_v15  ;;  %v5697_v15 = vor.u32 %v6152_v49, %v5696_v56  ;;  %v6036_v56 = vld [vmem:[%s8656_s9] sm:$0xff] }
 0x468   :  { %v5488_v49 = vld [vmem:[%s8651_s11 + $0x1e0] sm:$0xf] }
 0x46a   :  { %4117 = vmatmul.bf16.vlgmr.msra.gmra.mxu3 %v7928_v35 }
 0x46b   :  { %4148 = vmatpush.bf16.msrb.mxu3 %v5629_v14  ;;  %v6148_v14 = vld [vmem:[%s8651_s11 + $0x36c] sm:$0xf0] }
 0x46c   :  { %v5681_v40 = vor.u32 %v6148_v14, %v5680_v54 }
 0x46f   :  { %4149 = vmatpush.bf16.msrb.mxu3 %v5613_v62  ;;  %v5649_v62 = vor.u32 %v6140_v41, %v5648_v38  ;;  %v5400_v41 = vld [vmem:[%s8651_s11 + $0x128] sm:$0xf] }
 0x473   :  { %4150 = vmatpush.bf16.msrb.mxu3 %v5597_v6  ;;  %v5621_v6 = vor.u32 %v6130_v10, %v5618_v12  ;;  %v5457_v10 = vor.u32 %v6092_v43, %v5456_v5 }
 0x477   :  { %4151 = vmatpush.bf16.msrb.mxu3 %v5581_v31 }
 0x47b   :  { %4152 = vmatpush.bf16.msrb.mxu3 %v5565_v7  ;;  %v5570_v7 = vld [vmem:[%s8651_s11 + $0x290] sm:$0xf0] }
 0x47c   :  { %v5573_v0 = vor.u32 %v6118_v24, %v5570_v7  ;;  %v6063_v7 = vld [vmem:[%s8651_s11 + $0xcc] sm:$0xf] }
 0x47f   :  { %4153 = vmatpush.bf16.msrb.mxu3 %v5549_v63  ;;  %v5538_v63 = vld [vmem:[%s8651_s11 + $0x250] sm:$0xf0] }
 0x480   :  { %v5541_v45 = vor.u32 %v6110_v4, %v5538_v63  ;;  %v6059_v63 = vld [vmem:[%s8651_s11 + $0xac] sm:$0xf] }
 0x483   :  { %4154 = vmatpush.bf16.msrb.mxu3 %v5533_v47  ;;  %v5506_v47 = vld [vmem:[%s8651_s11 + $0x210] sm:$0xf0] }
 0x487   :  { %4155 = vmatpush.bf16.msrb.mxu3 %v5517_v48 }
 0x48a   :  { %4156 = vmatmul.bf16.vlgmr.msrb.gmra.mxu3 %v7750_v53 }
 0x48d   :  { %v3070_v39 = vpop.f32.mrf.mxu3 }
 0x48e   :  { %v3071_v18 = vadd.f32 %v6203_v3, %v3070_v39  ;;  %v5509_v3 = vor.u32 %v6102_v8, %v5506_v47  ;;  %v5497_v39 = vor.u32 %v6101_v57, %v5496_v17  ;;  %v6055_v17 = vld [vmem:[%s8651_s11 + $0x8c] sm:$0xf]  ;;  %v5322_v57 = vld [vmem:[%s8651_s11 + $0x98] sm:$0xf0] }
 0x490   :  { %v3074_v1 = vmax.f32 %v3071_v18, 0.0  ;;  %v5480_v18 = vld [vmem:[%s8651_s11 + $0x1c8] sm:$0xf] }
 0x491   :  { %v5481_v52 = vor.u32 %v6097_v46, %v5480_v18  ;;  %v5325_v46 = vor.u32 %v6055_v17, %v5322_v57  ;;  %v5658_v17 = vld [vmem:[%s8651_s11 + $0x338] sm:$0xf0] }
 0x492   :  { %v3075_v11 = vpack.c.bf16 %v3074_v1, %v3074_v1  ;;  %v5464_v1 = vld [vmem:[%s8651_s11 + $0x1a8] sm:$0xf] }
 0x494   :  { %5236 = vmatmul.msk.bf16.vlgmr.msrb.gmra.mxu1 %vm3112_vm10, %v3075_v11 }
 0x495   :  { %4005 = vmatpush.bf16.msrb.mxu1 %v5745_v42  ;;  %v3072_v60 = vpop.f32.mrf.mxu3  ;;  %v6093_v42 = vld [vmem:[%s8651_s11 + $0x1b4] sm:$0xf0] }
 0x496   :  { %v5465_v22 = vor.u32 %v6093_v42, %v5464_v1  ;;  %v6089_v60 = vld [vmem:[%s8651_s11 + $0x194] sm:$0xf0]  ;;  %v5306_v1 = vld [vmem:[%s8651_s11 + $0x78] sm:$0xf0]  ;;  %v5376_v42 = vld [vmem:[%s8651_s11 + $0x100] sm:$0xf] }
 0x497   :  { %v5449_v37 = vor.u32 %v6089_v60, %v5448_v32  ;;  %v6047_v60 = vld [vmem:[%s8651_s11 + $0x4c] sm:$0xf] }
 0x499   :  { %4006 = vmatpush.bf16.msrb.mxu1 %v5729_v21  ;;  %v6037_v21 = vld [vmem:[%s8656_s9 + $0x8] sm:$0xff] }
 0x49a   :  { %3160 = vmatpush.bf16.msrb.mxu2 %v6037_v21  ;;  %v5290_v21 = vld [vmem:[%s8651_s11 + $0x58] sm:$0xf0] }
 0x49d   :  { %4007 = vmatpush.bf16.msrb.mxu1 %v5713_v30  ;;  %v8019_v61 = vpop.f32.mrf.mxu3  ;;  %v6085_v30 = vld [vmem:[%s8651_s11 + $0x174] sm:$0xf0] }
 0x49e   :  { %3161 = vmatpush.bf16.msrb.mxu2 %v6036_v56  ;;  %v5433_v14 = vor.u32 %v6085_v30, %v5432_v25  ;;  %v6043_v25 = vld [vmem:[%s8651_s11 + $0x2c] sm:$0xf]  ;;  %v5274_v30 = vld [vmem:[%s8651_s11 + $0x38] sm:$0xf0] }
 0x49f   :  { %v5277_v56 = vor.u32 %v6043_v25, %v5274_v30 }
 0x4a1   :  { %4008 = vmatpush.bf16.msrb.mxu1 %v5697_v15  ;;  %v6100_v15 = vld [vmem:[%s8651_s11 + $0x1ec] sm:$0xf0] }
 0x4a2   :  { %v5489_v54 = vor.u32 %v6100_v15, %v5488_v49  ;;  %v6039_v49 = vld [vmem:[%s8651_s11 + $0xc] sm:$0xf]  ;;  %v5258_v15 = vld [vmem:[%s8651_s11 + $0x18] sm:$0xf0] }
 0x4a4   :  { %3974 = vmatmul.bf16.vlgmr.msra.gmra.mxu1 %v7839_v2  ;;  %3979 = vmatpush.bf16.msra.mxu2 %v5489_v54  ;;  %v6163_v54 = vld [vmem:[%s8651_s11 + $0x3ec] sm:$0xf] }
 0x4a5   :  { %4009 = vmatpush.bf16.msrb.mxu1 %v5681_v40  ;;  %v4003_v36 = vpop.f32.mrf.mxu3  ;;  %v5416_v40 = vld [vmem:[%s8651_s11 + $0x148] sm:$0xf] }
 0x4a6   :  { %v6096_v36 = vld [vmem:[%s8651_s11 + $0x1cc] sm:$0xf0]  ;;  %v5417_v38 = vor.u32 %v6081_v58, %v5416_v40  ;;  %v5261_v58 = vor.u32 %v6039_v49, %v5258_v15  ;;  %v5266_v49 = vld [vmem:[%s8651_s11 + $0x30] sm:$0xf0] }
 0x4a9   :  { %4010 = vmatpush.bf16.msrb.mxu1 %v5665_v50  ;;  %v5473_v50 = vor.u32 %v6096_v36, %v5472_v59  ;;  %v6159_v36 = vld [vmem:[%s8651_s11 + $0x3cc] sm:$0xf] }
 0x4ab   :  { %3980 = vmatpush.bf16.msra.mxu2 %v5473_v50  ;;  %v5738_v50 = vld [vmem:[%s8651_s11 + $0x3d8] sm:$0xf0] }
 0x4ad   :  { %4011 = vmatpush.bf16.msrb.mxu1 %v5649_v62  ;;  %v8052_v55 = vpop.f32.mrf.mxu3  ;;  %v6077_v62 = vld [vmem:[%s8651_s11 + $0x134] sm:$0xf0] }
 0x4ae   :  { %v5401_v12 = vor.u32 %v6077_v62, %v5400_v41  ;;  %v6155_v41 = vld [vmem:[%s8651_s11 + $0x3ac] sm:$0xf]  ;;  %v5722_v62 = vld [vmem:[%s8651_s11 + $0x3b8] sm:$0xf0] }
 0x4af   :  { %3981 = vmatpush.bf16.msra.mxu2 %v5457_v10  ;;  %v5725_v43 = vor.u32 %v6155_v41, %v5722_v62  ;;  %v6204_v10 = vld [vmem:[%s8655_s8] ss:$0 sm:$0xff]  ;;  %v6158_v41 = vld [vmem:[%s8651_s11 + $0x3c4] sm:$0xf]  ;;  %v5730_v62 = vld [vmem:[%s8651_s11 + $0x3d0] sm:$0xf0] }
 0x4b1   :  { %4012 = vmatpush.bf16.msrb.mxu1 %v5633_v27  ;;  %v5384_v27 = vld [vmem:[%s8651_s11 + $0x108] sm:$0xf] }
 0x4b3   :  { %3982 = vmatpush.bf16.msra.mxu2 %v5441_v26  ;;  %v6147_v26 = vld [vmem:[%s8651_s11 + $0x36c] sm:$0xf] }
 0x4b4   :  { %4013 = vmatmul.bf16.vlgmr.msrb.gmra.mxu1 %v7928_v35 }
 0x4b5   :  { %4044 = vmatpush.bf16.msra.mxu1 %v5621_v6  ;;  %v4042_v31 = vpop.f32.mrf.mxu3  ;;  %v6073_v6 = vld [vmem:[%s8651_s11 + $0x114] sm:$0xf0] }
 0x4b9   :  { %4045 = vmatpush.bf16.msra.mxu1 %v5605_v34  ;;  %v6067_v34 = vld [vmem:[%s8651_s11 + $0xec] sm:$0xf] }
 0x4ba   :  { %v5373_v24 = vor.u32 %v6067_v34, %v5370_v23  ;;  %v5362_v23 = vld [vmem:[%s8651_s11 + $0xf0] sm:$0xf0] }
 0x4bd   :  { %4046 = vmatpush.bf16.msra.mxu1 %v5589_v28  ;;  %v5385_v28 = vor.u32 %v6073_v6, %v5384_v27  ;;  %v5706_v27 = vld [vmem:[%s8651_s11 + $0x398] sm:$0xf0] }
 0x4c1   :  { %4047 = vmatpush.bf16.msra.mxu1 %v5573_v0  ;;  %v5354_v0 = vld [vmem:[%s8651_s11 + $0xd8] sm:$0xf0] }
 0x4c2   :  { %v5357_v4 = vor.u32 %v6063_v7, %v5354_v0  ;;  %v5365_v7 = vor.u32 %v6066_v13, %v5362_v23 }
 0x4c5   :  { %4048 = vmatpush.bf16.msra.mxu1 %v5557_v33  ;;  %v5425_v33 = vor.u32 %v6084_v51, %v5424_v19  ;;  %v6062_v19 = vld [vmem:[%s8651_s11 + $0xc4] sm:$0xf] }
 0x4c7   :  { %3983 = vmatpush.bf16.msra.mxu2 %v5425_v33  ;;  %v5346_v33 = vld [vmem:[%s8651_s11 + $0xd0] sm:$0xf0] }
 0x4c9   :  { %4049 = vmatpush.bf16.msra.mxu1 %v5541_v45  ;;  %v5338_v45 = vld [vmem:[%s8651_s11 + $0xb8] sm:$0xf0] }
 0x4ca   :  { %v5341_v47 = vor.u32 %v6059_v63, %v5338_v45  ;;  %v5674_v63 = vld [vmem:[%s8651_s11 + $0x358] sm:$0xf0] }
 0x4cd   :  { %4050 = vmatpush.bf16.msra.mxu1 %v5525_v16  ;;  %v8103_v48 = vpop.f32.mrf.mxu3  ;;  %v5409_v16 = vor.u32 %v6080_v9, %v5408_v20  ;;  %v5349_v20 = vor.u32 %v6062_v19, %v5346_v33  ;;  %v5634_v33 = vld [vmem:[%s8651_s11 + $0x310] sm:$0xf0] }
 0x4cf   :  { %3984 = vmatpush.bf16.msra.mxu2 %v5409_v16  ;;  %v6058_v16 = vld [vmem:[%s8651_s11 + $0xa4] sm:$0xf] }
 0x4d1   :  { %4051 = vmatpush.bf16.msra.mxu1 %v5509_v3  ;;  %v5392_v3 = vld [vmem:[%s8651_s11 + $0x120] sm:$0xf] }
 0x4d4   :  { %4052 = vmatmul.bf16.vlgmr.msra.gmra.mxu1 %v7750_v53 }
 0x4d5   :  { %4083 = vmatpush.bf16.msrb.mxu1 %v5497_v39  ;;  %v4081_v11 = vpop.f32.mrf.mxu3  ;;  %v6076_v39 = vld [vmem:[%s8651_s11 + $0x12c] sm:$0xf0] }
 0x4d6   :  { %v5393_v18 = vor.u32 %v6076_v39, %v5392_v3  ;;  %v6072_v11 = vld [vmem:[%s8651_s11 + $0x10c] sm:$0xf0]  ;;  %v6054_v39 = vld [vmem:[%s8651_s11 + $0x84] sm:$0xf] }
 0x4d8   :  { %3985 = vmatpush.bf16.msra.mxu2 %v5393_v18  ;;  %v5314_v18 = vld [vmem:[%s8651_s11 + $0x90] sm:$0xf0] }
 0x4d9   :  { %4084 = vmatpush.bf16.msrb.mxu1 %v5481_v52  ;;  %v6051_v52 = vld [vmem:[%s8651_s11 + $0x6c] sm:$0xf] }
 0x4da   :  { %v5309_v32 = vor.u32 %v6051_v52, %v5306_v1  ;;  %v5642_v52 = vld [vmem:[%s8651_s11 + $0x318] sm:$0xf0] }
 0x4dd   :  { %4085 = vmatpush.bf16.msrb.mxu1 %v5465_v22  ;;  %v5377_v22 = vor.u32 %v6072_v11, %v5376_v42  ;;  %v5317_v42 = vor.u32 %v6054_v39, %v5314_v18  ;;  %v5576_v18 = vld [vmem:[%s8651_s11 + $0x288] sm:$0xf] }
 0x4df   :  { %3986 = vmatpush.bf16.msra.mxu2 %v5377_v22  ;;  %v6050_v22 = vld [vmem:[%s8651_s11 + $0x64] sm:$0xf] }
 0x4e1   :  { %4086 = vmatpush.bf16.msrb.mxu1 %v5449_v37  ;;  %v5293_v37 = vor.u32 %v6047_v60, %v5290_v21  ;;  %v6046_v21 = vld [vmem:[%s8651_s11 + $0x44] sm:$0xf] }
 0x4e5   :  { %4087 = vmatpush.bf16.msrb.mxu1 %v5433_v14  ;;  %v5754_v14 = vld [vmem:[%s8651_s11 + $0x3f8] sm:$0xf0] }
 0x4e6   :  { %v5757_v59 = vor.u32 %v6163_v54, %v5754_v14  ;;  %v6038_v54 = vld [vmem:[%s8651_s11 + $0x4] sm:$0xf]  ;;  %v5250_v14 = vld [vmem:[%s8651_s11 + $0x10] sm:$0xf0] }
 0x4e9   :  { %4088 = vmatpush.bf16.msrb.mxu1 %v5417_v38  ;;  %v5741_v38 = vor.u32 %v6159_v36, %v5738_v50  ;;  %v5253_v50 = vor.u32 %v6038_v54, %v5250_v14  ;;  %v6099_v54 = vld [vmem:[%s8651_s11 + $0x1ec] sm:$0xf]  ;;  %v5498_v14 = vld [vmem:[%s8651_s11 + $0x1f8] sm:$0xf0] }
 0x4ed   :  { %4089 = vmatpush.bf16.msrb.mxu1 %v5401_v12  ;;  %v8184_v31 = vpop.f32.mrf.mxu3  ;;  %v6151_v12 = vld [vmem:[%s8651_s11 + $0x38c] sm:$0xf] }
 0x4ee   :  { %v5709_v44 = vor.u32 %v6151_v12, %v5706_v27 }
 0x4f1   :  { %4090 = vmatpush.bf16.msrb.mxu1 %v5385_v28  ;;  %v5690_v28 = vld [vmem:[%s8651_s11 + $0x378] sm:$0xf0] }
 0x4f2   :  { %v5693_v0 = vor.u32 %v6147_v26, %v5690_v28  ;;  %v6142_v26 = vld [vmem:[%s8651_s11 + $0x344] sm:$0xf]  ;;  %v5666_v28 = vld [vmem:[%s8651_s11 + $0x350] sm:$0xf0] }
 0x4f4   :  { %4091 = vmatmul.bf16.vlgmr.msrb.gmra.mxu1 %v7786_v29 }
 0x4f5   :  { %4122 = vmatpush.bf16.msra.mxu1 %v5373_v24  ;;  %v4120_v8 = vpop.f32.mrf.mxu3 }
 0x4f6   :  { %v5330_v8 = vld [vmem:[%s8651_s11 + $0xb0] sm:$0xf0] }
 0x4f7   :  { %v5333_v57 = vor.u32 %v6058_v16, %v5330_v8  ;;  %v5608_v16 = vld [vmem:[%s8651_s11 + $0x2c8] sm:$0xf]  ;;  %v6129_v8 = vld [vmem:[%s8651_s11 + $0x2d4] sm:$0xf0] }
 0x4f9   :  { %4123 = vmatpush.bf16.msra.mxu1 %v5357_v4  ;;  %v6143_v4 = vld [vmem:[%s8651_s11 + $0x34c] sm:$0xf] }
 0x4fa   :  { %v5677_v9 = vor.u32 %v6143_v4, %v5674_v63  ;;  %v5624_v4 = vld [vmem:[%s8651_s11 + $0x2e8] sm:$0xf]  ;;  %v6133_v63 = vld [vmem:[%s8651_s11 + $0x2f4] sm:$0xf0] }
 0x4fd   :  { %4124 = vmatpush.bf16.msra.mxu1 %v5341_v47  ;;  %v6139_v47 = vld [vmem:[%s8651_s11 + $0x32c] sm:$0xf] }
 0x4fe   :  { %v5661_v3 = vor.u32 %v6139_v47, %v5658_v17  ;;  %v5609_v47 = vor.u32 %v6129_v8, %v5608_v16  ;;  %v5592_v17 = vld [vmem:[%s8651_s11 + $0x2a8] sm:$0xf]  ;;  %v6170_v8 = vld [vmem:[%s8659_s13 + $0x20] sm:$0xff] }
 0x4ff   :  { %v6171_v16 = vld [vmem:[%s8659_s13 + $0x28] sm:$0xff] }
 0x501   :  { %4125 = vmatpush.bf16.msra.mxu1 %v5325_v46  ;;  %v6135_v46 = vld [vmem:[%s8651_s11 + $0x30c] sm:$0xf] }
 0x502   :  { %v5645_v11 = vor.u32 %v6135_v46, %v5642_v52  ;;  %v6121_v46 = vld [vmem:[%s8651_s11 + $0x294] sm:$0xf0] }
 0x503   :  { %v5577_v52 = vor.u32 %v6121_v46, %v5576_v18  ;;  %v6181_v18 = vld [vmem:[%s8659_s13 + $0x78] sm:$0xff] }
 0x504   :  { %4455 = vmatpush.bf16.msra.mxu3 %v6181_v18  ;;  %v6194_v18 = vld [vmem:[%s8659_s13 + $0xe0] sm:$0xff] }
 0x505   :  { %4126 = vmatpush.bf16.msra.mxu1 %v5309_v32  ;;  %v5298_v32 = vld [vmem:[%s8651_s11 + $0x70] sm:$0xf0] }
 0x506   :  { %v5301_v60 = vor.u32 %v6050_v22, %v5298_v32  ;;  %v5544_v22 = vld [vmem:[%s8651_s11 + $0x248] sm:$0xf]  ;;  %v6113_v32 = vld [vmem:[%s8651_s11 + $0x254] sm:$0xf0] }
 0x509   :  { %4127 = vmatpush.bf16.msra.mxu1 %v5293_v37  ;;  %v5282_v37 = vld [vmem:[%s8651_s11 + $0x50] sm:$0xf0] }
 0x50a   :  { %v5285_v30 = vor.u32 %v6046_v21, %v5282_v37  ;;  %v5545_v21 = vor.u32 %v6113_v32, %v5544_v22  ;;  %v5528_v37 = vld [vmem:[%s8651_s11 + $0x228] sm:$0xf]  ;;  %v6166_v22 = vld [vmem:[%s8659_s13] sm:$0xff] }
 0x50b   :  { %v6179_v32 = vld [vmem:[%s8659_s13 + $0x68] sm:$0xff] }
 0x50d   :  { %4128 = vmatpush.bf16.msra.mxu1 %v5277_v56  ;;  %v8259_v40 = vpop.f32.mrf.mxu3  ;;  %v6042_v56 = vld [vmem:[%s8651_s11 + $0x24] sm:$0xf] }
 0x50e   :  { %v5269_v15 = vor.u32 %v6042_v56, %v5266_v49  ;;  %v5512_v49 = vld [vmem:[%s8651_s11 + $0x208] sm:$0xf] }
 0x511   :  { %4129 = vmatpush.bf16.msra.mxu1 %v5261_v58  ;;  %v3125_v6 = vpop.f32.mrf.mxu1  ;;  %v6162_v58 = vld [vmem:[%s8651_s11 + $0x3e4] sm:$0xf] }
 0x512   :  { %v3126_v34 = vadd.f32 %v6204_v10, %v3125_v6  ;;  %v5714_v10 = vld [vmem:[%s8651_s11 + $0x3b0] sm:$0xf0]  ;;  %v6150_v6 = vld [vmem:[%s8651_s11 + $0x384] sm:$0xf] }
 0x514   :  { %4130 = vmatmul.bf16.vlgmr.msra.gmra.mxu1 %v7839_v2  ;;  %v3129_v24 = vmax.f32 %v3126_v34, 0.0  ;;  %v6146_v34 = vld [vmem:[%s8651_s11 + $0x364] sm:$0xf] }
 0x515   :  { %4161 = vmatpush.bf16.msrb.mxu1 %v5757_v59  ;;  %v4159_v5 = vpop.f32.mrf.mxu3  ;;  %v5746_v59 = vld [vmem:[%s8651_s11 + $0x3f0] sm:$0xf0] }
 0x516   :  { %v3130_v51 = vpack.c.bf16 %v3129_v24, %v3129_v24  ;;  %v5733_v5 = vor.u32 %v6158_v41, %v5730_v62  ;;  %v5669_v24 = vor.u32 %v6142_v26, %v5666_v28  ;;  %v5501_v41 = vor.u32 %v6099_v54, %v5498_v14  ;;  %v6095_v62 = vld [vmem:[%s8651_s11 + $0x1cc] sm:$0xf]  ;;  %v5418_v26 = vld [vmem:[%s8651_s11 + $0x158] sm:$0xf0] }
 0x517   :  { %v6177_v14 = vld [vmem:[%s8659_s13 + $0x58] sm:$0xff] }
 0x518   :  { %5245 = vmatmul.msk.bf16.vlgmr.msrb.gmra.mxu2 %vm57_vm2, %v3130_v51  ;;  %v6134_v51 = vld [vmem:[%s8651_s11 + $0x304] sm:$0xf] }
 0x519   :  { %4162 = vmatpush.bf16.msrb.mxu1 %v5741_v38  ;;  %4018 = vmatpush.bf16.msrb.mxu2 %v5365_v7  ;;  %v3127_v45 = vpop.f32.mrf.mxu1  ;;  %v5749_v38 = vor.u32 %v6162_v58, %v5746_v59  ;;  %v6138_v7 = vld [vmem:[%s8651_s11 + $0x324] sm:$0xf] }
 0x51d   :  { %4163 = vmatpush.bf16.msrb.mxu1 %v5725_v43  ;;  %4019 = vmatpush.bf16.msrb.mxu2 %v5349_v20  ;;  %v6154_v43 = vld [vmem:[%s8651_s11 + $0x3a4] sm:$0xf]  ;;  %v5637_v20 = vor.u32 %v6134_v51, %v5634_v33  ;;  %v5386_v51 = vld [vmem:[%s8651_s11 + $0x118] sm:$0xf0] }
 0x51e   :  { %v5717_v27 = vor.u32 %v6154_v43, %v5714_v10  ;;  %v5466_v10 = vld [vmem:[%s8651_s11 + $0x1b8] sm:$0xf0] }
 0x521   :  { %4164 = vmatpush.bf16.msrb.mxu1 %v5709_v44  ;;  %4020 = vmatpush.bf16.msrb.mxu2 %v5333_v57  ;;  %v8332_v1 = vpop.f32.mrf.mxu1  ;;  %v5698_v44 = vld [vmem:[%s8651_s11 + $0x390] sm:$0xf0]  ;;  %v6125_v57 = vld [vmem:[%s8651_s11 + $0x2b4] sm:$0xf0] }
 0x522   :  { %v5701_v13 = vor.u32 %v6150_v6, %v5698_v44  ;;  %v5593_v39 = vor.u32 %v6125_v57, %v5592_v17  ;;  %v6087_v6 = vld [vmem:[%s8651_s11 + $0x18c] sm:$0xf]  ;;  %v5450_v44 = vld [vmem:[%s8651_s11 + $0x198] sm:$0xf0] }
 0x525   :  { %4165 = vmatpush.bf16.msrb.mxu1 %v5693_v0  ;;  %4021 = vmatpush.bf16.msrb.mxu2 %v5317_v42  ;;  %v5650_v0 = vld [vmem:[%s8651_s11 + $0x330] sm:$0xf0]  ;;  %v5560_v42 = vld [vmem:[%s8651_s11 + $0x268] sm:$0xf] }
 0x526   :  { %v5653_v19 = vor.u32 %v6138_v7, %v5650_v0  ;;  %v5402_v7 = vld [vmem:[%s8651_s11 + $0x138] sm:$0xf0] }
 0x528   :  { %3987 = vmatmul.bf16.vlgmr.msra.gmra.mxu2 %v7786_v29 }
 0x529   :  { %4166 = vmatpush.bf16.msrb.mxu1 %v5677_v9  ;;  %4022 = vmatpush.bf16.msrb.mxu2 %v5301_v60  ;;  %v3977_v25 = vpop.f32.mrf.mxu1  ;;  %v5625_v9 = vor.u32 %v6133_v63, %v5624_v4  ;;  %v8453_v60 = vld [vmem:[%s8658_s12] sm:$0xf]  ;;  %v6173_v63 = vld [vmem:[%s8659_s13 + $0x38] sm:$0xff] }
 0x52a   :  { %v6109_v25 = vld [vmem:[%s8651_s11 + $0x234] sm:$0xf0] }
 0x52b   :  { %v5529_v56 = vor.u32 %v6109_v25, %v5528_v37 }
 0x52d   :  { %4167 = vmatpush.bf16.msrb.mxu1 %v5661_v3  ;;  %4023 = vmatpush.bf16.msrb.mxu2 %v5285_v30  ;;  %v3320_v30 = vperm.slane %v8453_v60, 2 }
 0x52f   :  { %v4080_v58 = vadd.f32 %v8103_v48, %v3320_v30  ;;  %v6091_v48 = vld [vmem:[%s8651_s11 + $0x1ac] sm:$0xf]  ;;  %v6178_v30 = vld [vmem:[%s8659_s13 + $0x60] sm:$0xff] }
 0x531   :  { %4168 = vmatpush.bf16.msrb.mxu1 %v5645_v11  ;;  %4024 = vmatpush.bf16.msrb.mxu2 %v5269_v15  ;;  %v8366_v36 = vpop.f32.mrf.mxu1  ;;  %v6105_v15 = vld [vmem:[%s8651_s11 + $0x214] sm:$0xf0] }
 0x534   :  { %4169 = vmatmul.bf16.vlgmr.msrb.gmra.mxu1 %v7928_v35 }
 0x535   :  { %4025 = vmatpush.bf16.msrb.mxu2 %v5253_v50  ;;  %v5513_v50 = vor.u32 %v6105_v15, %v5512_v49 }
 0x538   :  { %4026 = vmatmul.bf16.vlgmr.msrb.gmra.mxu2 %v7839_v2  ;;  %v5682_v2 = vld [vmem:[%s8651_s11 + $0x370] sm:$0xf0] }
 0x539   :  { %4057 = vmatpush.bf16.msra.mxu2 %v5749_v38  ;;  %v4016_v12 = vpop.f32.mrf.mxu1  ;;  %v5685_v23 = vor.u32 %v6146_v34, %v5682_v2  ;;  %v6083_v34 = vld [vmem:[%s8651_s11 + $0x16c] sm:$0xf] }
 0x53d   :  { %4058 = vmatpush.bf16.msra.mxu2 %v5733_v5  ;;  %v5482_v5 = vld [vmem:[%s8651_s11 + $0x1d8] sm:$0xf0] }
 0x53e   :  { %v5485_v43 = vor.u32 %v6095_v62, %v5482_v5 }
 0x541   :  { %4059 = vmatpush.bf16.msra.mxu2 %v5717_v27  ;;  %v5469_v27 = vor.u32 %v6091_v48, %v5466_v10 }
 0x545   :  { %4060 = vmatpush.bf16.msra.mxu2 %v5701_v13  ;;  %v5453_v13 = vor.u32 %v6087_v6, %v5450_v44 }
 0x549   :  { %4061 = vmatpush.bf16.msra.mxu2 %v5685_v23  ;;  %v6079_v23 = vld [vmem:[%s8651_s11 + $0x14c] sm:$0xf] }
 0x54a   :  { %v5421_v28 = vor.u32 %v6079_v23, %v5418_v26  ;;  %v6189_v26 = vld [vmem:[%s8659_s13 + $0xb8] sm:$0xff] }
 0x54b   :  { %4468 = vmatpush.bf16.msra.mxu1 %v6189_v26 }
 0x54d   :  { %4062 = vmatpush.bf16.msra.mxu2 %v5669_v24  ;;  %v6075_v24 = vld [vmem:[%s8651_s11 + $0x12c] sm:$0xf] }
 0x54e   :  { %v5405_v0 = vor.u32 %v6075_v24, %v5402_v7  ;;  %v6187_v7 = vld [vmem:[%s8659_s13 + $0xa8] sm:$0xff] }
 0x551   :  { %v8417_v45 = vpop.f32.mrf.mxu1  ;;  %4063 = vmatpush.bf16.msra.mxu2 %v5653_v19  ;;  %v6071_v19 = vld [vmem:[%s8651_s11 + $0x10c] sm:$0xf] }
 0x552   :  { %v5389_v4 = vor.u32 %v6071_v19, %v5386_v51  ;;  %v3319_v19 = vperm.slane %v8453_v60, 1  ;;  %v6185_v51 = vld [vmem:[%s8659_s13 + $0x98] sm:$0xff] }
 0x555   :  { %4064 = vmatpush.bf16.msra.mxu2 %v5637_v20  ;;  %v6172_v20 = vld [vmem:[%s8659_s13 + $0x30] sm:$0xff] }
 0x558   :  { %4065 = vmatmul.bf16.vlgmr.msra.gmra.mxu2 %v7928_v35  ;;  %v6117_v35 = vld [vmem:[%s8651_s11 + $0x274] sm:$0xf0] }
 0x559   :  { %4096 = vmatpush.bf16.msrb.mxu2 %v5625_v9  ;;  %v4055_v3 = vpop.f32.mrf.mxu1  ;;  %v5561_v11 = vor.u32 %v6117_v35, %v5560_v42  ;;  %v6180_v35 = vld [vmem:[%s8659_s13 + $0x70] sm:$0xff] }
 0x55a   :  { %v6168_v3 = vld [vmem:[%s8659_s13 + $0x10] sm:$0xff]  ;;  %4456 = vmatpush.bf16.msra.mxu3 %v6180_v35  ;;  %v6191_v35 = vld [vmem:[%s8659_s13 + $0xc8] sm:$0xff] }
 0x55d   :  { %4097 = vmatpush.bf16.msrb.mxu2 %v5609_v47  ;;  %v6205_v47 = vld [vmem:[%s8657_s10] ss:$0 sm:$0xff] }
 0x55e   :  { %4457 = vmatpush.bf16.msra.mxu3 %v6179_v32 }
 0x561   :  { %4098 = vmatpush.bf16.msrb.mxu2 %v5593_v39 }
 0x562   :  { %4458 = vmatpush.bf16.msra.mxu3 %v6178_v30 }
 0x565   :  { %4099 = vmatpush.bf16.msrb.mxu2 %v5577_v52  ;;  %v6167_v52 = vld [vmem:[%s8659_s13 + $0x8] sm:$0xff] }
 0x566   :  { %4459 = vmatpush.bf16.msra.mxu3 %v6177_v14 }
 0x569   :  { %4100 = vmatpush.bf16.msrb.mxu2 %v5561_v11 }
 0x56d   :  { %4101 = vmatpush.bf16.msrb.mxu2 %v5545_v21  ;;  %v3318_v21 = vperm.slane %v8453_v60, 0 }
 0x571   :  { %v4092_v59 = vpop.f32.mrf.mxu1  ;;  %4102 = vmatpush.bf16.msrb.mxu2 %v5529_v56  ;;  %v3976_v56 = vadd.f32 %v8332_v1, %v3318_v21  ;;  %v6190_v21 = vld [vmem:[%s8659_s13 + $0xc0] sm:$0xff] }
 0x572   :  { %v8475_v38 = vadd.f32 %v4092_v59, %v4080_v58 }
 0x575   :  { %4103 = vmatpush.bf16.msrb.mxu2 %v5513_v50 }
 0x578   :  { %4104 = vmatmul.bf16.vlgmr.msrb.gmra.mxu2 %v7750_v53  ;;  %v5434_v53 = vld [vmem:[%s8651_s11 + $0x178] sm:$0xf0] }
 0x579   :  { %4135 = vmatpush.bf16.msra.mxu2 %v5501_v41  ;;  %v4094_v12 = vpop.f32.mrf.mxu1  ;;  %v5437_v2 = vor.u32 %v6083_v34, %v5434_v53  ;;  %v6176_v41 = vld [vmem:[%s8659_s13 + $0x50] sm:$0xff]  ;;  %v6174_v53 = vld [vmem:[%s8659_s13 + $0x40] sm:$0xff] }
 0x57a   :  { %4460 = vmatpush.bf16.msra.mxu3 %v6176_v41 }
 0x57d   :  { %4136 = vmatpush.bf16.msra.mxu2 %v5485_v43 }
 0x581   :  { %4137 = vmatpush.bf16.msra.mxu2 %v5469_v27 }
 0x585   :  { %4138 = vmatpush.bf16.msra.mxu2 %v5453_v13 }
 0x589   :  { %4139 = vmatpush.bf16.msra.mxu2 %v5437_v2 }
 0x58d   :  { %4140 = vmatpush.bf16.msra.mxu2 %v5421_v28  ;;  %v6188_v28 = vld [vmem:[%s8659_s13 + $0xb0] sm:$0xff] }
 0x58e   :  { %4469 = vmatpush.bf16.msra.mxu1 %v6188_v28 }
 0x591   :  { %v8520_v33 = vpop.f32.mrf.mxu1  ;;  %4141 = vmatpush.bf16.msra.mxu2 %v5405_v0  ;;  %v6186_v0 = vld [vmem:[%s8659_s13 + $0xa0] sm:$0xff] }
 0x592   :  { %4470 = vmatpush.bf16.msra.mxu1 %v6187_v7 }
 0x595   :  { %4142 = vmatpush.bf16.msra.mxu2 %v5389_v4 }
 0x596   :  { %4471 = vmatpush.bf16.msra.mxu1 %v6186_v0 }
 0x598   :  { %4143 = vmatmul.bf16.vlgmr.msra.gmra.mxu2 %v7786_v29  ;;  %v6169_v29 = vld [vmem:[%s8659_s13 + $0x18] sm:$0xff] }
 0x599   :  { %4442 = vmatpush.bf16.msrb.mxu2 %v6173_v63  ;;  %v4133_v9 = vpop.f32.mrf.mxu1  ;;  %v6184_v63 = vld [vmem:[%s8659_s13 + $0x90] sm:$0xff] }
 0x59a   :  { %4472 = vmatpush.bf16.msra.mxu1 %v6185_v51  ;;  %v6183_v9 = vld [vmem:[%s8659_s13 + $0x88] sm:$0xff] }
 0x59b   :  { %v3163_v17 = vpop.f32.mrf.mxu2 }
 0x59c   :  { %v3164_v57 = vadd.f32 %v6205_v47, %v3163_v17 }
 0x59d   :  { %4443 = vmatpush.bf16.msrb.mxu2 %v6172_v20 }
 0x59e   :  { %v3167_v39 = vsub.f32 0.0, %v3164_v57  ;;  %4473 = vmatpush.bf16.msra.mxu1 %v6184_v63 }
 0x5a0   :  { %v3168_v46 = vmul.f32 1.442695, %v3167_v39  ;;  %v6195_v39 = vld [vmem:[%s8659_s13 + $0xe8] sm:$0xff] }
 0x5a1   :  { %4444 = vmatpush.bf16.msrb.mxu2 %v6171_v16 }
 0x5a2   :  { %6207 = vpow2.f32 %v3168_v46  ;;  %4474 = vmatpush.bf16.msra.mxu1 %v6183_v9  ;;  %v6193_v46 = vld [vmem:[%s8659_s13 + $0xd8] sm:$0xff] }
 0x5a3   :  { %v3165_v42 = vpop.f32.mrf.mxu2 }
 0x5a5   :  { %4445 = vmatpush.bf16.msrb.mxu2 %v6170_v8 }
 0x5a8   :  { %v6208_v37 = vpop.eup %6207 }
 0x5a9   :  { %4446 = vmatpush.bf16.msrb.mxu2 %v6169_v29  ;;  %v3170_v25 = vadd.f32 1.0, %v6208_v37  ;;  %v6182_v29 = vld [vmem:[%s8659_s13 + $0x80] sm:$0xff] }
 0x5aa   :  { %4475 = vmatpush.bf16.msra.mxu1 %v6182_v29 }
 0x5ab   :  { %6209 = vrcp.f32 %v3170_v25  ;;  %v3988_v49 = vpop.f32.mrf.mxu2  ;;  %v3182_v10 = vand.u32 2147483648, %v3170_v25  ;;  %v3180_v27 = vand.u32 2147483647, %v3170_v25  ;;  %vm3176_vm12 = vweird.f32 %v3170_v25 }
 0x5ac   :  { %v3989_v15 = vadd.f32 %v3988_v49, %v3976_v56  ;;  %v3321_v56 = vperm.slane %v8453_v60, 3  ;;  %v6206_v60 = vld [vmem:[%s8660_s14] ss:$0 sm:$0xff] }
 0x5ad   :  { %4447 = vmatpush.bf16.msrb.mxu2 %v6168_v3  ;;  %v3183_v6 = vor.u32 1.1754944e-38, %v3182_v10  ;;  %vm3181_vm14 = vcmp.eq.f32.partialorder %v3180_v27, 8.507059e+37 }
 0x5ae   :  { %v4002_v58 = vadd.f32 %v8019_v61, %v3989_v15  ;;  %v6175_v61 = vld [vmem:[%s8659_s13 + $0x48] sm:$0xff]  ;;  %v4132_v49 = vadd.f32 %v8520_v33, %v3321_v56 }
 0x5af   :  { %4461 = vmatpush.bf16.msra.mxu3 %v6175_v61 }
 0x5b0   :  { %v4015_v59 = vadd.f32 %v8366_v36, %v4002_v58 }
 0x5b1   :  { %v8553_v11 = vpop.f32.mrf.mxu1  ;;  %4448 = vmatpush.bf16.msrb.mxu2 %v6167_v52  ;;  %v6210_v50 = vpop.eup %6209  ;;  %v6192_v52 = vld [vmem:[%s8659_s13 + $0xd0] sm:$0xff] }
 0x5b2   :  { %v3172_v1 = vmul.f32 %v6210_v50, %v3170_v25  ;;  %v4174_v62 = vmax.f32 %v4015_v59, 0.0  ;;  %vm3177_vm11 = vweird.f32 %v6210_v50 }
 0x5b3   :  { %v3990_v5 = vpop.f32.mrf.mxu2  ;;  %vm3178_vm13 = vmor %vm3176_vm12, %vm3177_vm11  ;;  %4462 = vmatpush.bf16.msra.mxu3 %v6174_v53 }
 0x5b4   :  { %v3173_v43 = vsub.f32 1.0, %v3172_v1  ;;  %v4178_v48 = vpack.c.bf16 %v4174_v62, %v4174_v62 }
 0x5b5   :  { %4449 = vmatpush.bf16.msrb.mxu2 %v6166_v22 }
 0x5b6   :  { %v3174_v12 = vmul.f32 %v6210_v50, %v3173_v43 }
 0x5b8   :  { %4450 = vmatmul.bf16.vlgmr.msrb.gmra.mxu2 %v4178_v48  ;;  %v3175_v36 = vadd.f32 %v6210_v50, %v3174_v12 }
 0x5b9   :  { %v4172_v54 = vpop.f32.mrf.mxu1 }
 0x5ba   :  { %v3179_v44 = vsel %vm3178_vm13, %v6210_v50, %v3175_v36 }
 0x5bb   :  { %v3184_v13 = vsel %vm3181_vm14, %v3183_v6, %v3179_v44  ;;  %v4027_v34 = vpop.f32.mrf.mxu2 }
 0x5bc   :  { %v3185_v2 = vmax.f32 %v3184_v13, 0.0  ;;  %v4028_v4 = vadd.f32 %v4027_v34, %v3319_v19 }
 0x5be   :  { %v3186_v23 = vmin.f32 %v3185_v2, 1.0  ;;  %v4041_v20 = vadd.f32 %v8052_v55, %v4028_v4  ;;  %v6197_v55 = vld [vmem:[%s8659_s13 + $0xf8] sm:$0xff] }
 0x5bf   :  { %4481 = vmatpush.bf16.msra.mxu2 %v6197_v55 }
 0x5c0   :  { %3187 = vst [vmem:[%s8661_s15] sm:$0xff] %v3186_v23  ;;  %v4054_v16 = vadd.f32 %v8417_v45, %v4041_v20  ;;  %v6196_v45 = vld [vmem:[%s8659_s13 + $0xf0] sm:$0xff] }
 0x5c3   :  { %v4029_v24 = vpop.f32.mrf.mxu2  ;;  %4482 = vmatpush.bf16.msra.mxu2 %v6196_v45 }
 0x5c7   :  { %4483 = vmatpush.bf16.msra.mxu2 %v6195_v39 }
 0x5cb   :  { %4484 = vmatpush.bf16.msra.mxu2 %v6194_v18 }
 0x5cf   :  { %4485 = vmatpush.bf16.msra.mxu2 %v6193_v46 }
 0x5d3   :  { %4486 = vmatpush.bf16.msra.mxu2 %v6192_v52 }
 0x5d7   :  { %4487 = vmatpush.bf16.msra.mxu2 %v6191_v35 }
 0x5db   :  { %v4066_v8 = vpop.f32.mrf.mxu2  ;;  %4488 = vmatpush.bf16.msra.mxu2 %v6190_v21 }
 0x5dc   :  { %v4067_v47 = vadd.f32 %v4066_v8, %v4054_v16 }
 0x5de   :  { %v4175_v17 = vmax.f32 %v4067_v47, 0.0 }
 0x5e0   :  { %v4179_v57 = vpack.c.bf16 %v4175_v17, %v4175_v17 }
 0x5e2   :  { %4463 = vmatmul.bf16.vlgmr.msra.gmra.mxu3 %v4179_v57 }
 0x5e3   :  { %v4068_v3 = vpop.f32.mrf.mxu2 }
 0x5fb   :  { %v4105_v42 = vpop.f32.mrf.mxu2 }
 0x5fc   :  { %v4106_v22 = vadd.f32 %v4105_v42, %v8475_v38 }
 0x5fe   :  { %v4119_v32 = vadd.f32 %v8184_v31, %v4106_v22 }
 0x600   :  { %v4176_v37 = vmax.f32 %v4119_v32, 0.0 }
 0x602   :  { %v4180_v25 = vpack.c.bf16 %v4176_v37, %v4176_v37 }
 0x603   :  { %v4107_v30 = vpop.f32.mrf.mxu2 }
 0x604   :  { %4476 = vmatmul.bf16.vlgmr.msra.gmra.mxu1 %v4180_v25 }
 0x61b   :  { %v4144_v15 = vpop.f32.mrf.mxu2 }
 0x61c   :  { %v4145_v54 = vadd.f32 %v4144_v15, %v4132_v49 }
 0x61e   :  { %v4158_v38 = vadd.f32 %v8259_v40, %v4145_v54 }
 0x620   :  { %v4171_v14 = vadd.f32 %v8553_v11, %v4158_v38 }
 0x622   :  { %v4177_v31 = vmax.f32 %v4171_v14, 0.0 }
 0x623   :  { %v4146_v58 = vpop.f32.mrf.mxu2 }
 0x624   :  { %v4181_v59 = vpack.c.bf16 %v4177_v31, %v4177_v31 }
 0x626   :  { %4489 = vmatmul.bf16.vlgmr.msra.gmra.mxu2 %v4181_v59 }
 0x63b   :  { %v4451_v50 = vpop.f32.mrf.mxu2 }
 0x63c   :  { %v4452_v33 = vadd.f32 %v6206_v60, %v4451_v50 }
 0x643   :  { %v4453_v41 = vpop.f32.mrf.mxu2 }
 0x665   :  { %v4464_v1 = vpop.f32.mrf.mxu3 }
 0x666   :  { %v4465_v48 = vadd.f32 %v4464_v1, %v4452_v33 }
 0x66d   :  { %v4466_v62 = vpop.f32.mrf.mxu3 }
 0x681   :  { %v4477_v5 = vpop.f32.mrf.mxu1 }
 0x682   :  { %v4478_v10 = vadd.f32 %v4477_v5, %v4465_v48 }
 0x689   :  { %v4479_v43 = vpop.f32.mrf.mxu1 }
 0x6a9   :  { %v4490_v40 = vpop.f32.mrf.mxu2 }
 0x6aa   :  { %v4491_v12 = vadd.f32 %v4490_v40, %v4478_v10 }
 0x6ac   :  { %4494 = vst [vmem:[%s8662_s16] sm:$0xff] %v4491_v12 }
 0x6b1   :  { %v4492_v11 = vpop.f32.mrf.mxu2 }

</bundles_post_ra>
